<compile_context>
chip_gen: v7x
topology: tpu7x:2x2x1
jax: 0.10.0
libtpu: 0.0.40
codegen_flags: <defaults>
</compile_context>

<pallas_src>
import jax
import jax.numpy as jnp
from jax.experimental import pallas as pl
from jax.experimental.pallas import tpu as pltpu

LANE = 128


def _round_up(x, m):
    return (x + m - 1) // m * m


def _full_spec(shape):
    # Whole-array block (no grid).
    return pl.BlockSpec(shape, lambda: (0,) * len(shape))


# ----------------------------- Pallas kernels ------------------------------ #

def conv_pool_kernel(pa_ref, pb_ref, pc_ref, pd_ref, w_ref, b_ref, o_ref):
    """Fused conv-as-matmul + bias + ReLU + 2x2/2 maxpool.

    pa..pd are bf16 im2col slabs for the four corners of each pooling window
    (row m in all four corresponds to the same pooled output position).
    maxpool(relu(conv+b)) == relu(max(conv corners) + b) since bias is shared
    and ReLU is monotone.
    """
    w = w_ref[...]
    da = jnp.dot(pa_ref[...], w, preferred_element_type=jnp.float32)
    db = jnp.dot(pb_ref[...], w, preferred_element_type=jnp.float32)
    dc = jnp.dot(pc_ref[...], w, preferred_element_type=jnp.float32)
    dd = jnp.dot(pd_ref[...], w, preferred_element_type=jnp.float32)
    acc = jnp.maximum(jnp.maximum(da, db), jnp.maximum(dc, dd)) + b_ref[...]
    o_ref[...] = jnp.maximum(acc, 0.0).astype(o_ref.dtype)


def fc_stack_kernel(x_ref, w1_ref, b1_ref, w2_ref, b2_ref, w3_ref, b3_ref, o_ref):
    """fc1+ReLU -> fc2+ReLU -> fc3, all inside one launch (f32 accumulate)."""
    h = jnp.dot(x_ref[...], w1_ref[...], preferred_element_type=jnp.float32)
    h = jnp.maximum(h + b1_ref[...], 0.0)
    h = jnp.dot(h.astype(jnp.bfloat16), w2_ref[...],
                preferred_element_type=jnp.float32)
    h = jnp.maximum(h + b2_ref[...], 0.0)
    h = jnp.dot(h.astype(jnp.bfloat16), w3_ref[...],
                preferred_element_type=jnp.float32)
    o_ref[...] = (h + b3_ref[...]).astype(o_ref.dtype)


# ------------------------------ Model blocks ------------------------------- #

def conv_block(x_nhwc, w_kp, b_p, cout, ks=5):
    """Conv2d(ks, stride=1, pad=(ks-1)//2, bias) + ReLU + MaxPool2d(2,2), NHWC."""
    N, H, W, Cin = x_nhwc.shape
    pad = (ks - 1) // 2
    Ho, Wo = H // 2, W // 2
    K = Cin * ks * ks
    Kp = w_kp.shape[0]                 # K padded to a multiple of 128
    M = N * Ho * Wo

    xp = jnp.pad(x_nhwc, ((0, 0), (pad, pad), (pad, pad), (0, 0)))

    def phase_patches(ph, pw):
        # im2col restricted to conv-output positions (2i+ph, 2j+pw).
        # Feature order (cin, dy, dx) matches torch weight.reshape(Cout, -1).
        cols = [xp[:, ph + dy: ph + dy + H - 1: 2,
                   pw + dx: pw + dx + W - 1: 2, :]
                for dy in range(ks) for dx in range(ks)]
        return jnp.stack(cols, axis=-1).reshape(M, K)

    if M <= 512:
        tm = _round_up(M, 16)
        mp = tm
    else:
        tm = 512
        mp = _round_up(M, tm)

    def pad_patch(p):
        return jnp.pad(p, ((0, mp - M), (0, Kp - K))).astype(jnp.bfloat16)

    pa, pb, pc, pd = (pad_patch(phase_patches(ph, pw))
                      for ph in (0, 1) for pw in (0, 1))

    out = pl.pallas_call(
        conv_pool_kernel,
        out_shape=jax.ShapeDtypeStruct((mp, LANE), jnp.bfloat16),
        grid=(mp // tm,),
        in_specs=[pl.BlockSpec((tm, Kp), lambda i: (i, 0))] * 4
        + [pl.BlockSpec((Kp, LANE), lambda i: (0, 0)),
           pl.BlockSpec((1, LANE), lambda i: (0, 0))],
        out_specs=pl.BlockSpec((tm, LANE), lambda i: (i, 0)),
        compiler_params=pltpu.CompilerParams(
            dimension_semantics=("parallel",)),
    )(pa, pb, pc, pd, w_kp, b_p)
    return out[:M, :cout].reshape(N, Ho, Wo, cout)


def fc_stack(x_flat, kp, num_classes):
    N, _ = x_flat.shape
    Np = _round_up(max(N, 8), 8)
    xpad = jnp.pad(x_flat.astype(jnp.bfloat16), ((0, Np - N), (0, 0)))
    out = pl.pallas_call(
        fc_stack_kernel,
        out_shape=jax.ShapeDtypeStruct((Np, LANE), jnp.float32),
        in_specs=[_full_spec(xpad.shape),
                  _full_spec(kp["fc1_w"].shape), _full_spec(kp["fc1_b"].shape),
                  _full_spec(kp["fc2_w"].shape), _full_spec(kp["fc2_b"].shape),
                  _full_spec(kp["fc3_w"].shape), _full_spec(kp["fc3_b"].shape)],
        out_specs=_full_spec((Np, LANE)),
    )(xpad, kp["fc1_w"], kp["fc1_b"], kp["fc2_w"], kp["fc2_b"],
      kp["fc3_w"], kp["fc3_b"])
    return out[:N, :num_classes]


def forward(x_nchw, kp, num_classes):
    N = x_nchw.shape[0]
    x = jnp.transpose(x_nchw, (0, 2, 3, 1)).astype(jnp.bfloat16)  # NCHW->NHWC
    x = conv_block(x, kp["cw1"], kp["cb1"], 16)     # (N, 12, 12, 16)
    x = conv_block(x, kp["cw2"], kp["cb2"], 32)     # (N,  6,  6, 32)
    x = conv_block(x, kp["cw3"], kp["cb3"], 64)     # (N,  3,  3, 64)
    # Flatten in (h, w, c) order; the permutation matching torch's NCHW
    # x.view(N, -1) is folded into fc1_w, so no activation transpose needed.
    x = x.reshape(N, 3 * 3 * 64)
    return fc_stack(x, kp, num_classes)


# ------------------------------ Param prep --------------------------------- #

def init_params(key, num_classes):
    """Raw torch-layout parameters (Conv: (Cout,Cin,kh,kw); Linear: (out,in))."""
    keys = jax.random.split(key, 12)

    def u(k, shape, fan_in):
        bound = 1.0 / jnp.sqrt(jnp.float32(fan_in))
        return jax.random.uniform(k, shape, jnp.float32, -bound, bound)

    return {
        "w1": u(keys[0], (16, 1, 5, 5), 1 * 25),
        "b1": u(keys[1], (16,), 1 * 25),
        "w2": u(keys[2], (32, 16, 5, 5), 16 * 25),
        "b2": u(keys[3], (32,), 16 * 25),
        "w3": u(keys[4], (64, 32, 5, 5), 32 * 25),
        "b3": u(keys[5], (64,), 32 * 25),
        "fc1_w": u(keys[6], (256, 3 * 3 * 64), 3 * 3 * 64),
        "fc1_b": u(keys[7], (256,), 3 * 3 * 64),
        "fc2_w": u(keys[8], (128, 256), 256),
        "fc2_b": u(keys[9], (128,), 256),
        "fc3_w": u(keys[10], (num_classes, 128), 128),
        "fc3_b": u(keys[11], (num_classes,), 128),
    }


def prepare_params(p, num_classes):
    """One-time conversion of torch-layout params to kernel-ready tensors:
    transpose to (K, N), pad K and Cout to multiples of 128, cast weights to
    bf16 (biases stay f32), fold the NCHW flatten permutation into fc1_w."""
    def conv(w, b, cin, cout, ks=5):
        K = cin * ks * ks
        Kp = _round_up(K, LANE)
        wk = w.reshape(cout, K).T                                    # (K, cout)
        wk = jnp.pad(wk, ((0, Kp - K), (0, LANE - cout))).astype(jnp.bfloat16)
        bk = jnp.pad(b, (0, LANE - cout)).reshape(1, LANE).astype(jnp.float32)
        return wk, bk

    cw1, cb1 = conv(p["w1"], p["b1"], 1, 16)
    cw2, cb2 = conv(p["w2"], p["b2"], 16, 32)
    cw3, cb3 = conv(p["w3"], p["b3"], 32, 64)

    # fc1: reorder columns from torch's (c, h, w) flatten to our (h, w, c).
    fc1 = p["fc1_w"].reshape(256, 64, 3, 3).transpose(0, 2, 3, 1).reshape(256, 576)
    fc1_w = fc1.T.astype(jnp.bfloat16)                               # (576, 256)
    fc1_b = p["fc1_b"].reshape(1, 256).astype(jnp.float32)
    fc2_w = p["fc2_w"].T.astype(jnp.bfloat16)                        # (256, 128)
    fc2_b = p["fc2_b"].reshape(1, 128).astype(jnp.float32)
    fc3_w = jnp.pad(p["fc3_w"].T,
                    ((0, 0), (0, LANE - num_classes))).astype(jnp.bfloat16)
    fc3_b = jnp.pad(p["fc3_b"],
                    (0, LANE - num_classes)).reshape(1, LANE).astype(jnp.float32)
    return dict(cw1=cw1, cb1=cb1, cw2=cw2, cb2=cb2, cw3=cw3, cb3=cb3,
                fc1_w=fc1_w, fc1_b=fc1_b, fc2_w=fc2_w, fc2_b=fc2_b,
                fc3_w=fc3_w, fc3_b=fc3_b)


if __name__ == "__main__":
    num_classes = 10
    key = jax.random.PRNGKey(0)
    kx, kparam = jax.random.split(key)
    # 24x24 input -> 12 -> 6 -> 3 after the three pools, giving 3*3*64 = 576.
    x = jax.random.normal(kx, (2, 1, 24, 24), jnp.float32)

    raw = init_params(kparam, num_classes)
    params = prepare_params(raw, num_classes)        # one-time, outside jit

    fwd = jax.jit(lambda inp: forward(inp, params, num_classes))
    out = jax.block_until_ready(fwd(x))
    assert out.shape == (2, num_classes)
    assert out.dtype == jnp.float32
    print("KERNEL_OK")
</pallas_src>

<mosaic_0001>
module attributes {stable_mosaic.version = 11 : i64} {
  func.func @conv_pool_kernel(%arg0: i32, %arg1: memref<288x128xbf16, #tpu.memory_space<vmem>>, %arg2: memref<288x128xbf16, #tpu.memory_space<vmem>>, %arg3: memref<288x128xbf16, #tpu.memory_space<vmem>>, %arg4: memref<288x128xbf16, #tpu.memory_space<vmem>>, %arg5: memref<128x128xbf16, #tpu.memory_space<vmem>>, %arg6: memref<1x128xf32, #tpu.memory_space<vmem>>, %arg7: memref<288x128xbf16, #tpu.memory_space<vmem>>) attributes {dimension_semantics = [#tpu.dimension_semantics<parallel>], iteration_bounds = array<i64: 1>, scalar_prefetch = 0 : i64, scratch_operands = 0 : i64, tpu.core_type = #tpu.core_type<tc>, window_params = [{transform_indices = @transform_0, window_bounds = array<i64: 288, 128>}, {transform_indices = @transform_1, window_bounds = array<i64: 288, 128>}, {transform_indices = @transform_2, window_bounds = array<i64: 288, 128>}, {transform_indices = @transform_3, window_bounds = array<i64: 288, 128>}, {pipeline_mode = #tpu.pipeline_mode<synchronous>, transform_indices = @transform_4, window_bounds = array<i64: 128, 128>}, {pipeline_mode = #tpu.pipeline_mode<synchronous>, transform_indices = @transform_5, window_bounds = array<i64: 1, 128>}, {transform_indices = @transform_6, window_bounds = array<i64: 288, 128>}]} {
    %c0 = arith.constant 0 : index
    %c0_0 = arith.constant 0 : index
    %0 = vector.load %arg5[%c0, %c0_0] : memref<128x128xbf16, #tpu.memory_space<vmem>>, vector<128x128xbf16>
    %c0_1 = arith.constant 0 : index
    %c0_2 = arith.constant 0 : index
    %1 = vector.load %arg1[%c0_1, %c0_2] : memref<288x128xbf16, #tpu.memory_space<vmem>>, vector<288x128xbf16>
    %cst = arith.constant dense<0.000000e+00> : vector<288x128xf32>
    %2 = tpu.matmul %1, %0, %cst {dimension_numbers = #tpu.dot_dimension_numbers<[1], [0], [0], [1], [0, 0, 1, 1], [], []>} : vector<288x128xbf16>, vector<128x128xbf16>, vector<288x128xf32> -> vector<288x128xf32>
    %c0_3 = arith.constant 0 : index
    %c0_4 = arith.constant 0 : index
    %3 = vector.load %arg2[%c0_3, %c0_4] : memref<288x128xbf16, #tpu.memory_space<vmem>>, vector<288x128xbf16>
    %cst_5 = arith.constant dense<0.000000e+00> : vector<288x128xf32>
    %4 = tpu.matmul %3, %0, %cst_5 {dimension_numbers = #tpu.dot_dimension_numbers<[1], [0], [0], [1], [0, 0, 1, 1], [], []>} : vector<288x128xbf16>, vector<128x128xbf16>, vector<288x128xf32> -> vector<288x128xf32>
    %c0_6 = arith.constant 0 : index
    %c0_7 = arith.constant 0 : index
    %5 = vector.load %arg3[%c0_6, %c0_7] : memref<288x128xbf16, #tpu.memory_space<vmem>>, vector<288x128xbf16>
    %cst_8 = arith.constant dense<0.000000e+00> : vector<288x128xf32>
    %6 = tpu.matmul %5, %0, %cst_8 {dimension_numbers = #tpu.dot_dimension_numbers<[1], [0], [0], [1], [0, 0, 1, 1], [], []>} : vector<288x128xbf16>, vector<128x128xbf16>, vector<288x128xf32> -> vector<288x128xf32>
    %c0_9 = arith.constant 0 : index
    %c0_10 = arith.constant 0 : index
    %7 = vector.load %arg4[%c0_9, %c0_10] : memref<288x128xbf16, #tpu.memory_space<vmem>>, vector<288x128xbf16>
    %cst_11 = arith.constant dense<0.000000e+00> : vector<288x128xf32>
    %8 = tpu.matmul %7, %0, %cst_11 {dimension_numbers = #tpu.dot_dimension_numbers<[1], [0], [0], [1], [0, 0, 1, 1], [], []>} : vector<288x128xbf16>, vector<128x128xbf16>, vector<288x128xf32> -> vector<288x128xf32>
    %9 = arith.maximumf %2, %4 : vector<288x128xf32>
    %10 = arith.maximumf %6, %8 : vector<288x128xf32>
    %11 = arith.maximumf %9, %10 : vector<288x128xf32>
    %c0_12 = arith.constant 0 : index
    %c0_13 = arith.constant 0 : index
    %12 = vector.load %arg6[%c0_12, %c0_13] : memref<1x128xf32, #tpu.memory_space<vmem>>, vector<1x128xf32>
    %13 = vector.broadcast %12 : vector<1x128xf32> to vector<288x128xf32>
    %14 = arith.addf %11, %13 : vector<288x128xf32>
    %cst_14 = arith.constant 0.000000e+00 : f32
    %15 = vector.broadcast %cst_14 : f32 to vector<288x128xf32>
    %16 = arith.maximumf %14, %15 : vector<288x128xf32>
    %17 = arith.truncf %16 : vector<288x128xf32> to vector<288x128xbf16>
    %c0_15 = arith.constant 0 : index
    %c0_16 = arith.constant 0 : index
    %18 = vector.load %arg7[%c0_15, %c0_16] : memref<288x128xbf16, #tpu.memory_space<vmem>>, vector<288x128xbf16>
    tpu.vector_store %arg7[%c0_15, %c0_16], %17 {strides = array<i32>} : memref<288x128xbf16, #tpu.memory_space<vmem>>, vector<288x128xbf16>,
    return
  }
  func.func @transform_0(%arg0: i32) -> (i32, i32) {
    %c0_i32 = arith.constant 0 : i32
    %c0_i32_0 = arith.constant 0 : i32
    return %arg0, %c0_i32 : i32, i32
  }
  func.func @transform_1(%arg0: i32) -> (i32, i32) {
    %c0_i32 = arith.constant 0 : i32
    %c0_i32_0 = arith.constant 0 : i32
    return %arg0, %c0_i32 : i32, i32
  }
  func.func @transform_2(%arg0: i32) -> (i32, i32) {
    %c0_i32 = arith.constant 0 : i32
    %c0_i32_0 = arith.constant 0 : i32
    return %arg0, %c0_i32 : i32, i32
  }
  func.func @transform_3(%arg0: i32) -> (i32, i32) {
    %c0_i32 = arith.constant 0 : i32
    %c0_i32_0 = arith.constant 0 : i32
    return %arg0, %c0_i32 : i32, i32
  }
  func.func @transform_4(%arg0: i32) -> (i32, i32) {
    %c0_i32 = arith.constant 0 : i32
    %c0_i32_0 = arith.constant 0 : i32
    %c0_i32_1 = arith.constant 0 : i32
    return %c0_i32, %c0_i32_0 : i32, i32
  }
  func.func @transform_5(%arg0: i32) -> (i32, i32) {
    %c0_i32 = arith.constant 0 : i32
    %c0_i32_0 = arith.constant 0 : i32
    %c0_i32_1 = arith.constant 0 : i32
    return %c0_i32, %c0_i32_0 : i32, i32
  }
  func.func @transform_6(%arg0: i32) -> (i32, i32) {
    %c0_i32 = arith.constant 0 : i32
    %c0_i32_0 = arith.constant 0 : i32
    return %arg0, %c0_i32 : i32, i32
  }
}

module attributes {stable_mosaic.version = 11 : i64} {
  func.func @conv_pool_kernel(%arg0: i32, %arg1: memref<80x512xbf16, #tpu.memory_space<vmem>>, %arg2: memref<80x512xbf16, #tpu.memory_space<vmem>>, %arg3: memref<80x512xbf16, #tpu.memory_space<vmem>>, %arg4: memref<80x512xbf16, #tpu.memory_space<vmem>>, %arg5: memref<512x128xbf16, #tpu.memory_space<vmem>>, %arg6: memref<1x128xf32, #tpu.memory_space<vmem>>, %arg7: memref<80x128xbf16, #tpu.memory_space<vmem>>) attributes {dimension_semantics = [#tpu.dimension_semantics<parallel>], iteration_bounds = array<i64: 1>, scalar_prefetch = 0 : i64, scratch_operands = 0 : i64, tpu.core_type = #tpu.core_type<tc>, window_params = [{transform_indices = @transform_0, window_bounds = array<i64: 80, 512>}, {transform_indices = @transform_1, window_bounds = array<i64: 80, 512>}, {transform_indices = @transform_2, window_bounds = array<i64: 80, 512>}, {transform_indices = @transform_3, window_bounds = array<i64: 80, 512>}, {pipeline_mode = #tpu.pipeline_mode<synchronous>, transform_indices = @transform_4, window_bounds = array<i64: 512, 128>}, {pipeline_mode = #tpu.pipeline_mode<synchronous>, transform_indices = @transform_5, window_bounds = array<i64: 1, 128>}, {transform_indices = @transform_6, window_bounds = array<i64: 80, 128>}]} {
    %c0 = arith.constant 0 : index
    %c0_0 = arith.constant 0 : index
    %0 = vector.load %arg5[%c0, %c0_0] : memref<512x128xbf16, #tpu.memory_space<vmem>>, vector<512x128xbf16>
    %c0_1 = arith.constant 0 : index
    %c0_2 = arith.constant 0 : index
    %1 = vector.load %arg1[%c0_1, %c0_2] : memref<80x512xbf16, #tpu.memory_space<vmem>>, vector<80x512xbf16>
    %cst = arith.constant dense<0.000000e+00> : vector<80x128xf32>
    %2 = tpu.matmul %1, %0, %cst {dimension_numbers = #tpu.dot_dimension_numbers<[1], [0], [0], [1], [0, 0, 1, 1], [], []>} : vector<80x512xbf16>, vector<512x128xbf16>, vector<80x128xf32> -> vector<80x128xf32>
    %c0_3 = arith.constant 0 : index
    %c0_4 = arith.constant 0 : index
    %3 = vector.load %arg2[%c0_3, %c0_4] : memref<80x512xbf16, #tpu.memory_space<vmem>>, vector<80x512xbf16>
    %cst_5 = arith.constant dense<0.000000e+00> : vector<80x128xf32>
    %4 = tpu.matmul %3, %0, %cst_5 {dimension_numbers = #tpu.dot_dimension_numbers<[1], [0], [0], [1], [0, 0, 1, 1], [], []>} : vector<80x512xbf16>, vector<512x128xbf16>, vector<80x128xf32> -> vector<80x128xf32>
    %c0_6 = arith.constant 0 : index
    %c0_7 = arith.constant 0 : index
    %5 = vector.load %arg3[%c0_6, %c0_7] : memref<80x512xbf16, #tpu.memory_space<vmem>>, vector<80x512xbf16>
    %cst_8 = arith.constant dense<0.000000e+00> : vector<80x128xf32>
    %6 = tpu.matmul %5, %0, %cst_8 {dimension_numbers = #tpu.dot_dimension_numbers<[1], [0], [0], [1], [0, 0, 1, 1], [], []>} : vector<80x512xbf16>, vector<512x128xbf16>, vector<80x128xf32> -> vector<80x128xf32>
    %c0_9 = arith.constant 0 : index
    %c0_10 = arith.constant 0 : index
    %7 = vector.load %arg4[%c0_9, %c0_10] : memref<80x512xbf16, #tpu.memory_space<vmem>>, vector<80x512xbf16>
    %cst_11 = arith.constant dense<0.000000e+00> : vector<80x128xf32>
    %8 = tpu.matmul %7, %0, %cst_11 {dimension_numbers = #tpu.dot_dimension_numbers<[1], [0], [0], [1], [0, 0, 1, 1], [], []>} : vector<80x512xbf16>, vector<512x128xbf16>, vector<80x128xf32> -> vector<80x128xf32>
    %9 = arith.maximumf %2, %4 : vector<80x128xf32>
    %10 = arith.maximumf %6, %8 : vector<80x128xf32>
    %11 = arith.maximumf %9, %10 : vector<80x128xf32>
    %c0_12 = arith.constant 0 : index
    %c0_13 = arith.constant 0 : index
    %12 = vector.load %arg6[%c0_12, %c0_13] : memref<1x128xf32, #tpu.memory_space<vmem>>, vector<1x128xf32>
    %13 = vector.broadcast %12 : vector<1x128xf32> to vector<80x128xf32>
    %14 = arith.addf %11, %13 : vector<80x128xf32>
    %cst_14 = arith.constant 0.000000e+00 : f32
    %15 = vector.broadcast %cst_14 : f32 to vector<80x128xf32>
    %16 = arith.maximumf %14, %15 : vector<80x128xf32>
    %17 = arith.truncf %16 : vector<80x128xf32> to vector<80x128xbf16>
    %c0_15 = arith.constant 0 : index
    %c0_16 = arith.constant 0 : index
    %18 = vector.load %arg7[%c0_15, %c0_16] : memref<80x128xbf16, #tpu.memory_space<vmem>>, vector<80x128xbf16>
    tpu.vector_store %arg7[%c0_15, %c0_16], %17 {strides = array<i32>} : memref<80x128xbf16, #tpu.memory_space<vmem>>, vector<80x128xbf16>,
    return
  }
  func.func @transform_0(%arg0: i32) -> (i32, i32) {
    %c0_i32 = arith.constant 0 : i32
    %c0_i32_0 = arith.constant 0 : i32
    return %arg0, %c0_i32 : i32, i32
  }
  func.func @transform_1(%arg0: i32) -> (i32, i32) {
    %c0_i32 = arith.constant 0 : i32
    %c0_i32_0 = arith.constant 0 : i32
    return %arg0, %c0_i32 : i32, i32
  }
  func.func @transform_2(%arg0: i32) -> (i32, i32) {
    %c0_i32 = arith.constant 0 : i32
    %c0_i32_0 = arith.constant 0 : i32
    return %arg0, %c0_i32 : i32, i32
  }
  func.func @transform_3(%arg0: i32) -> (i32, i32) {
    %c0_i32 = arith.constant 0 : i32
    %c0_i32_0 = arith.constant 0 : i32
    return %arg0, %c0_i32 : i32, i32
  }
  func.func @transform_4(%arg0: i32) -> (i32, i32) {
    %c0_i32 = arith.constant 0 : i32
    %c0_i32_0 = arith.constant 0 : i32
    %c0_i32_1 = arith.constant 0 : i32
    return %c0_i32, %c0_i32_0 : i32, i32
  }
  func.func @transform_5(%arg0: i32) -> (i32, i32) {
    %c0_i32 = arith.constant 0 : i32
    %c0_i32_0 = arith.constant 0 : i32
    %c0_i32_1 = arith.constant 0 : i32
    return %c0_i32, %c0_i32_0 : i32, i32
  }
  func.func @transform_6(%arg0: i32) -> (i32, i32) {
    %c0_i32 = arith.constant 0 : i32
    %c0_i32_0 = arith.constant 0 : i32
    return %arg0, %c0_i32 : i32, i32
  }
}

module attributes {stable_mosaic.version = 11 : i64} {
  func.func @conv_pool_kernel(%arg0: i32, %arg1: memref<32x896xbf16, #tpu.memory_space<vmem>>, %arg2: memref<32x896xbf16, #tpu.memory_space<vmem>>, %arg3: memref<32x896xbf16, #tpu.memory_space<vmem>>, %arg4: memref<32x896xbf16, #tpu.memory_space<vmem>>, %arg5: memref<896x128xbf16, #tpu.memory_space<vmem>>, %arg6: memref<1x128xf32, #tpu.memory_space<vmem>>, %arg7: memref<32x128xbf16, #tpu.memory_space<vmem>>) attributes {dimension_semantics = [#tpu.dimension_semantics<parallel>], iteration_bounds = array<i64: 1>, scalar_prefetch = 0 : i64, scratch_operands = 0 : i64, tpu.core_type = #tpu.core_type<tc>, window_params = [{transform_indices = @transform_0, window_bounds = array<i64: 32, 896>}, {transform_indices = @transform_1, window_bounds = array<i64: 32, 896>}, {transform_indices = @transform_2, window_bounds = array<i64: 32, 896>}, {transform_indices = @transform_3, window_bounds = array<i64: 32, 896>}, {pipeline_mode = #tpu.pipeline_mode<synchronous>, transform_indices = @transform_4, window_bounds = array<i64: 896, 128>}, {pipeline_mode = #tpu.pipeline_mode<synchronous>, transform_indices = @transform_5, window_bounds = array<i64: 1, 128>}, {transform_indices = @transform_6, window_bounds = array<i64: 32, 128>}]} {
    %c0 = arith.constant 0 : index
    %c0_0 = arith.constant 0 : index
    %0 = vector.load %arg5[%c0, %c0_0] : memref<896x128xbf16, #tpu.memory_space<vmem>>, vector<896x128xbf16>
    %c0_1 = arith.constant 0 : index
    %c0_2 = arith.constant 0 : index
    %1 = vector.load %arg1[%c0_1, %c0_2] : memref<32x896xbf16, #tpu.memory_space<vmem>>, vector<32x896xbf16>
    %cst = arith.constant dense<0.000000e+00> : vector<32x128xf32>
    %2 = tpu.matmul %1, %0, %cst {dimension_numbers = #tpu.dot_dimension_numbers<[1], [0], [0], [1], [0, 0, 1, 1], [], []>} : vector<32x896xbf16>, vector<896x128xbf16>, vector<32x128xf32> -> vector<32x128xf32>
    %c0_3 = arith.constant 0 : index
    %c0_4 = arith.constant 0 : index
    %3 = vector.load %arg2[%c0_3, %c0_4] : memref<32x896xbf16, #tpu.memory_space<vmem>>, vector<32x896xbf16>
    %cst_5 = arith.constant dense<0.000000e+00> : vector<32x128xf32>
    %4 = tpu.matmul %3, %0, %cst_5 {dimension_numbers = #tpu.dot_dimension_numbers<[1], [0], [0], [1], [0, 0, 1, 1], [], []>} : vector<32x896xbf16>, vector<896x128xbf16>, vector<32x128xf32> -> vector<32x128xf32>
    %c0_6 = arith.constant 0 : index
    %c0_7 = arith.constant 0 : index
    %5 = vector.load %arg3[%c0_6, %c0_7] : memref<32x896xbf16, #tpu.memory_space<vmem>>, vector<32x896xbf16>
    %cst_8 = arith.constant dense<0.000000e+00> : vector<32x128xf32>
    %6 = tpu.matmul %5, %0, %cst_8 {dimension_numbers = #tpu.dot_dimension_numbers<[1], [0], [0], [1], [0, 0, 1, 1], [], []>} : vector<32x896xbf16>, vector<896x128xbf16>, vector<32x128xf32> -> vector<32x128xf32>
    %c0_9 = arith.constant 0 : index
    %c0_10 = arith.constant 0 : index
    %7 = vector.load %arg4[%c0_9, %c0_10] : memref<32x896xbf16, #tpu.memory_space<vmem>>, vector<32x896xbf16>
    %cst_11 = arith.constant dense<0.000000e+00> : vector<32x128xf32>
    %8 = tpu.matmul %7, %0, %cst_11 {dimension_numbers = #tpu.dot_dimension_numbers<[1], [0], [0], [1], [0, 0, 1, 1], [], []>} : vector<32x896xbf16>, vector<896x128xbf16>, vector<32x128xf32> -> vector<32x128xf32>
    %9 = arith.maximumf %2, %4 : vector<32x128xf32>
    %10 = arith.maximumf %6, %8 : vector<32x128xf32>
    %11 = arith.maximumf %9, %10 : vector<32x128xf32>
    %c0_12 = arith.constant 0 : index
    %c0_13 = arith.constant 0 : index
    %12 = vector.load %arg6[%c0_12, %c0_13] : memref<1x128xf32, #tpu.memory_space<vmem>>, vector<1x128xf32>
    %13 = vector.broadcast %12 : vector<1x128xf32> to vector<32x128xf32>
    %14 = arith.addf %11, %13 : vector<32x128xf32>
    %cst_14 = arith.constant 0.000000e+00 : f32
    %15 = vector.broadcast %cst_14 : f32 to vector<32x128xf32>
    %16 = arith.maximumf %14, %15 : vector<32x128xf32>
    %17 = arith.truncf %16 : vector<32x128xf32> to vector<32x128xbf16>
    %c0_15 = arith.constant 0 : index
    %c0_16 = arith.constant 0 : index
    %18 = vector.load %arg7[%c0_15, %c0_16] : memref<32x128xbf16, #tpu.memory_space<vmem>>, vector<32x128xbf16>
    tpu.vector_store %arg7[%c0_15, %c0_16], %17 {strides = array<i32>} : memref<32x128xbf16, #tpu.memory_space<vmem>>, vector<32x128xbf16>,
    return
  }
  func.func @transform_0(%arg0: i32) -> (i32, i32) {
    %c0_i32 = arith.constant 0 : i32
    %c0_i32_0 = arith.constant 0 : i32
    return %arg0, %c0_i32 : i32, i32
  }
  func.func @transform_1(%arg0: i32) -> (i32, i32) {
    %c0_i32 = arith.constant 0 : i32
    %c0_i32_0 = arith.constant 0 : i32
    return %arg0, %c0_i32 : i32, i32
  }
  func.func @transform_2(%arg0: i32) -> (i32, i32) {
    %c0_i32 = arith.constant 0 : i32
    %c0_i32_0 = arith.constant 0 : i32
    return %arg0, %c0_i32 : i32, i32
  }
  func.func @transform_3(%arg0: i32) -> (i32, i32) {
    %c0_i32 = arith.constant 0 : i32
    %c0_i32_0 = arith.constant 0 : i32
    return %arg0, %c0_i32 : i32, i32
  }
  func.func @transform_4(%arg0: i32) -> (i32, i32) {
    %c0_i32 = arith.constant 0 : i32
    %c0_i32_0 = arith.constant 0 : i32
    %c0_i32_1 = arith.constant 0 : i32
    return %c0_i32, %c0_i32_0 : i32, i32
  }
  func.func @transform_5(%arg0: i32) -> (i32, i32) {
    %c0_i32 = arith.constant 0 : i32
    %c0_i32_0 = arith.constant 0 : i32
    %c0_i32_1 = arith.constant 0 : i32
    return %c0_i32, %c0_i32_0 : i32, i32
  }
  func.func @transform_6(%arg0: i32) -> (i32, i32) {
    %c0_i32 = arith.constant 0 : i32
    %c0_i32_0 = arith.constant 0 : i32
    return %arg0, %c0_i32 : i32, i32
  }
}

module attributes {stable_mosaic.version = 11 : i64} {
  func.func @fc_stack_kernel(%arg0: memref<8x576xbf16, #tpu.memory_space<vmem>>, %arg1: memref<576x256xbf16, #tpu.memory_space<vmem>>, %arg2: memref<1x256xf32, #tpu.memory_space<vmem>>, %arg3: memref<256x128xbf16, #tpu.memory_space<vmem>>, %arg4: memref<1x128xf32, #tpu.memory_space<vmem>>, %arg5: memref<128x128xbf16, #tpu.memory_space<vmem>>, %arg6: memref<1x128xf32, #tpu.memory_space<vmem>>, %arg7: memref<8x128xf32, #tpu.memory_space<vmem>>) attributes {dimension_semantics = [], scalar_prefetch = 0 : i64, scratch_operands = 0 : i64, tpu.core_type = #tpu.core_type<tc>} {
    %c0 = arith.constant 0 : index
    %c0_0 = arith.constant 0 : index
    %0 = vector.load %arg0[%c0, %c0_0] : memref<8x576xbf16, #tpu.memory_space<vmem>>, vector<8x576xbf16>
    %c0_1 = arith.constant 0 : index
    %c0_2 = arith.constant 0 : index
    %1 = vector.load %arg1[%c0_1, %c0_2] : memref<576x256xbf16, #tpu.memory_space<vmem>>, vector<576x256xbf16>
    %cst = arith.constant dense<0.000000e+00> : vector<8x256xf32>
    %2 = tpu.matmul %0, %1, %cst {dimension_numbers = #tpu.dot_dimension_numbers<[1], [0], [0], [1], [0, 0, 1, 1], [], []>} : vector<8x576xbf16>, vector<576x256xbf16>, vector<8x256xf32> -> vector<8x256xf32>
    %c0_3 = arith.constant 0 : index
    %c0_4 = arith.constant 0 : index
    %3 = vector.load %arg2[%c0_3, %c0_4] : memref<1x256xf32, #tpu.memory_space<vmem>>, vector<1x256xf32>
    %4 = vector.broadcast %3 : vector<1x256xf32> to vector<8x256xf32>
    %5 = arith.addf %2, %4 : vector<8x256xf32>
    %cst_5 = arith.constant 0.000000e+00 : f32
    %6 = vector.broadcast %cst_5 : f32 to vector<8x256xf32>
    %7 = arith.maximumf %5, %6 : vector<8x256xf32>
    %8 = arith.truncf %7 : vector<8x256xf32> to vector<8x256xbf16>
    %c0_6 = arith.constant 0 : index
    %c0_7 = arith.constant 0 : index
    %9 = vector.load %arg3[%c0_6, %c0_7] : memref<256x128xbf16, #tpu.memory_space<vmem>>, vector<256x128xbf16>
    %cst_8 = arith.constant dense<0.000000e+00> : vector<8x128xf32>
    %10 = tpu.matmul %8, %9, %cst_8 {dimension_numbers = #tpu.dot_dimension_numbers<[1], [0], [0], [1], [0, 0, 1, 1], [], []>} : vector<8x256xbf16>, vector<256x128xbf16>, vector<8x128xf32> -> vector<8x128xf32>
    %c0_9 = arith.constant 0 : index
    %c0_10 = arith.constant 0 : index
    %11 = vector.load %arg4[%c0_9, %c0_10] : memref<1x128xf32, #tpu.memory_space<vmem>>, vector<1x128xf32>
    %12 = vector.broadcast %11 : vector<1x128xf32> to vector<8x128xf32>
    %13 = arith.addf %10, %12 : vector<8x128xf32>
    %cst_11 = arith.constant 0.000000e+00 : f32
    %14 = vector.broadcast %cst_11 : f32 to vector<8x128xf32>
    %15 = arith.maximumf %13, %14 : vector<8x128xf32>
    %16 = arith.truncf %15 : vector<8x128xf32> to vector<8x128xbf16>
    %c0_12 = arith.constant 0 : index
    %c0_13 = arith.constant 0 : index
    %17 = vector.load %arg5[%c0_12, %c0_13] : memref<128x128xbf16, #tpu.memory_space<vmem>>, vector<128x128xbf16>
    %cst_14 = arith.constant dense<0.000000e+00> : vector<8x128xf32>
    %18 = tpu.matmul %16, %17, %cst_14 {dimension_numbers = #tpu.dot_dimension_numbers<[1], [0], [0], [1], [0, 0, 1, 1], [], []>} : vector<8x128xbf16>, vector<128x128xbf16>, vector<8x128xf32> -> vector<8x128xf32>
    %c0_15 = arith.constant 0 : index
    %c0_16 = arith.constant 0 : index
    %19 = vector.load %arg6[%c0_15, %c0_16] : memref<1x128xf32, #tpu.memory_space<vmem>>, vector<1x128xf32>
    %20 = vector.broadcast %19 : vector<1x128xf32> to vector<8x128xf32>
    %21 = arith.addf %18, %20 : vector<8x128xf32>
    %c0_17 = arith.constant 0 : index
    %c0_18 = arith.constant 0 : index
    %22 = vector.load %arg7[%c0_17, %c0_18] : memref<8x128xf32, #tpu.memory_space<vmem>>, vector<8x128xf32>
    tpu.vector_store %arg7[%c0_17, %c0_18], %21 {strides = array<i32>} : memref<8x128xf32, #tpu.memory_space<vmem>>, vector<8x128xf32>,
    return
  }
}

</mosaic_0001>

<bundles_post_ra>
// kernel: _lambda_.4
= control target key start
LH: loop header
LB: loop body
LE: loop exit
PB: predicated region body
PF: predicated region fallthrough
CT: control target
= control target key end

     0   :  { %s3149_s4 = inlined_call_operand.vmem [shape: bf16[128,128], index: 4, kind: input, shape index: {}]   ;;  %s3150_s0 = inlined_call_operand.vmem [shape: bf16[288,128], index: 0, kind: input, shape index: {}]   ;;  %s3151_s1 = inlined_call_operand.vmem [shape: bf16[288,128], index: 1, kind: input, shape index: {}]   ;;  %s3152_s2 = inlined_call_operand.vmem [shape: bf16[288,128], index: 2, kind: input, shape index: {}]   ;;  %s3153_s3 = inlined_call_operand.vmem [shape: bf16[288,128], index: 3, kind: input, shape index: {}]   ;;  %s3154_s5 = inlined_call_operand.vmem [shape: f32[1,128], index: 5, kind: input, shape index: {}]   ;;  %s3155_s6 = inlined_call_operand.vmem [shape: bf16[288,128], index: 6, kind: output, shape index: {}]  }
   0x1   :  { %v2315_v0 = vld [vmem:[%s3149_s4] sm:$0xff]   ;;  %v2316_v1 = vld [vmem:[%s3149_s4 + $0x8] sm:$0xff]   ;;  %v2439_v2 = vld [vmem:[%s3149_s4 + $0x10] sm:$0xff]  }
   0x2   :  { %2107 = vmatprep.subr.bf16.mxu0 %v2315_v0  ;;  %2159 = vmatprep.subr.bf16.mxu1 %v2315_v0  ;;  %v2444_v3 = vld [vmem:[%s3149_s4 + $0x18] sm:$0xff]   ;;  %v2323_v4 = vld [vmem:[%s3150_s0] sm:$0xff]   ;;  %v2470_v7 = vld [vmem:[%s3149_s4 + $0x28] sm:$0xff]  }
   0x3   :  { %2108 = vmatpush3.bf16.msra.mxu0 %v2315_v0  ;;  %2160 = vmatpush3.bf16.msra.mxu1 %v2315_v0  ;;  %v2324_v5 = vld [vmem:[%s3151_s1] sm:$0xff]   ;;  %v2479_v8 = vld [vmem:[%s3149_s4 + $0x30] sm:$0xff]   ;;  %v2488_v9 = vld [vmem:[%s3149_s4 + $0x38] sm:$0xff]  }
   0x4   :  { %2109 = vmatprep.subr.bf16.mxu0 %v2316_v1  ;;  %2161 = vmatprep.subr.bf16.mxu1 %v2316_v1  ;;  %v2461_v6 = vld [vmem:[%s3149_s4 + $0x20] sm:$0xff]   ;;  %v2325_v10 = vld [vmem:[%s3150_s0 + $0x8] sm:$0xff]   ;;  %v2327_v12 = vld [vmem:[%s3150_s0 + $0x10] sm:$0xff]  }
   0x5   :  { %2123 = vmatprep.mubr.bf16.mxu0 %v2323_v4  ;;  %2175 = vmatprep.mubr.bf16.mxu1 %v2324_v5  ;;  %v2326_v11 = vld [vmem:[%s3151_s1 + $0x8] sm:$0xff]   ;;  %v2328_v13 = vld [vmem:[%s3151_s1 + $0x10] sm:$0xff]   ;;  %v2329_v14 = vld [vmem:[%s3150_s0 + $0x18] sm:$0xff]  }
   0x6   :  { %v2330_v15 = vld [vmem:[%s3151_s1 + $0x18] sm:$0xff]   ;;  %v2331_v16 = vld [vmem:[%s3150_s0 + $0x20] sm:$0xff]   ;;  %v2333_v18 = vld [vmem:[%s3150_s0 + $0x28] sm:$0xff]  }
   0x7   :  { %2110 = vmatpush3.bf16.msra.mxu0 %v2316_v1  ;;  %2162 = vmatpush3.bf16.msra.mxu1 %v2316_v1  ;;  %v2332_v17 = vld [vmem:[%s3151_s1 + $0x20] sm:$0xff]   ;;  %v2334_v19 = vld [vmem:[%s3151_s1 + $0x28] sm:$0xff]   ;;  %v2335_v20 = vld [vmem:[%s3150_s0 + $0x30] sm:$0xff]  }
   0x8   :  { %2111 = vmatprep.subr.bf16.mxu0 %v2439_v2  ;;  %2163 = vmatprep.subr.bf16.mxu1 %v2439_v2  ;;  %v2336_v21 = vld [vmem:[%s3151_s1 + $0x30] sm:$0xff]   ;;  %v2337_v22 = vld [vmem:[%s3150_s0 + $0x38] sm:$0xff]   ;;  %v2339_v24 = vld [vmem:[%s3150_s0 + $0x40] sm:$0xff]  }
   0x9   :  { %v2338_v23 = vld [vmem:[%s3151_s1 + $0x38] sm:$0xff]   ;;  %v2340_v25 = vld [vmem:[%s3151_s1 + $0x40] sm:$0xff]   ;;  %v2341_v26 = vld [vmem:[%s3150_s0 + $0x48] sm:$0xff]  }
   0xa   :  { %v2342_v27 = vld [vmem:[%s3151_s1 + $0x48] sm:$0xff]   ;;  %v2343_v28 = vld [vmem:[%s3150_s0 + $0x50] sm:$0xff]   ;;  %v2345_v30 = vld [vmem:[%s3150_s0 + $0x58] sm:$0xff]  }
   0xb   :  { %2112 = vmatpush3.bf16.msra.mxu0 %v2439_v2  ;;  %2164 = vmatpush3.bf16.msra.mxu1 %v2439_v2  ;;  %v2344_v29 = vld [vmem:[%s3151_s1 + $0x50] sm:$0xff]   ;;  %v2346_v31 = vld [vmem:[%s3151_s1 + $0x58] sm:$0xff]   ;;  %v2347_v32 = vld [vmem:[%s3150_s0 + $0x60] sm:$0xff]  }
   0xc   :  { %2113 = vmatprep.subr.bf16.mxu0 %v2444_v3  ;;  %2165 = vmatprep.subr.bf16.mxu1 %v2444_v3  ;;  %v2348_v33 = vld [vmem:[%s3151_s1 + $0x60] sm:$0xff]   ;;  %v2349_v34 = vld [vmem:[%s3150_s0 + $0x68] sm:$0xff]   ;;  %v2351_v36 = vld [vmem:[%s3150_s0 + $0x70] sm:$0xff]  }
   0xd   :  { %v2350_v35 = vld [vmem:[%s3151_s1 + $0x68] sm:$0xff]   ;;  %v2352_v37 = vld [vmem:[%s3151_s1 + $0x70] sm:$0xff]   ;;  %v2353_v38 = vld [vmem:[%s3150_s0 + $0x78] sm:$0xff]  }
   0xe   :  { %v2354_v39 = vld [vmem:[%s3151_s1 + $0x78] sm:$0xff]   ;;  %v2355_v40 = vld [vmem:[%s3150_s0 + $0x80] sm:$0xff]   ;;  %v2357_v42 = vld [vmem:[%s3150_s0 + $0x88] sm:$0xff]  }
   0xf   :  { %2114 = vmatpush3.bf16.msra.mxu0 %v2444_v3  ;;  %2166 = vmatpush3.bf16.msra.mxu1 %v2444_v3  ;;  %v2356_v41 = vld [vmem:[%s3151_s1 + $0x80] sm:$0xff]   ;;  %v2358_v43 = vld [vmem:[%s3151_s1 + $0x88] sm:$0xff]   ;;  %v2363_v48 = vld [vmem:[%s3152_s2 + $0x10] sm:$0xff]  }
  0x10   :  { %2115 = vmatprep.subr.bf16.mxu0 %v2461_v6  ;;  %2167 = vmatprep.subr.bf16.mxu1 %v2461_v6  ;;  %v2359_v44 = vld [vmem:[%s3152_s2] sm:$0xff]   ;;  %v2361_v46 = vld [vmem:[%s3152_s2 + $0x8] sm:$0xff]   ;;  %v2364_v49 = vld [vmem:[%s3153_s3 + $0x10] sm:$0xff]  }
  0x11   :  { %v2360_v45 = vld [vmem:[%s3153_s3] sm:$0xff]   ;;  %v2362_v47 = vld [vmem:[%s3153_s3 + $0x8] sm:$0xff]   ;;  %v2365_v50 = vld [vmem:[%s3152_s2 + $0x18] sm:$0xff]  }
  0x12   :  { %v2366_v51 = vld [vmem:[%s3153_s3 + $0x18] sm:$0xff]   ;;  %v2367_v52 = vld [vmem:[%s3152_s2 + $0x20] sm:$0xff]   ;;  %v2369_v54 = vld [vmem:[%s3152_s2 + $0x28] sm:$0xff]  }
  0x13   :  { %2116 = vmatpush3.bf16.msra.mxu0 %v2461_v6  ;;  %2168 = vmatpush3.bf16.msra.mxu1 %v2461_v6  ;;  %v2368_v53 = vld [vmem:[%s3153_s3 + $0x20] sm:$0xff]   ;;  %v2370_v55 = vld [vmem:[%s3153_s3 + $0x28] sm:$0xff]   ;;  %v2371_v56 = vld [vmem:[%s3152_s2 + $0x30] sm:$0xff]  }
  0x14   :  { %2117 = vmatprep.subr.bf16.mxu0 %v2470_v7  ;;  %2169 = vmatprep.subr.bf16.mxu1 %v2470_v7  ;;  %v2372_v57 = vld [vmem:[%s3153_s3 + $0x30] sm:$0xff]   ;;  %v2373_v58 = vld [vmem:[%s3152_s2 + $0x38] sm:$0xff]   ;;  %v2375_v60 = vld [vmem:[%s3152_s2 + $0x40] sm:$0xff]  }
  0x15   :  { %v2374_v59 = vld [vmem:[%s3153_s3 + $0x38] sm:$0xff]   ;;  %v2376_v61 = vld [vmem:[%s3153_s3 + $0x40] sm:$0xff]   ;;  %v2377_v62 = vld [vmem:[%s3152_s2 + $0x48] sm:$0xff]  }
  0x16   :  { %v2378_v63 = vld [vmem:[%s3153_s3 + $0x48] sm:$0xff]   ;;  %v2383_v4 = vld [vmem:[%s3152_s2 + $0x60] sm:$0xff]  }
  0x17   :  { %2118 = vmatpush3.bf16.msra.mxu0 %v2470_v7  ;;  %2170 = vmatpush3.bf16.msra.mxu1 %v2470_v7  ;;  %v2384_v5 = vld [vmem:[%s3153_s3 + $0x60] sm:$0xff]  }
  0x18   :  { %2119 = vmatprep.subr.bf16.mxu0 %v2479_v8  ;;  %2171 = vmatprep.subr.bf16.mxu1 %v2479_v8 }
  0x1b   :  { %2120 = vmatpush3.bf16.msra.mxu0 %v2479_v8  ;;  %2172 = vmatpush3.bf16.msra.mxu1 %v2479_v8 }
  0x1c   :  { %2121 = vmatprep.subr.bf16.mxu0 %v2488_v9  ;;  %2173 = vmatprep.subr.bf16.mxu1 %v2488_v9 }
  0x1f   :  { %2122 = vmatpush3.bf16.msra.mxu0 %v2488_v9  ;;  %2174 = vmatpush3.bf16.msra.mxu1 %v2488_v9 }
  0x20   :  { %2211 = vmatprep.subr.bf16.mxu0 %v2315_v0  ;;  %2263 = vmatprep.subr.bf16.mxu1 %v2315_v0 }
  0x22   :  { %2124 = vmatmul.mubr.bf16.vlgmr.msra.gmra.mrb[0].mxu0 %v2325_v10  ;;  %2176 = vmatmul.mubr.bf16.vlgmr.msra.gmra.mrb[0].mxu1 %v2326_v11  ;;  %v2389_v10 = vld [vmem:[%s3152_s2 + $0x78] sm:$0xff]  }
  0x23   :  { %2212 = vmatpush3.bf16.msra.mxu0 %v2315_v0  ;;  %2264 = vmatpush3.bf16.msra.mxu1 %v2315_v0  ;;  %v2379_v0 = vld [vmem:[%s3152_s2 + $0x50] sm:$0xff]   ;;  %v2390_v11 = vld [vmem:[%s3153_s3 + $0x78] sm:$0xff]  }
  0x24   :  { %2127 = vmatprep.mubr.bf16.mxu0 %v2327_v12  ;;  %2179 = vmatprep.mubr.bf16.mxu1 %v2328_v13  ;;  %v2391_v12 = vld [vmem:[%s3152_s2 + $0x80] sm:$0xff]  }
  0x25   :  { %2213 = vmatprep.subr.bf16.mxu0 %v2316_v1  ;;  %2265 = vmatprep.subr.bf16.mxu1 %v2316_v1  ;;  %v2392_v13 = vld [vmem:[%s3153_s3 + $0x80] sm:$0xff]  }
  0x27   :  { %2214 = vmatpush3.bf16.msra.mxu0 %v2316_v1  ;;  %2266 = vmatpush3.bf16.msra.mxu1 %v2316_v1  ;;  %v2380_v1 = vld [vmem:[%s3153_s3 + $0x50] sm:$0xff]  }
  0x28   :  { %2215 = vmatprep.subr.bf16.mxu0 %v2439_v2  ;;  %2267 = vmatprep.subr.bf16.mxu1 %v2439_v2 }
  0x2a   :  { %2128 = vmatmul.mubr.bf16.gmra.mrb[4].mxu0 %v2329_v14  ;;  %2180 = vmatmul.mubr.bf16.gmra.mrb[4].mxu1 %v2330_v15  ;;  %v2393_v14 = vld [vmem:[%s3152_s2 + $0x88] sm:$0xff]  }
  0x2b   :  { %2131 = vmatprep.mubr.bf16.mxu0 %v2331_v16  ;;  %2183 = vmatprep.mubr.bf16.mxu1 %v2332_v17  ;;  %v2394_v15 = vld [vmem:[%s3153_s3 + $0x88] sm:$0xff]  }
  0x2c   :  { %2216 = vmatpush3.bf16.msra.mxu0 %v2439_v2  ;;  %2268 = vmatpush3.bf16.msra.mxu1 %v2439_v2  ;;  %v2381_v2 = vld [vmem:[%s3152_s2 + $0x58] sm:$0xff]  }
  0x2d   :  { %2217 = vmatprep.subr.bf16.mxu0 %v2444_v3  ;;  %2269 = vmatprep.subr.bf16.mxu1 %v2444_v3 }
  0x30   :  { %2218 = vmatpush3.bf16.msra.mxu0 %v2444_v3  ;;  %2270 = vmatpush3.bf16.msra.mxu1 %v2444_v3  ;;  %v2382_v3 = vld [vmem:[%s3153_s3 + $0x58] sm:$0xff]  }
  0x31   :  { %2219 = vmatprep.subr.bf16.mxu0 %v2461_v6  ;;  %2271 = vmatprep.subr.bf16.mxu1 %v2461_v6 }
  0x32   :  { %2132 = vmatmul.mubr.bf16.gmra.mrb[8].mxu0 %v2333_v18  ;;  %2184 = vmatmul.mubr.bf16.gmra.mrb[8].mxu1 %v2334_v19 }
  0x33   :  { %2135 = vmatprep.mubr.bf16.mxu0 %v2335_v20  ;;  %2187 = vmatprep.mubr.bf16.mxu1 %v2336_v21 }
  0x34   :  { %2220 = vmatpush3.bf16.msra.mxu0 %v2461_v6  ;;  %2272 = vmatpush3.bf16.msra.mxu1 %v2461_v6  ;;  %v2385_v6 = vld [vmem:[%s3152_s2 + $0x68] sm:$0xff]  }
  0x35   :  { %2221 = vmatprep.subr.bf16.mxu0 %v2470_v7  ;;  %2273 = vmatprep.subr.bf16.mxu1 %v2470_v7 }
  0x38   :  { %2222 = vmatpush3.bf16.msra.mxu0 %v2470_v7  ;;  %2274 = vmatpush3.bf16.msra.mxu1 %v2470_v7  ;;  %v2386_v7 = vld [vmem:[%s3153_s3 + $0x68] sm:$0xff]  }
  0x39   :  { %2223 = vmatprep.subr.bf16.mxu0 %v2479_v8  ;;  %2275 = vmatprep.subr.bf16.mxu1 %v2479_v8 }
  0x3a   :  { %2136 = vmatmul.mubr.bf16.gmra.mrb[12].mxu0 %v2337_v22  ;;  %2188 = vmatmul.mubr.bf16.gmra.mrb[12].mxu1 %v2338_v23 }
  0x3b   :  { %2139 = vmatprep.mubr.bf16.mxu0 %v2339_v24  ;;  %2191 = vmatprep.mubr.bf16.mxu1 %v2340_v25 }
  0x3c   :  { %2224 = vmatpush3.bf16.msra.mxu0 %v2479_v8  ;;  %2276 = vmatpush3.bf16.msra.mxu1 %v2479_v8  ;;  %v2387_v8 = vld [vmem:[%s3152_s2 + $0x70] sm:$0xff]  }
  0x3d   :  { %2225 = vmatprep.subr.bf16.mxu0 %v2488_v9  ;;  %2277 = vmatprep.subr.bf16.mxu1 %v2488_v9 }
  0x40   :  { %2226 = vmatpush3.bf16.msra.mxu0 %v2488_v9  ;;  %2278 = vmatpush3.bf16.msra.mxu1 %v2488_v9  ;;  %v2388_v9 = vld [vmem:[%s3153_s3 + $0x70] sm:$0xff]  }
  0x42   :  { %2140 = vmatmul.mubr.bf16.gmra.mrb[16].mxu0 %v2341_v26  ;;  %2192 = vmatmul.mubr.bf16.gmra.mrb[16].mxu1 %v2342_v27 }
  0x43   :  { %2143 = vmatprep.mubr.bf16.mxu0 %v2343_v28  ;;  %2195 = vmatprep.mubr.bf16.mxu1 %v2344_v29 }
  0x4a   :  { %2144 = vmatmul.mubr.bf16.gmra.mrb[20].mxu0 %v2345_v30  ;;  %2196 = vmatmul.mubr.bf16.gmra.mrb[20].mxu1 %v2346_v31 }
  0x4b   :  { %2147 = vmatprep.mubr.bf16.mxu0 %v2347_v32  ;;  %2199 = vmatprep.mubr.bf16.mxu1 %v2348_v33 }
  0x52   :  { %2148 = vmatmul.mubr.bf16.gmra.mrb[24].mxu0 %v2349_v34  ;;  %2200 = vmatmul.mubr.bf16.gmra.mrb[24].mxu1 %v2350_v35 }
  0x53   :  { %2151 = vmatprep.mubr.bf16.mxu0 %v2351_v36  ;;  %2203 = vmatprep.mubr.bf16.mxu1 %v2352_v37 }
  0x5a   :  { %2152 = vmatmul.mubr.bf16.gmra.mrb[28].mxu0 %v2353_v38  ;;  %2204 = vmatmul.mubr.bf16.gmra.mrb[28].mxu1 %v2354_v39 }
  0x5b   :  { %2155 = vmatprep.mubr.bf16.mxu0 %v2355_v40  ;;  %2207 = vmatprep.mubr.bf16.mxu1 %v2356_v41 }
  0x62   :  { %2156 = vmatmul.mubr.bf16.gmra.mrb[32].mxu0 %v2357_v42  ;;  %2208 = vmatmul.mubr.bf16.gmra.mrb[32].mxu1 %v2358_v43 }
  0x63   :  { %2227 = vmatprep.mubr.bf16.mxu0 %v2359_v44  ;;  %2279 = vmatprep.mubr.bf16.mxu1 %v2360_v45 }
  0x6a   :  { %2228 = vmatmul.mubr.bf16.vlgmr.msra.gmra.mrb[36].mxu0 %v2361_v46  ;;  %2280 = vmatmul.mubr.bf16.vlgmr.msra.gmra.mrb[36].mxu1 %v2362_v47 }
  0x6b   :  { %2231 = vmatprep.mubr.bf16.mxu0 %v2363_v48  ;;  %2283 = vmatprep.mubr.bf16.mxu1 %v2364_v49 }
  0x72   :  { %2232 = vmatmul.mubr.bf16.gmra.mrb[40].mxu0 %v2365_v50  ;;  %2284 = vmatmul.mubr.bf16.gmra.mrb[40].mxu1 %v2366_v51 }
  0x73   :  { %2235 = vmatprep.mubr.bf16.mxu0 %v2367_v52  ;;  %2287 = vmatprep.mubr.bf16.mxu1 %v2368_v53 }
  0x7a   :  { %2236 = vmatmul.mubr.bf16.gmra.mrb[44].mxu0 %v2369_v54  ;;  %2288 = vmatmul.mubr.bf16.gmra.mrb[44].mxu1 %v2370_v55 }
  0x7b   :  { %2239 = vmatprep.mubr.bf16.mxu0 %v2371_v56  ;;  %2291 = vmatprep.mubr.bf16.mxu1 %v2372_v57 }
  0x82   :  { %2240 = vmatmul.mubr.bf16.gmra.mrb[48].mxu0 %v2373_v58  ;;  %2292 = vmatmul.mubr.bf16.gmra.mrb[48].mxu1 %v2374_v59 }
  0x83   :  { %2243 = vmatprep.mubr.bf16.mxu0 %v2375_v60  ;;  %2295 = vmatprep.mubr.bf16.mxu1 %v2376_v61 }
  0x8a   :  { %2244 = vmatmul.mubr.bf16.gmra.mrb[52].mxu0 %v2377_v62  ;;  %2296 = vmatmul.mubr.bf16.gmra.mrb[52].mxu1 %v2378_v63 }
  0x8b   :  { %2247 = vmatprep.mubr.bf16.mxu0 %v2379_v0  ;;  %2299 = vmatprep.mubr.bf16.mxu1 %v2380_v1 }
  0x92   :  { %2248 = vmatmul.mubr.bf16.gmra.mrb[56].mxu0 %v2381_v2  ;;  %2300 = vmatmul.mubr.bf16.gmra.mrb[56].mxu1 %v2382_v3 }
  0x93   :  { %2251 = vmatprep.mubr.bf16.mxu0 %v2383_v4  ;;  %2303 = vmatprep.mubr.bf16.mxu1 %v2384_v5 }
  0x9a   :  { %2252 = vmatmul.mubr.bf16.gmra.mrb[60].mxu0 %v2385_v6  ;;  %2304 = vmatmul.mubr.bf16.gmra.mrb[60].mxu1 %v2386_v7 }
  0x9b   :  { %2255 = vmatprep.mubr.bf16.mxu0 %v2387_v8  ;;  %2307 = vmatprep.mubr.bf16.mxu1 %v2388_v9  ;;  %v2949_v8 = vld [vmem:[%s3154_s5] ss:$0 sm:$0xff] }
  0xa2   :  { %2256 = vmatmul.mubr.bf16.gmra.mrb[64].mxu0 %v2389_v10  ;;  %2308 = vmatmul.mubr.bf16.gmra.mrb[64].mxu1 %v2390_v11 }
  0xa3   :  { %2259 = vmatprep.mubr.bf16.mxu0 %v2391_v12  ;;  %2311 = vmatprep.mubr.bf16.mxu1 %v2392_v13 }
  0xaa   :  { %2260 = vmatmul.mubr.bf16.gmra.mrb[68].mxu0 %v2393_v14  ;;  %2312 = vmatmul.mubr.bf16.gmra.mrb[68].mxu1 %v2394_v15 }
  0xf5   :  { %v2730_v16 = vpop.f32.mrb[0].mxu0  ;;  %v2732_v17 = vpop.f32.mrb[0].mxu1 }
  0xf6   :  { %v2736_v19 = vpop.f32.mrb[1].mxu0  ;;  %v2738_v20 = vpop.f32.mrb[1].mxu1 }
  0xf7   :  { %v2742_v22 = vpop.f32.mrb[2].mxu0  ;;  %v2744_v23 = vpop.f32.mrb[2].mxu1 }
  0xf8   :  { %v2748_v25 = vpop.f32.mrb[3].mxu0  ;;  %v2750_v26 = vpop.f32.mrb[3].mxu1 }
  0xfd   :  { %v2754_v28 = vpop.f32.mrb[4].mxu0  ;;  %v2756_v29 = vpop.f32.mrb[4].mxu1 }
  0xfe   :  { %v2760_v31 = vpop.f32.mrb[5].mxu0  ;;  %v2762_v32 = vpop.f32.mrb[5].mxu1 }
  0xff   :  { %v2766_v34 = vpop.f32.mrb[6].mxu0  ;;  %v2768_v35 = vpop.f32.mrb[6].mxu1 }
 0x100   :  { %v2772_v37 = vpop.f32.mrb[7].mxu0  ;;  %v2774_v38 = vpop.f32.mrb[7].mxu1 }
 0x105   :  { %v2778_v40 = vpop.f32.mrb[8].mxu0  ;;  %v2780_v41 = vpop.f32.mrb[8].mxu1 }
 0x106   :  { %v2784_v43 = vpop.f32.mrb[9].mxu0  ;;  %v2786_v44 = vpop.f32.mrb[9].mxu1 }
 0x107   :  { %v2790_v46 = vpop.f32.mrb[10].mxu0  ;;  %v2792_v47 = vpop.f32.mrb[10].mxu1 }
 0x108   :  { %v2796_v49 = vpop.f32.mrb[11].mxu0  ;;  %v2798_v50 = vpop.f32.mrb[11].mxu1 }
 0x10d   :  { %v2802_v52 = vpop.f32.mrb[12].mxu0  ;;  %v2804_v53 = vpop.f32.mrb[12].mxu1 }
 0x10e   :  { %v2808_v55 = vpop.f32.mrb[13].mxu0  ;;  %v2810_v56 = vpop.f32.mrb[13].mxu1 }
 0x10f   :  { %v2814_v58 = vpop.f32.mrb[14].mxu0  ;;  %v2816_v59 = vpop.f32.mrb[14].mxu1 }
 0x110   :  { %v2820_v61 = vpop.f32.mrb[15].mxu0  ;;  %v2822_v62 = vpop.f32.mrb[15].mxu1 }
 0x115   :  { %v2826_v0 = vpop.f32.mrb[16].mxu0  ;;  %v2828_v1 = vpop.f32.mrb[16].mxu1 }
 0x116   :  { %v2832_v3 = vpop.f32.mrb[17].mxu0  ;;  %v2834_v4 = vpop.f32.mrb[17].mxu1 }
 0x117   :  { %v2838_v6 = vpop.f32.mrb[18].mxu0  ;;  %v2840_v7 = vpop.f32.mrb[18].mxu1 }
 0x118   :  { %v2844_v9 = vpop.f32.mrb[19].mxu0  ;;  %v2846_v10 = vpop.f32.mrb[19].mxu1 }
 0x11d   :  { %v2850_v12 = vpop.f32.mrb[20].mxu0  ;;  %v2852_v13 = vpop.f32.mrb[20].mxu1 }
 0x11e   :  { %v2856_v15 = vpop.f32.mrb[21].mxu0  ;;  %v2858_v5 = vpop.f32.mrb[21].mxu1 }
 0x11f   :  { %v2862_v2 = vpop.f32.mrb[22].mxu0  ;;  %v2864_v63 = vpop.f32.mrb[22].mxu1 }
 0x120   :  { %v2868_v60 = vpop.f32.mrb[23].mxu0  ;;  %v2870_v57 = vpop.f32.mrb[23].mxu1 }
 0x121   :  { %3181 = vst [vmem:[#allocation2_spill] sm:$0xff] %v2870_v57  ;;  %v3208_v57 = vmax.f32 %v2742_v22, %v2744_v23 }
 0x125   :  { %v2874_v54 = vpop.f32.mrb[24].mxu0  ;;  %v2876_v51 = vpop.f32.mrb[24].mxu1 }
 0x126   :  { %3182 = vst [vmem:[#allocation3_spill] sm:$0xff] %v2874_v54  ;;  %3183 = vst [vmem:[#allocation4_spill] sm:$0xff] %v2876_v51  ;;  %v2880_v48 = vpop.f32.mrb[25].mxu0  ;;  %v2882_v45 = vpop.f32.mrb[25].mxu1 }
 0x127   :  { %3184 = vst [vmem:[#allocation5_spill] sm:$0xff] %v2880_v48  ;;  %3185 = vst [vmem:[#allocation6_spill] sm:$0xff] %v2882_v45  ;;  %v2886_v42 = vpop.f32.mrb[26].mxu0  ;;  %v2888_v39 = vpop.f32.mrb[26].mxu1 }
 0x128   :  { %3186 = vst [vmem:[#allocation7_spill] sm:$0xff] %v2886_v42  ;;  %3187 = vst [vmem:[#allocation8_spill] sm:$0xff] %v2888_v39  ;;  %v2892_v36 = vpop.f32.mrb[27].mxu0  ;;  %v2894_v33 = vpop.f32.mrb[27].mxu1 }
 0x129   :  { %3188 = vst [vmem:[#allocation9_spill] sm:$0xff] %v2892_v36  ;;  %3189 = vst [vmem:[#allocation10_spill] sm:$0xff] %v2894_v33 }
 0x12d   :  { %v2898_v30 = vpop.f32.mrb[28].mxu0  ;;  %v2900_v27 = vpop.f32.mrb[28].mxu1 }
 0x12e   :  { %3190 = vst [vmem:[#allocation11_spill] sm:$0xff] %v2898_v30  ;;  %3191 = vst [vmem:[#allocation12_spill] sm:$0xff] %v2900_v27  ;;  %v2904_v24 = vpop.f32.mrb[29].mxu0  ;;  %v2906_v21 = vpop.f32.mrb[29].mxu1 }
 0x12f   :  { %3192 = vst [vmem:[#allocation13_spill] sm:$0xff] %v2904_v24  ;;  %3193 = vst [vmem:[#allocation14_spill] sm:$0xff] %v2906_v21  ;;  %v2910_v18 = vpop.f32.mrb[30].mxu0  ;;  %v2912_v39 = vpop.f32.mrb[30].mxu1 }
 0x130   :  { %3194 = vst [vmem:[#allocation15_spill] sm:$0xff] %v2910_v18  ;;  %3195 = vst [vmem:[#allocation16_spill] sm:$0xff] %v2912_v39  ;;  %v2916_v33 = vpop.f32.mrb[31].mxu0  ;;  %v2918_v36 = vpop.f32.mrb[31].mxu1 }
 0x131   :  { %3196 = vst [vmem:[#allocation17_spill] sm:$0xff] %v2916_v33  ;;  %3197 = vst [vmem:[#allocation18_spill] sm:$0xff] %v2918_v36 }
 0x135   :  { %v2922_v27 = vpop.f32.mrb[32].mxu0  ;;  %v2924_v30 = vpop.f32.mrb[32].mxu1 }
 0x136   :  { %3198 = vst [vmem:[#allocation19_spill] sm:$0xff] %v2922_v27  ;;  %3199 = vst [vmem:[#allocation20_spill] sm:$0xff] %v2924_v30  ;;  %v2928_v21 = vpop.f32.mrb[33].mxu0  ;;  %v2930_v24 = vpop.f32.mrb[33].mxu1 }
 0x137   :  { %3200 = vst [vmem:[#allocation21_spill] sm:$0xff] %v2928_v21  ;;  %3201 = vst [vmem:[#allocation22_spill] sm:$0xff] %v2930_v24  ;;  %v2934_v39 = vpop.f32.mrb[34].mxu0  ;;  %v2936_v18 = vpop.f32.mrb[34].mxu1 }
 0x138   :  { %3202 = vst [vmem:[#allocation23_spill] sm:$0xff] %v2934_v39  ;;  %3203 = vst [vmem:[#allocation24_spill] sm:$0xff] %v2936_v18  ;;  %v2940_v36 = vpop.f32.mrb[35].mxu0  ;;  %v2942_v33 = vpop.f32.mrb[35].mxu1  ;;  %v3206_v18 = vmax.f32 %v2730_v16, %v2732_v17  ;;  %v3209_v16 = vmax.f32 %v2748_v25, %v2750_v26  ;;  %v3210_v25 = vmax.f32 %v2754_v28, %v2756_v29 }
 0x139   :  { %3204 = vst [vmem:[#allocation25_spill] sm:$0xff] %v2940_v36  ;;  %3205 = vst [vmem:[#allocation26_spill] sm:$0xff] %v2942_v33 }
 0x13d   :  { %v2229_v30 = vpop.f32.mrb[36].mxu0  ;;  %v2281_v27 = vpop.f32.mrb[36].mxu1 }
 0x13e   :  { %v1410_v42 = vmax.f32 %v2229_v30, %v2281_v27  ;;  %v908_v45 = vpop.f32.mrb[37].mxu0  ;;  %v1229_v48 = vpop.f32.mrb[37].mxu1  ;;  %v3207_v27 = vmax.f32 %v2736_v19, %v2738_v20 }
 0x13f   :  { %v1408_v24 = vmax.f32 %v908_v45, %v1229_v48  ;;  %v2230_v21 = vpop.f32.mrb[38].mxu0  ;;  %v2282_v11 = vpop.f32.mrb[38].mxu1 }
 0x140   :  { %v1446_v39 = vmax.f32 %v3206_v18, %v1410_v42  ;;  %v1411_v51 = vmax.f32 %v2230_v21, %v2282_v11  ;;  %v911_v54 = vpop.f32.mrb[39].mxu0  ;;  %v1232_v14 = vpop.f32.mrb[39].mxu1 }
 0x141   :  { %v1444_v30 = vmax.f32 %v3207_v27, %v1408_v24  ;;  %v1409_v33 = vmax.f32 %v911_v54, %v1232_v14 }
 0x142   :  { %v1489_v36 = vadd.f32 %v2949_v8, %v1446_v39  ;;  %v1447_v45 = vmax.f32 %v3208_v57, %v1411_v51 }
 0x143   :  { %v1487_v48 = vadd.f32 %v2949_v8, %v1444_v30  ;;  %v1445_v17 = vmax.f32 %v3209_v16, %v1409_v33 }
 0x144   :  { %v1490_v18 = vadd.f32 %v2949_v8, %v1447_v45  ;;  %v1525_v20 = vmax.f32 %v1489_v36, 0.0  ;;  %v3211_v36 = vmax.f32 %v2760_v31, %v2762_v32  ;;  %v3213_v31 = vmax.f32 %v2772_v37, %v2774_v38 }
 0x145   :  { %v1488_v21 = vadd.f32 %v2949_v8, %v1445_v17  ;;  %v2233_v42 = vpop.f32.mrb[40].mxu0  ;;  %v2285_v19 = vpop.f32.mrb[40].mxu1  ;;  %v1523_v14 = vmax.f32 %v1487_v48, 0.0  ;;  %v3214_v37 = vmax.f32 %v2778_v40, %v2780_v41 }
 0x146   :  { %v1526_v24 = vmax.f32 %v1490_v18, 0.0  ;;  %v1414_v54 = vmax.f32 %v2233_v42, %v2285_v19  ;;  %v924_v39 = vpop.f32.mrb[41].mxu0  ;;  %v1245_v11 = vpop.f32.mrb[41].mxu1 }
 0x147   :  { %v1524_v22 = vmax.f32 %v1488_v21, 0.0  ;;  %v1412_v23 = vmax.f32 %v924_v39, %v1245_v11  ;;  %v2234_v51 = vpop.f32.mrb[42].mxu0  ;;  %v2286_v57 = vpop.f32.mrb[42].mxu1  ;;  %v3212_v21 = vmax.f32 %v2766_v34, %v2768_v35 }
 0x148   :  { %v1904_v27 = vpack.c.bf16 %v1526_v24, %v1525_v20  ;;  %v1450_v26 = vmax.f32 %v3210_v25, %v1414_v54  ;;  %v1415_v33 = vmax.f32 %v2234_v51, %v2286_v57  ;;  %v927_v30 = vpop.f32.mrb[43].mxu0  ;;  %v1248_v45 = vpop.f32.mrb[43].mxu1 }
 0x149   :  { %v1899_v16 = vpack.c.bf16 %v1524_v22, %v1523_v14  ;;  %v1448_v17 = vmax.f32 %v3211_v36, %v1412_v23  ;;  %v1413_v18 = vmax.f32 %v927_v30, %v1248_v45  ;;  %v3215_v45 = vmax.f32 %v2784_v43, %v2786_v44 }
 0x14a   :  { %1986 = vst [vmem:[%s3155_s6 + $0x8] sm:$0xff] %v1904_v27   ;;  %v1493_v48 = vadd.f32 %v2949_v8, %v1450_v26  ;;  %v1451_v28 = vmax.f32 %v3212_v21, %v1415_v33  ;;  %v3217_v43 = vmax.f32 %v2796_v49, %v2798_v50  ;;  %v3218_v49 = vmax.f32 %v2802_v52, %v2804_v53 }
 0x14b   :  { %1900 = vst [vmem:[%s3155_s6] sm:$0xff] %v1899_v16   ;;  %v1491_v29 = vadd.f32 %v2949_v8, %v1448_v17  ;;  %v1449_v32 = vmax.f32 %v3213_v31, %v1413_v18  ;;  %v3216_v18 = vmax.f32 %v2790_v46, %v2792_v47 }
 0x14c   :  { %v1494_v42 = vadd.f32 %v2949_v8, %v1451_v28  ;;  %v1529_v54 = vmax.f32 %v1493_v48, 0.0 }
 0x14d   :  { %v1492_v19 = vadd.f32 %v2949_v8, %v1449_v32  ;;  %v2237_v20 = vpop.f32.mrb[44].mxu0  ;;  %v2289_v24 = vpop.f32.mrb[44].mxu1  ;;  %v1527_v14 = vmax.f32 %v1491_v29, 0.0 }
 0x14e   :  { %v1530_v39 = vmax.f32 %v1494_v42, 0.0  ;;  %v1418_v34 = vmax.f32 %v2237_v20, %v2289_v24  ;;  %v940_v35 = vpop.f32.mrb[45].mxu0  ;;  %v1261_v11 = vpop.f32.mrb[45].mxu1 }
 0x14f   :  { %v1528_v22 = vmax.f32 %v1492_v19, 0.0  ;;  %v1416_v23 = vmax.f32 %v940_v35, %v1261_v11  ;;  %v2238_v51 = vpop.f32.mrb[46].mxu0  ;;  %v2290_v57 = vpop.f32.mrb[46].mxu1 }
 0x150   :  { %v1914_v27 = vpack.c.bf16 %v1530_v39, %v1529_v54  ;;  %v1454_v38 = vmax.f32 %v3214_v37, %v1418_v34  ;;  %v1419_v25 = vmax.f32 %v2238_v51, %v2290_v57  ;;  %v943_v26 = vpop.f32.mrb[47].mxu0  ;;  %v1264_v33 = vpop.f32.mrb[47].mxu1  ;;  %v3220_v37 = vmax.f32 %v2814_v58, %v2816_v59 }
 0x151   :  { %v1909_v30 = vpack.c.bf16 %v1528_v22, %v1527_v14  ;;  %v1452_v16 = vmax.f32 %v3215_v45, %v1416_v23  ;;  %v1417_v36 = vmax.f32 %v943_v26, %v1264_v33  ;;  %v3219_v23 = vmax.f32 %v2808_v55, %v2810_v56 }
 0x152   :  { %1988 = vst [vmem:[%s3155_s6 + $0x18] sm:$0xff] %v1914_v27   ;;  %v1497_v17 = vadd.f32 %v2949_v8, %v1454_v38  ;;  %v1455_v40 = vmax.f32 %v3216_v18, %v1419_v25  ;;  %v3221_v55 = vmax.f32 %v2820_v61, %v2822_v62  ;;  %v3222_v61 = vmax.f32 %v2826_v0, %v2828_v1 }
 0x153   :  { %1987 = vst [vmem:[%s3155_s6 + $0x10] sm:$0xff] %v1909_v30   ;;  %v1495_v41 = vadd.f32 %v2949_v8, %v1452_v16  ;;  %v1453_v44 = vmax.f32 %v3217_v43, %v1417_v36 }
 0x154   :  { %v1498_v48 = vadd.f32 %v2949_v8, %v1455_v40  ;;  %v1533_v31 = vmax.f32 %v1497_v17, 0.0 }
 0x155   :  { %v1496_v21 = vadd.f32 %v2949_v8, %v1453_v44  ;;  %v2241_v28 = vpop.f32.mrb[48].mxu0  ;;  %v2293_v29 = vpop.f32.mrb[48].mxu1  ;;  %v1531_v19 = vmax.f32 %v1495_v41, 0.0 }
 0x156   :  { %v1534_v32 = vmax.f32 %v1498_v48, 0.0  ;;  %v1422_v46 = vmax.f32 %v2241_v28, %v2293_v29  ;;  %v956_v47 = vpop.f32.mrb[49].mxu0  ;;  %v1277_v42 = vpop.f32.mrb[49].mxu1  ;;  %v3223_v29 = vmax.f32 %v2832_v3, %v2834_v4  ;;  %v3225_v3 = vmax.f32 %v2844_v9, %v2846_v10 }
 0x157   :  { %v1532_v20 = vmax.f32 %v1496_v21, 0.0  ;;  %v1420_v24 = vmax.f32 %v956_v47, %v1277_v42  ;;  %v2242_v54 = vpop.f32.mrb[50].mxu0  ;;  %v2294_v39 = vpop.f32.mrb[50].mxu1  ;;  %v3224_v47 = vmax.f32 %v2838_v6, %v2840_v7  ;;  %v3226_v9 = vmax.f32 %v2850_v12, %v2852_v13 }
 0x158   :  { %v1924_v34 = vpack.c.bf16 %v1534_v32, %v1533_v31  ;;  %v1458_v50 = vmax.f32 %v3218_v49, %v1422_v46  ;;  %v1423_v35 = vmax.f32 %v2242_v54, %v2294_v39  ;;  %v959_v11 = vpop.f32.mrb[51].mxu0  ;;  %v1280_v14 = vpop.f32.mrb[51].mxu1 }
 0x159   :  { %v1919_v22 = vpack.c.bf16 %v1532_v20, %v1531_v19  ;;  %v1456_v51 = vmax.f32 %v3219_v23, %v1420_v24  ;;  %v1421_v57 = vmax.f32 %v959_v11, %v1280_v14 }
 0x15a   :  { %1990 = vst [vmem:[%s3155_s6 + $0x28] sm:$0xff] %v1924_v34   ;;  %v1501_v27 = vadd.f32 %v2949_v8, %v1458_v50  ;;  %v1459_v52 = vmax.f32 %v3220_v37, %v1423_v35  ;;  %v3227_v37 = vmax.f32 %v2856_v15, %v2858_v5  ;;  %v3229_v5 = vld [vmem:[#allocation2_spill] sm:$0xff] }
 0x15b   :  { %1989 = vst [vmem:[%s3155_s6 + $0x20] sm:$0xff] %v1919_v22   ;;  %v1499_v53 = vadd.f32 %v2949_v8, %v1456_v51  ;;  %v1457_v56 = vmax.f32 %v3221_v55, %v1421_v57  ;;  %v3230_v15 = vmax.f32 %v2868_v60, %v3229_v5  ;;  %v3232_v60 = vld [vmem:[#allocation4_spill] sm:$0xff] }
 0x15c   :  { %v1502_v38 = vadd.f32 %v2949_v8, %v1459_v52  ;;  %v1537_v30 = vmax.f32 %v1501_v27, 0.0 }
 0x15d   :  { %v1500_v25 = vadd.f32 %v2949_v8, %v1457_v56  ;;  %v2245_v26 = vpop.f32.mrb[52].mxu0  ;;  %v2297_v33 = vpop.f32.mrb[52].mxu1  ;;  %v1535_v36 = vmax.f32 %v1499_v53, 0.0  ;;  %v3228_v56 = vmax.f32 %v2862_v2, %v2864_v63 }
 0x15e   :  { %v1538_v45 = vmax.f32 %v1502_v38, 0.0  ;;  %v1426_v58 = vmax.f32 %v2245_v26, %v2297_v33  ;;  %v972_v59 = vpop.f32.mrb[53].mxu0  ;;  %v1293_v16 = vpop.f32.mrb[53].mxu1 }
 0x15f   :  { %v1536_v17 = vmax.f32 %v1500_v25, 0.0  ;;  %v1424_v18 = vmax.f32 %v972_v59, %v1293_v16  ;;  %v2246_v40 = vpop.f32.mrb[54].mxu0  ;;  %v2298_v41 = vpop.f32.mrb[54].mxu1 }
 0x160   :  { %v1934_v43 = vpack.c.bf16 %v1538_v45, %v1537_v30  ;;  %v1462_v62 = vmax.f32 %v3222_v61, %v1426_v58  ;;  %v1427_v44 = vmax.f32 %v2246_v40, %v2298_v41  ;;  %v975_v48 = vpop.f32.mrb[55].mxu0  ;;  %v1296_v21 = vpop.f32.mrb[55].mxu1 }
 0x161   :  { %v1929_v28 = vpack.c.bf16 %v1536_v17, %v1535_v36  ;;  %v1460_v31 = vmax.f32 %v3223_v29, %v1424_v18  ;;  %v1425_v32 = vmax.f32 %v975_v48, %v1296_v21  ;;  %v3234_v29 = vld [vmem:[#allocation5_spill] sm:$0xff] }
 0x162   :  { %1992 = vst [vmem:[%s3155_s6 + $0x38] sm:$0xff] %v1934_v43   ;;  %v1505_v46 = vadd.f32 %v2949_v8, %v1462_v62  ;;  %v1463_v0 = vmax.f32 %v3224_v47, %v1427_v44  ;;  %v3231_v43 = vld [vmem:[#allocation3_spill] sm:$0xff] }
 0x163   :  { %1991 = vst [vmem:[%s3155_s6 + $0x30] sm:$0xff] %v1929_v28   ;;  %v1503_v1 = vadd.f32 %v2949_v8, %v1460_v31  ;;  %v1461_v4 = vmax.f32 %v3225_v3, %v1425_v32  ;;  %v3233_v61 = vmax.f32 %v3231_v43, %v3232_v60  ;;  %v3235_v31 = vld [vmem:[#allocation6_spill] sm:$0xff]  ;;  %v3238_v3 = vld [vmem:[#allocation8_spill] sm:$0xff] }
 0x164   :  { %v1506_v42 = vadd.f32 %v2949_v8, %v1463_v0  ;;  %v1541_v54 = vmax.f32 %v1505_v46, 0.0  ;;  %v3236_v32 = vmax.f32 %v3234_v29, %v3235_v31 }
 0x165   :  { %v1504_v19 = vadd.f32 %v2949_v8, %v1461_v4  ;;  %v2249_v20 = vpop.f32.mrb[56].mxu0  ;;  %v2301_v24 = vpop.f32.mrb[56].mxu1  ;;  %v1539_v49 = vmax.f32 %v1503_v1, 0.0  ;;  %v3237_v1 = vld [vmem:[#allocation7_spill] sm:$0xff] }
 0x166   :  { %v1542_v39 = vmax.f32 %v1506_v42, 0.0  ;;  %v1430_v6 = vmax.f32 %v2249_v20, %v2301_v24  ;;  %v988_v7 = vpop.f32.mrb[57].mxu0  ;;  %v1309_v34 = vpop.f32.mrb[57].mxu1  ;;  %v3239_v4 = vmax.f32 %v3237_v1, %v3238_v3  ;;  %v3240_v20 = vld [vmem:[#allocation9_spill] sm:$0xff]  ;;  %v3241_v24 = vld [vmem:[#allocation10_spill] sm:$0xff]  ;;  %v3256_v1 = vld [vmem:[#allocation20_spill] sm:$0xff] }
 0x167   :  { %v1540_v50 = vmax.f32 %v1504_v19, 0.0  ;;  %v1428_v35 = vmax.f32 %v988_v7, %v1309_v34  ;;  %v2250_v11 = vpop.f32.mrb[58].mxu0  ;;  %v2302_v14 = vpop.f32.mrb[58].mxu1 }
 0x168   :  { %v1944_v22 = vpack.c.bf16 %v1542_v39, %v1541_v54  ;;  %v1466_v10 = vmax.f32 %v3226_v9, %v1430_v6  ;;  %v1431_v23 = vmax.f32 %v2250_v11, %v2302_v14  ;;  %v991_v51 = vpop.f32.mrb[59].mxu0  ;;  %v1312_v57 = vpop.f32.mrb[59].mxu1  ;;  %v3242_v54 = vmax.f32 %v3240_v20, %v3241_v24 }
 0x169   :  { %v1939_v27 = vpack.c.bf16 %v1540_v50, %v1539_v49  ;;  %v1464_v52 = vmax.f32 %v3227_v37, %v1428_v35  ;;  %v1429_v53 = vmax.f32 %v991_v51, %v1312_v57  ;;  %v3243_v37 = vld [vmem:[#allocation11_spill] sm:$0xff] }
 0x16a   :  { %1994 = vst [vmem:[%s3155_s6 + $0x48] sm:$0xff] %v1944_v22   ;;  %v1509_v55 = vadd.f32 %v2949_v8, %v1466_v10  ;;  %v1467_v12 = vmax.f32 %v3228_v56, %v1431_v23 }
 0x16b   :  { %1993 = vst [vmem:[%s3155_s6 + $0x40] sm:$0xff] %v1939_v27   ;;  %v1507_v13 = vadd.f32 %v2949_v8, %v1464_v52  ;;  %v1465_v38 = vmax.f32 %v3230_v15, %v1429_v53  ;;  %v3244_v52 = vld [vmem:[#allocation12_spill] sm:$0xff]  ;;  %v3246_v15 = vld [vmem:[#allocation13_spill] sm:$0xff] }
 0x16c   :  { %v1510_v25 = vadd.f32 %v2949_v8, %v1467_v12  ;;  %v1545_v45 = vmax.f32 %v1509_v55, 0.0  ;;  %v3245_v53 = vmax.f32 %v3243_v37, %v3244_v52 }
 0x16d   :  { %v1508_v26 = vadd.f32 %v2949_v8, %v1465_v38  ;;  %v2253_v33 = vpop.f32.mrb[60].mxu0  ;;  %v2305_v30 = vpop.f32.mrb[60].mxu1  ;;  %v1543_v16 = vmax.f32 %v1507_v13, 0.0  ;;  %v3247_v38 = vld [vmem:[#allocation14_spill] sm:$0xff] }
 0x16e   :  { %v1546_v58 = vmax.f32 %v1510_v25, 0.0  ;;  %v1434_v63 = vmax.f32 %v2253_v33, %v2305_v30  ;;  %v1004_v2 = vpop.f32.mrb[61].mxu0  ;;  %v1325_v59 = vpop.f32.mrb[61].mxu1  ;;  %v3248_v25 = vmax.f32 %v3246_v15, %v3247_v38 }
 0x16f   :  { %v1544_v36 = vmax.f32 %v1508_v26, 0.0  ;;  %v1432_v17 = vmax.f32 %v1004_v2, %v1325_v59  ;;  %v2254_v18 = vpop.f32.mrb[62].mxu0  ;;  %v2306_v40 = vpop.f32.mrb[62].mxu1 }
 0x170   :  { %v1954_v41 = vpack.c.bf16 %v1546_v58, %v1545_v45  ;;  %v1470_v62 = vmax.f32 %v3233_v61, %v1434_v63  ;;  %v1435_v44 = vmax.f32 %v2254_v18, %v2306_v40  ;;  %v1007_v48 = vpop.f32.mrb[63].mxu0  ;;  %v1328_v21 = vpop.f32.mrb[63].mxu1  ;;  %v3249_v45 = vld [vmem:[#allocation15_spill] sm:$0xff]  ;;  %v3250_v58 = vld [vmem:[#allocation16_spill] sm:$0xff] }
 0x171   :  { %v1949_v28 = vpack.c.bf16 %v1544_v36, %v1543_v16  ;;  %v1468_v46 = vmax.f32 %v3236_v32, %v1432_v17  ;;  %v1433_v47 = vmax.f32 %v1007_v48, %v1328_v21  ;;  %v3251_v63 = vmax.f32 %v3249_v45, %v3250_v58  ;;  %v3252_v16 = vld [vmem:[#allocation17_spill] sm:$0xff]  ;;  %v3253_v36 = vld [vmem:[#allocation18_spill] sm:$0xff] }
 0x172   :  { %1996 = vst [vmem:[%s3155_s6 + $0x58] sm:$0xff] %v1954_v41   ;;  %v1513_v0 = vadd.f32 %v2949_v8, %v1470_v62  ;;  %v1471_v42 = vmax.f32 %v3239_v4, %v1435_v44  ;;  %v3254_v17 = vmax.f32 %v3252_v16, %v3253_v36 }
 0x173   :  { %1995 = vst [vmem:[%s3155_s6 + $0x50] sm:$0xff] %v1949_v28   ;;  %v1511_v19 = vadd.f32 %v2949_v8, %v1468_v46  ;;  %v1469_v39 = vmax.f32 %v3242_v54, %v1433_v47  ;;  %v3258_v54 = vld [vmem:[#allocation21_spill] sm:$0xff] }
 0x174   :  { %v1514_v6 = vadd.f32 %v2949_v8, %v1471_v42  ;;  %v1549_v50 = vmax.f32 %v1513_v0, 0.0  ;;  %v3255_v0 = vld [vmem:[#allocation19_spill] sm:$0xff] }
 0x175   :  { %v1512_v7 = vadd.f32 %v2949_v8, %v1469_v39  ;;  %v2257_v34 = vpop.f32.mrb[64].mxu0  ;;  %v2309_v49 = vpop.f32.mrb[64].mxu1  ;;  %v1547_v9 = vmax.f32 %v1511_v19, 0.0  ;;  %v3257_v3 = vmax.f32 %v3255_v0, %v3256_v1  ;;  %v3259_v39 = vld [vmem:[#allocation22_spill] sm:$0xff] }
 0x176   :  { %v1550_v35 = vmax.f32 %v1514_v6, 0.0  ;;  %v1438_v11 = vmax.f32 %v2257_v34, %v2309_v49  ;;  %v1020_v14 = vpop.f32.mrb[65].mxu0  ;;  %v1341_v22 = vpop.f32.mrb[65].mxu1  ;;  %v3260_v6 = vmax.f32 %v3258_v54, %v3259_v39 }
 0x177   :  { %v1548_v10 = vmax.f32 %v1512_v7, 0.0  ;;  %v1436_v23 = vmax.f32 %v1020_v14, %v1341_v22  ;;  %v2258_v51 = vpop.f32.mrb[66].mxu0  ;;  %v2310_v57 = vpop.f32.mrb[66].mxu1 }
 0x178   :  { %v1964_v27 = vpack.c.bf16 %v1550_v35, %v1549_v50  ;;  %v1474_v55 = vmax.f32 %v3245_v53, %v1438_v11  ;;  %v1439_v56 = vmax.f32 %v2258_v51, %v2310_v57  ;;  %v1023_v12 = vpop.f32.mrb[67].mxu0  ;;  %v1344_v13 = vpop.f32.mrb[67].mxu1  ;;  %v3261_v50 = vld [vmem:[#allocation23_spill] sm:$0xff]  ;;  %v3262_v35 = vld [vmem:[#allocation24_spill] sm:$0xff] }
 0x179   :  { %v1959_v5 = vpack.c.bf16 %v1548_v10, %v1547_v9  ;;  %v1472_v26 = vmax.f32 %v3248_v25, %v1436_v23  ;;  %v1437_v33 = vmax.f32 %v1023_v12, %v1344_v13  ;;  %v3263_v11 = vmax.f32 %v3261_v50, %v3262_v35  ;;  %v3264_v9 = vld [vmem:[#allocation25_spill] sm:$0xff]  ;;  %v3265_v10 = vld [vmem:[#allocation26_spill] sm:$0xff] }
 0x17a   :  { %1998 = vst [vmem:[%s3155_s6 + $0x68] sm:$0xff] %v1964_v27   ;;  %v1517_v30 = vadd.f32 %v2949_v8, %v1474_v55  ;;  %v1475_v2 = vmax.f32 %v3251_v63, %v1439_v56  ;;  %v3266_v23 = vmax.f32 %v3264_v9, %v3265_v10 }
 0x17b   :  { %1997 = vst [vmem:[%s3155_s6 + $0x60] sm:$0xff] %v1959_v5   ;;  %v1515_v59 = vadd.f32 %v2949_v8, %v1472_v26  ;;  %v1473_v18 = vmax.f32 %v3254_v17, %v1437_v33 }
 0x17c   :  { %v1518_v40 = vadd.f32 %v2949_v8, %v1475_v2  ;;  %v1553_v61 = vmax.f32 %v1517_v30, 0.0 }
 0x17d   :  { %v1516_v41 = vadd.f32 %v2949_v8, %v1473_v18  ;;  %v2261_v43 = vpop.f32.mrb[68].mxu0  ;;  %v2313_v60 = vpop.f32.mrb[68].mxu1  ;;  %v1551_v28 = vmax.f32 %v1515_v59, 0.0 }
 0x17e   :  { %v1554_v62 = vmax.f32 %v1518_v40, 0.0  ;;  %v1442_v44 = vmax.f32 %v2261_v43, %v2313_v60  ;;  %v1036_v48 = vpop.f32.mrb[69].mxu0  ;;  %v1357_v21 = vpop.f32.mrb[69].mxu1 }
 0x17f   :  { %v1552_v29 = vmax.f32 %v1516_v41, 0.0  ;;  %v1440_v31 = vmax.f32 %v1036_v48, %v1357_v21  ;;  %v2262_v32 = vpop.f32.mrb[70].mxu0  ;;  %v2314_v46 = vpop.f32.mrb[70].mxu1 }
 0x180   :  { %v1974_v47 = vpack.c.bf16 %v1554_v62, %v1553_v61  ;;  %v1478_v4 = vmax.f32 %v3257_v3, %v1442_v44  ;;  %v1443_v42 = vmax.f32 %v2262_v32, %v2314_v46  ;;  %v1039_v19 = vpop.f32.mrb[71].mxu0  ;;  %v1360_v20 = vpop.f32.mrb[71].mxu1 }
 0x181   :  { %v1969_v24 = vpack.c.bf16 %v1552_v29, %v1551_v28  ;;  %v1476_v7 = vmax.f32 %v3260_v6, %v1440_v31  ;;  %v1441_v34 = vmax.f32 %v1039_v19, %v1360_v20 }
 0x182   :  { %2000 = vst [vmem:[%s3155_s6 + $0x78] sm:$0xff] %v1974_v47   ;;  %v1521_v49 = vadd.f32 %v2949_v8, %v1478_v4  ;;  %v1479_v14 = vmax.f32 %v3263_v11, %v1443_v42 }
 0x183   :  { %1999 = vst [vmem:[%s3155_s6 + $0x70] sm:$0xff] %v1969_v24   ;;  %v1519_v22 = vadd.f32 %v2949_v8, %v1476_v7  ;;  %v1477_v51 = vmax.f32 %v3266_v23, %v1441_v34 }
 0x184   :  { %v1522_v57 = vadd.f32 %v2949_v8, %v1479_v14  ;;  %v1557_v37 = vmax.f32 %v1521_v49, 0.0 }
 0x185   :  { %v1520_v27 = vadd.f32 %v2949_v8, %v1477_v51  ;;  %v1555_v53 = vmax.f32 %v1519_v22, 0.0 }
 0x186   :  { %v1558_v52 = vmax.f32 %v1522_v57, 0.0 }
 0x187   :  { %v1556_v55 = vmax.f32 %v1520_v27, 0.0 }
 0x188   :  { %v1984_v56 = vpack.c.bf16 %v1558_v52, %v1557_v37 }
 0x189   :  { %v1979_v12 = vpack.c.bf16 %v1556_v55, %v1555_v53 }
 0x18a   :  { %2002 = vst [vmem:[%s3155_s6 + $0x88] sm:$0xff] %v1984_v56  }
 0x18b   :  { %2001 = vst [vmem:[%s3155_s6 + $0x80] sm:$0xff] %v1979_v12  }

// kernel: _lambda_.5
= control target key start
LH: loop header
LB: loop body
LE: loop exit
PB: predicated region body
PF: predicated region fallthrough
CT: control target
= control target key end

     0   :  { %s2850_s4 = inlined_call_operand.vmem [shape: bf16[512,128], index: 4, kind: input, shape index: {}]   ;;  %s2851_s0 = inlined_call_operand.vmem [shape: bf16[80,512], index: 0, kind: input, shape index: {}]   ;;  %s2852_s1 = inlined_call_operand.vmem [shape: bf16[80,512], index: 1, kind: input, shape index: {}]   ;;  %s2853_s2 = inlined_call_operand.vmem [shape: bf16[80,512], index: 2, kind: input, shape index: {}]   ;;  %s2854_s3 = inlined_call_operand.vmem [shape: bf16[80,512], index: 3, kind: input, shape index: {}]   ;;  %s2855_s5 = inlined_call_operand.vmem [shape: f32[1,128], index: 5, kind: input, shape index: {}]   ;;  %s2856_s6 = inlined_call_operand.vmem [shape: bf16[80,128], index: 6, kind: output, shape index: {}]  }
   0x1   :  { %v2175_v0 = vld [vmem:[%s2850_s4 + $0x40] sm:$0xff]   ;;  %v2198_v4 = vld [vmem:[%s2850_s4 + $0x48] sm:$0xff]   ;;  %v2222_v8 = vld [vmem:[%s2850_s4 + $0x50] sm:$0xff]  }
   0x2   :  { %v2180_v1 = vld [vmem:[%s2850_s4 + $0xc0] sm:$0xff]   ;;  %1617 = vmatprep.subr.bf16.mxu0 %v2175_v0  ;;  %v2204_v5 = vld [vmem:[%s2850_s4 + $0xc8] sm:$0xff]   ;;  %v2228_v9 = vld [vmem:[%s2850_s4 + $0xd0] sm:$0xff]  }
   0x3   :  { %v2186_v2 = vld [vmem:[%s2850_s4] sm:$0xff]   ;;  %1663 = vmatprep.subr.bf16.mxu1 %v2180_v1  ;;  %v2210_v6 = vld [vmem:[%s2850_s4 + $0x8] sm:$0xff]   ;;  %v2234_v10 = vld [vmem:[%s2850_s4 + $0x10] sm:$0xff]  }
   0x4   :  { %v2192_v3 = vld [vmem:[%s2850_s4 + $0x80] sm:$0xff]   ;;  %1618 = vmatpush3.bf16.msra.mxu0 %v2186_v2  ;;  %v2216_v7 = vld [vmem:[%s2850_s4 + $0x88] sm:$0xff]   ;;  %v2240_v11 = vld [vmem:[%s2850_s4 + $0x90] sm:$0xff]  }
   0x5   :  { %1664 = vmatpush3.bf16.msra.mxu1 %v2192_v3  ;;  %1619 = vmatprep.subr.bf16.mxu0 %v2198_v4  ;;  %v2246_v12 = vld [vmem:[%s2850_s4 + $0x58] sm:$0xff]   ;;  %v2270_v16 = vld [vmem:[%s2850_s4 + $0x60] sm:$0xff]   ;;  %v2294_v20 = vld [vmem:[%s2850_s4 + $0x68] sm:$0xff]  }
   0x6   :  { %1665 = vmatprep.subr.bf16.mxu1 %v2204_v5  ;;  %v2252_v13 = vld [vmem:[%s2850_s4 + $0xd8] sm:$0xff]   ;;  %v2276_v17 = vld [vmem:[%s2850_s4 + $0xe0] sm:$0xff]   ;;  %v2300_v21 = vld [vmem:[%s2850_s4 + $0xe8] sm:$0xff]  }
   0x7   :  { %v2258_v14 = vld [vmem:[%s2850_s4 + $0x18] sm:$0xff]   ;;  %v2282_v18 = vld [vmem:[%s2850_s4 + $0x20] sm:$0xff]   ;;  %v2306_v22 = vld [vmem:[%s2850_s4 + $0x28] sm:$0xff]  }
   0x8   :  { %1620 = vmatpush3.bf16.msra.mxu0 %v2210_v6  ;;  %v2264_v15 = vld [vmem:[%s2850_s4 + $0x98] sm:$0xff]   ;;  %v2288_v19 = vld [vmem:[%s2850_s4 + $0xa0] sm:$0xff]   ;;  %v2312_v23 = vld [vmem:[%s2850_s4 + $0xa8] sm:$0xff]  }
   0x9   :  { %1666 = vmatpush3.bf16.msra.mxu1 %v2216_v7  ;;  %1621 = vmatprep.subr.bf16.mxu0 %v2222_v8  ;;  %v2318_v24 = vld [vmem:[%s2850_s4 + $0x70] sm:$0xff]   ;;  %v2342_v28 = vld [vmem:[%s2850_s4 + $0x78] sm:$0xff]  }
   0xa   :  { %1667 = vmatprep.subr.bf16.mxu1 %v2228_v9  ;;  %v2324_v25 = vld [vmem:[%s2850_s4 + $0xf0] sm:$0xff]   ;;  %v2348_v29 = vld [vmem:[%s2850_s4 + $0xf8] sm:$0xff]  }
   0xb   :  { %v2330_v26 = vld [vmem:[%s2850_s4 + $0x30] sm:$0xff]   ;;  %v2354_v30 = vld [vmem:[%s2850_s4 + $0x38] sm:$0xff]  }
   0xc   :  { %1622 = vmatpush3.bf16.msra.mxu0 %v2234_v10  ;;  %v2336_v27 = vld [vmem:[%s2850_s4 + $0xb0] sm:$0xff]   ;;  %v2360_v31 = vld [vmem:[%s2850_s4 + $0xb8] sm:$0xff]  }
   0xd   :  { %1668 = vmatpush3.bf16.msra.mxu1 %v2240_v11  ;;  %1623 = vmatprep.subr.bf16.mxu0 %v2246_v12  ;;  %v2017_v32 = vld [vmem:[%s2851_s0] ss:$16 sps:$4 sm:$0xff]   ;;  %v2019_v33 = vld [vmem:[%s2851_s0 + $0x4] ss:$16 sps:$4 sm:$0xff]   ;;  %v2020_v34 = vld [vmem:[%s2851_s0 + $0x8] ss:$16 sps:$4 sm:$0xff]  }
   0xe   :  { %1669 = vmatprep.subr.bf16.mxu1 %v2252_v13  ;;  %v2022_v35 = vld [vmem:[%s2851_s0 + $0xc] ss:$16 sps:$4 sm:$0xff]   ;;  %432 = vmatprep.mubr.bf16.mxu0 %v2019_v33  ;;  %v2023_v36 = vld [vmem:[%s2851_s0 + $0x24] ss:$16 sps:$4 sm:$0xff]   ;;  %v2027_v38 = vld [vmem:[%s2851_s0 + $0x20] ss:$16 sps:$4 sm:$0xff]  }
   0xf   :  { %505 = vmatprep.mubr.bf16.mxu1 %v2022_v35  ;;  %v2025_v37 = vld [vmem:[%s2851_s0 + $0x2c] ss:$16 sps:$4 sm:$0xff]   ;;  %v2028_v39 = vld [vmem:[%s2851_s0 + $0x28] ss:$16 sps:$4 sm:$0xff]   ;;  %v2029_v40 = vld [vmem:[%s2851_s0 + $0x44] ss:$16 sps:$4 sm:$0xff]  }
  0x10   :  { %1624 = vmatpush3.bf16.msra.mxu0 %v2258_v14  ;;  %v2031_v41 = vld [vmem:[%s2851_s0 + $0x4c] ss:$16 sps:$4 sm:$0xff]   ;;  %v2033_v42 = vld [vmem:[%s2851_s0 + $0x40] ss:$16 sps:$4 sm:$0xff]   ;;  %v2034_v43 = vld [vmem:[%s2851_s0 + $0x48] ss:$16 sps:$4 sm:$0xff]  }
  0x11   :  { %1670 = vmatpush3.bf16.msra.mxu1 %v2264_v15  ;;  %1625 = vmatprep.subr.bf16.mxu0 %v2270_v16  ;;  %v2035_v44 = vld [vmem:[%s2851_s0 + $0x64] ss:$16 sps:$4 sm:$0xff]   ;;  %v2037_v45 = vld [vmem:[%s2851_s0 + $0x6c] ss:$16 sps:$4 sm:$0xff]   ;;  %v2039_v46 = vld [vmem:[%s2851_s0 + $0x60] ss:$16 sps:$4 sm:$0xff]  }
  0x12   :  { %1671 = vmatprep.subr.bf16.mxu1 %v2276_v17  ;;  %v2040_v47 = vld [vmem:[%s2851_s0 + $0x68] ss:$16 sps:$4 sm:$0xff]   ;;  %v2041_v48 = vld [vmem:[%s2851_s0 + $0x84] ss:$16 sps:$4 sm:$0xff]   ;;  %v2043_v49 = vld [vmem:[%s2851_s0 + $0x8c] ss:$16 sps:$4 sm:$0xff]  }
  0x13   :  { %v2045_v50 = vld [vmem:[%s2851_s0 + $0x80] ss:$16 sps:$4 sm:$0xff]   ;;  %v2046_v51 = vld [vmem:[%s2851_s0 + $0x88] ss:$16 sps:$4 sm:$0xff]   ;;  %v2049_v52 = vld [vmem:[%s2852_s1 + $0x4] ss:$16 sps:$4 sm:$0xff]  }
  0x14   :  { %1626 = vmatpush3.bf16.msra.mxu0 %v2282_v18  ;;  %v2052_v53 = vld [vmem:[%s2852_s1 + $0xc] ss:$16 sps:$4 sm:$0xff]   ;;  %v2047_v54 = vld [vmem:[%s2852_s1] ss:$16 sps:$4 sm:$0xff]   ;;  %v2050_v55 = vld [vmem:[%s2852_s1 + $0x8] ss:$16 sps:$4 sm:$0xff]  }
  0x15   :  { %1672 = vmatpush3.bf16.msra.mxu1 %v2288_v19  ;;  %1627 = vmatprep.subr.bf16.mxu0 %v2294_v20  ;;  %v2053_v56 = vld [vmem:[%s2852_s1 + $0x24] ss:$16 sps:$4 sm:$0xff]   ;;  %v2055_v57 = vld [vmem:[%s2852_s1 + $0x2c] ss:$16 sps:$4 sm:$0xff]   ;;  %v2057_v58 = vld [vmem:[%s2852_s1 + $0x20] ss:$16 sps:$4 sm:$0xff]  }
  0x16   :  { %1673 = vmatprep.subr.bf16.mxu1 %v2300_v21  ;;  %v2058_v59 = vld [vmem:[%s2852_s1 + $0x28] ss:$16 sps:$4 sm:$0xff]   ;;  %v2059_v60 = vld [vmem:[%s2852_s1 + $0x44] ss:$16 sps:$4 sm:$0xff]   ;;  %v2061_v61 = vld [vmem:[%s2852_s1 + $0x4c] ss:$16 sps:$4 sm:$0xff]  }
  0x17   :  { %v2063_v62 = vld [vmem:[%s2852_s1 + $0x40] ss:$16 sps:$4 sm:$0xff]   ;;  %v2064_v63 = vld [vmem:[%s2852_s1 + $0x48] ss:$16 sps:$4 sm:$0xff]   ;;  %v2067_v33 = vld [vmem:[%s2852_s1 + $0x6c] ss:$16 sps:$4 sm:$0xff]  }
  0x18   :  { %1628 = vmatpush3.bf16.msra.mxu0 %v2306_v22  ;;  %v2070_v35 = vld [vmem:[%s2852_s1 + $0x68] ss:$16 sps:$4 sm:$0xff]  }
  0x19   :  { %1674 = vmatpush3.bf16.msra.mxu1 %v2312_v23  ;;  %1629 = vmatprep.subr.bf16.mxu0 %v2318_v24 }
  0x1a   :  { %1675 = vmatprep.subr.bf16.mxu1 %v2324_v25 }
  0x1c   :  { %1630 = vmatpush3.bf16.msra.mxu0 %v2330_v26 }
  0x1d   :  { %1676 = vmatpush3.bf16.msra.mxu1 %v2336_v27  ;;  %1631 = vmatprep.subr.bf16.mxu0 %v2342_v28 }
  0x1e   :  { %1677 = vmatprep.subr.bf16.mxu1 %v2348_v29 }
  0x20   :  { %1632 = vmatpush3.bf16.msra.mxu0 %v2354_v30 }
  0x21   :  { %1678 = vmatpush3.bf16.msra.mxu1 %v2360_v31  ;;  %1709 = vmatprep.subr.bf16.mxu0 %v2175_v0 }
  0x22   :  { %1755 = vmatprep.subr.bf16.mxu1 %v2180_v1 }
  0x23   :  { %433 = vmatmul.mubr.bf16.vlgmr.msra.gmra.mrb[0].mxu0 %v2017_v32  ;;  %v2065_v32 = vld [vmem:[%s2852_s1 + $0x64] ss:$16 sps:$4 sm:$0xff]  }
  0x24   :  { %506 = vmatmul.mubr.bf16.vlgmr.msra.gmra.mrb[0].mxu1 %v2020_v34  ;;  %1710 = vmatpush3.bf16.msra.mxu0 %v2186_v2  ;;  %v2069_v34 = vld [vmem:[%s2852_s1 + $0x60] ss:$16 sps:$4 sm:$0xff]  }
  0x25   :  { %1756 = vmatpush3.bf16.msra.mxu1 %v2192_v3  ;;  %1711 = vmatprep.subr.bf16.mxu0 %v2198_v4 }
  0x26   :  { %1757 = vmatprep.subr.bf16.mxu1 %v2204_v5  ;;  %440 = vmatprep.mubr.bf16.mxu0 %v2023_v36  ;;  %v2071_v36 = vld [vmem:[%s2852_s1 + $0x84] ss:$16 sps:$4 sm:$0xff]  }
  0x27   :  { %513 = vmatprep.mubr.bf16.mxu1 %v2025_v37  ;;  %v2073_v37 = vld [vmem:[%s2852_s1 + $0x8c] ss:$16 sps:$4 sm:$0xff]  }
  0x28   :  { %1712 = vmatpush3.bf16.msra.mxu0 %v2210_v6 }
  0x29   :  { %1758 = vmatpush3.bf16.msra.mxu1 %v2216_v7  ;;  %1713 = vmatprep.subr.bf16.mxu0 %v2222_v8 }
  0x2a   :  { %1759 = vmatprep.subr.bf16.mxu1 %v2228_v9 }
  0x2b   :  { %441 = vmatmul.mubr.bf16.gmra.mrb[4].mxu0 %v2027_v38  ;;  %v2075_v38 = vld [vmem:[%s2852_s1 + $0x80] ss:$16 sps:$4 sm:$0xff]  }
  0x2c   :  { %514 = vmatmul.mubr.bf16.gmra.mrb[4].mxu1 %v2028_v39  ;;  %1714 = vmatpush3.bf16.msra.mxu0 %v2234_v10  ;;  %v2076_v39 = vld [vmem:[%s2852_s1 + $0x88] ss:$16 sps:$4 sm:$0xff]  }
  0x2d   :  { %1760 = vmatpush3.bf16.msra.mxu1 %v2240_v11  ;;  %448 = vmatprep.mubr.bf16.mxu0 %v2029_v40  ;;  %v2079_v40 = vld [vmem:[%s2853_s2 + $0x4] ss:$16 sps:$4 sm:$0xff]  }
  0x2e   :  { %521 = vmatprep.mubr.bf16.mxu1 %v2031_v41  ;;  %1715 = vmatprep.subr.bf16.mxu0 %v2246_v12  ;;  %v2082_v41 = vld [vmem:[%s2853_s2 + $0xc] ss:$16 sps:$4 sm:$0xff]  }
  0x2f   :  { %1761 = vmatprep.subr.bf16.mxu1 %v2252_v13 }
  0x30   :  { %1716 = vmatpush3.bf16.msra.mxu0 %v2258_v14 }
  0x31   :  { %1762 = vmatpush3.bf16.msra.mxu1 %v2264_v15  ;;  %1717 = vmatprep.subr.bf16.mxu0 %v2270_v16 }
  0x32   :  { %1763 = vmatprep.subr.bf16.mxu1 %v2276_v17 }
  0x33   :  { %449 = vmatmul.mubr.bf16.gmra.mrb[8].mxu0 %v2033_v42  ;;  %v2077_v42 = vld [vmem:[%s2853_s2] ss:$16 sps:$4 sm:$0xff]  }
  0x34   :  { %522 = vmatmul.mubr.bf16.gmra.mrb[8].mxu1 %v2034_v43  ;;  %1718 = vmatpush3.bf16.msra.mxu0 %v2282_v18  ;;  %v2080_v43 = vld [vmem:[%s2853_s2 + $0x8] ss:$16 sps:$4 sm:$0xff]  }
  0x35   :  { %1764 = vmatpush3.bf16.msra.mxu1 %v2288_v19  ;;  %456 = vmatprep.mubr.bf16.mxu0 %v2035_v44  ;;  %v2083_v44 = vld [vmem:[%s2853_s2 + $0x24] ss:$16 sps:$4 sm:$0xff]  }
  0x36   :  { %529 = vmatprep.mubr.bf16.mxu1 %v2037_v45  ;;  %1719 = vmatprep.subr.bf16.mxu0 %v2294_v20  ;;  %v2088_v45 = vld [vmem:[%s2853_s2 + $0x28] ss:$16 sps:$4 sm:$0xff]  }
  0x37   :  { %1765 = vmatprep.subr.bf16.mxu1 %v2300_v21 }
  0x38   :  { %1720 = vmatpush3.bf16.msra.mxu0 %v2306_v22 }
  0x39   :  { %1766 = vmatpush3.bf16.msra.mxu1 %v2312_v23  ;;  %1721 = vmatprep.subr.bf16.mxu0 %v2318_v24 }
  0x3a   :  { %1767 = vmatprep.subr.bf16.mxu1 %v2324_v25 }
  0x3b   :  { %457 = vmatmul.mubr.bf16.gmra.mrb[12].mxu0 %v2039_v46  ;;  %v2135_v46 = vld [vmem:[%s2854_s3 + $0x80] ss:$16 sps:$4 sm:$0xff]  }
  0x3c   :  { %530 = vmatmul.mubr.bf16.gmra.mrb[12].mxu1 %v2040_v47  ;;  %464 = vmatprep.mubr.bf16.mxu0 %v2041_v48  ;;  %v2136_v47 = vld [vmem:[%s2854_s3 + $0x88] ss:$16 sps:$4 sm:$0xff]  }
  0x3d   :  { %537 = vmatprep.mubr.bf16.mxu1 %v2043_v49  ;;  %1722 = vmatpush3.bf16.msra.mxu0 %v2330_v26 }
  0x3e   :  { %1768 = vmatpush3.bf16.msra.mxu1 %v2336_v27  ;;  %1723 = vmatprep.subr.bf16.mxu0 %v2342_v28 }
  0x3f   :  { %1769 = vmatprep.subr.bf16.mxu1 %v2348_v29 }
  0x41   :  { %1724 = vmatpush3.bf16.msra.mxu0 %v2354_v30 }
  0x42   :  { %1770 = vmatpush3.bf16.msra.mxu1 %v2360_v31  ;;  %1801 = vmatprep.subr.bf16.mxu0 %v2175_v0 }
  0x43   :  { %465 = vmatmul.mubr.bf16.gmra.mrb[16].mxu0 %v2045_v50  ;;  %1847 = vmatprep.subr.bf16.mxu1 %v2180_v1 }
  0x44   :  { %538 = vmatmul.mubr.bf16.gmra.mrb[16].mxu1 %v2046_v51  ;;  %698 = vmatprep.mubr.bf16.mxu0 %v2049_v52 }
  0x45   :  { %771 = vmatprep.mubr.bf16.mxu1 %v2052_v53 }
  0x4b   :  { %699 = vmatmul.mubr.bf16.vlgmr.msra.gmra.mrb[20].mxu0 %v2047_v54 }
  0x4c   :  { %772 = vmatmul.mubr.bf16.vlgmr.msra.gmra.mrb[20].mxu1 %v2050_v55  ;;  %1802 = vmatpush3.bf16.msra.mxu0 %v2186_v2 }
  0x4d   :  { %1848 = vmatpush3.bf16.msra.mxu1 %v2192_v3  ;;  %1803 = vmatprep.subr.bf16.mxu0 %v2198_v4 }
  0x4e   :  { %1849 = vmatprep.subr.bf16.mxu1 %v2204_v5  ;;  %706 = vmatprep.mubr.bf16.mxu0 %v2053_v56 }
  0x4f   :  { %779 = vmatprep.mubr.bf16.mxu1 %v2055_v57 }
  0x50   :  { %1804 = vmatpush3.bf16.msra.mxu0 %v2210_v6 }
  0x51   :  { %1850 = vmatpush3.bf16.msra.mxu1 %v2216_v7  ;;  %1805 = vmatprep.subr.bf16.mxu0 %v2222_v8 }
  0x52   :  { %1851 = vmatprep.subr.bf16.mxu1 %v2228_v9 }
  0x53   :  { %707 = vmatmul.mubr.bf16.gmra.mrb[24].mxu0 %v2057_v58 }
  0x54   :  { %780 = vmatmul.mubr.bf16.gmra.mrb[24].mxu1 %v2058_v59  ;;  %1806 = vmatpush3.bf16.msra.mxu0 %v2234_v10 }
  0x55   :  { %1852 = vmatpush3.bf16.msra.mxu1 %v2240_v11  ;;  %714 = vmatprep.mubr.bf16.mxu0 %v2059_v60 }
  0x56   :  { %787 = vmatprep.mubr.bf16.mxu1 %v2061_v61  ;;  %1807 = vmatprep.subr.bf16.mxu0 %v2246_v12 }
  0x57   :  { %1853 = vmatprep.subr.bf16.mxu1 %v2252_v13 }
  0x58   :  { %1808 = vmatpush3.bf16.msra.mxu0 %v2258_v14 }
  0x59   :  { %1854 = vmatpush3.bf16.msra.mxu1 %v2264_v15  ;;  %1809 = vmatprep.subr.bf16.mxu0 %v2270_v16 }
  0x5a   :  { %1855 = vmatprep.subr.bf16.mxu1 %v2276_v17 }
  0x5b   :  { %715 = vmatmul.mubr.bf16.gmra.mrb[28].mxu0 %v2063_v62 }
  0x5c   :  { %788 = vmatmul.mubr.bf16.gmra.mrb[28].mxu1 %v2064_v63  ;;  %1810 = vmatpush3.bf16.msra.mxu0 %v2282_v18 }
  0x5d   :  { %1856 = vmatpush3.bf16.msra.mxu1 %v2288_v19  ;;  %722 = vmatprep.mubr.bf16.mxu0 %v2065_v32 }
  0x5e   :  { %795 = vmatprep.mubr.bf16.mxu1 %v2067_v33  ;;  %1811 = vmatprep.subr.bf16.mxu0 %v2294_v20 }
  0x5f   :  { %1857 = vmatprep.subr.bf16.mxu1 %v2300_v21 }
  0x60   :  { %1812 = vmatpush3.bf16.msra.mxu0 %v2306_v22 }
  0x61   :  { %1858 = vmatpush3.bf16.msra.mxu1 %v2312_v23  ;;  %1813 = vmatprep.subr.bf16.mxu0 %v2318_v24 }
  0x62   :  { %1859 = vmatprep.subr.bf16.mxu1 %v2324_v25 }
  0x63   :  { %723 = vmatmul.mubr.bf16.gmra.mrb[32].mxu0 %v2069_v34 }
  0x64   :  { %796 = vmatmul.mubr.bf16.gmra.mrb[32].mxu1 %v2070_v35  ;;  %730 = vmatprep.mubr.bf16.mxu0 %v2071_v36 }
  0x65   :  { %803 = vmatprep.mubr.bf16.mxu1 %v2073_v37  ;;  %1814 = vmatpush3.bf16.msra.mxu0 %v2330_v26 }
  0x66   :  { %1860 = vmatpush3.bf16.msra.mxu1 %v2336_v27  ;;  %1815 = vmatprep.subr.bf16.mxu0 %v2342_v28 }
  0x67   :  { %1861 = vmatprep.subr.bf16.mxu1 %v2348_v29 }
  0x69   :  { %1816 = vmatpush3.bf16.msra.mxu0 %v2354_v30 }
  0x6a   :  { %1862 = vmatpush3.bf16.msra.mxu1 %v2360_v31  ;;  %1893 = vmatprep.subr.bf16.mxu0 %v2175_v0  ;;  %v2085_v0 = vld [vmem:[%s2853_s2 + $0x2c] ss:$16 sps:$4 sm:$0xff]  }
  0x6b   :  { %731 = vmatmul.mubr.bf16.gmra.mrb[36].mxu0 %v2075_v38  ;;  %1939 = vmatprep.subr.bf16.mxu1 %v2180_v1  ;;  %v2087_v1 = vld [vmem:[%s2853_s2 + $0x20] ss:$16 sps:$4 sm:$0xff]  }
  0x6c   :  { %804 = vmatmul.mubr.bf16.gmra.mrb[36].mxu1 %v2076_v39  ;;  %964 = vmatprep.mubr.bf16.mxu0 %v2079_v40 }
  0x6d   :  { %1037 = vmatprep.mubr.bf16.mxu1 %v2082_v41 }
  0x73   :  { %965 = vmatmul.mubr.bf16.vlgmr.msra.gmra.mrb[40].mxu0 %v2077_v42 }
  0x74   :  { %1038 = vmatmul.mubr.bf16.vlgmr.msra.gmra.mrb[40].mxu1 %v2080_v43  ;;  %1894 = vmatpush3.bf16.msra.mxu0 %v2186_v2  ;;  %v2089_v2 = vld [vmem:[%s2853_s2 + $0x44] ss:$16 sps:$4 sm:$0xff]  }
  0x75   :  { %1940 = vmatpush3.bf16.msra.mxu1 %v2192_v3  ;;  %1895 = vmatprep.subr.bf16.mxu0 %v2198_v4  ;;  %v2091_v3 = vld [vmem:[%s2853_s2 + $0x4c] ss:$16 sps:$4 sm:$0xff]   ;;  %v2093_v4 = vld [vmem:[%s2853_s2 + $0x40] ss:$16 sps:$4 sm:$0xff]  }
  0x76   :  { %1941 = vmatprep.subr.bf16.mxu1 %v2204_v5  ;;  %972 = vmatprep.mubr.bf16.mxu0 %v2083_v44  ;;  %v2094_v5 = vld [vmem:[%s2853_s2 + $0x48] ss:$16 sps:$4 sm:$0xff]  }
  0x77   :  { %1045 = vmatprep.mubr.bf16.mxu1 %v2085_v0 }
  0x78   :  { %1896 = vmatpush3.bf16.msra.mxu0 %v2210_v6  ;;  %v2095_v6 = vld [vmem:[%s2853_s2 + $0x64] ss:$16 sps:$4 sm:$0xff]  }
  0x79   :  { %1942 = vmatpush3.bf16.msra.mxu1 %v2216_v7  ;;  %1897 = vmatprep.subr.bf16.mxu0 %v2222_v8  ;;  %v2097_v7 = vld [vmem:[%s2853_s2 + $0x6c] ss:$16 sps:$4 sm:$0xff]   ;;  %v2099_v8 = vld [vmem:[%s2853_s2 + $0x60] ss:$16 sps:$4 sm:$0xff]  }
  0x7a   :  { %1943 = vmatprep.subr.bf16.mxu1 %v2228_v9  ;;  %v2100_v9 = vld [vmem:[%s2853_s2 + $0x68] ss:$16 sps:$4 sm:$0xff]  }
  0x7b   :  { %973 = vmatmul.mubr.bf16.gmra.mrb[44].mxu0 %v2087_v1 }
  0x7c   :  { %1046 = vmatmul.mubr.bf16.gmra.mrb[44].mxu1 %v2088_v45  ;;  %1898 = vmatpush3.bf16.msra.mxu0 %v2234_v10  ;;  %v2101_v10 = vld [vmem:[%s2853_s2 + $0x84] ss:$16 sps:$4 sm:$0xff]  }
  0x7d   :  { %1944 = vmatpush3.bf16.msra.mxu1 %v2240_v11  ;;  %980 = vmatprep.mubr.bf16.mxu0 %v2089_v2  ;;  %v2103_v11 = vld [vmem:[%s2853_s2 + $0x8c] ss:$16 sps:$4 sm:$0xff]  }
  0x7e   :  { %1053 = vmatprep.mubr.bf16.mxu1 %v2091_v3  ;;  %1899 = vmatprep.subr.bf16.mxu0 %v2246_v12  ;;  %v2105_v12 = vld [vmem:[%s2853_s2 + $0x80] ss:$16 sps:$4 sm:$0xff]  }
  0x7f   :  { %1945 = vmatprep.subr.bf16.mxu1 %v2252_v13  ;;  %v2106_v13 = vld [vmem:[%s2853_s2 + $0x88] ss:$16 sps:$4 sm:$0xff]  }
  0x80   :  { %1900 = vmatpush3.bf16.msra.mxu0 %v2258_v14  ;;  %v2109_v14 = vld [vmem:[%s2854_s3 + $0x4] ss:$16 sps:$4 sm:$0xff]  }
  0x81   :  { %1946 = vmatpush3.bf16.msra.mxu1 %v2264_v15  ;;  %1901 = vmatprep.subr.bf16.mxu0 %v2270_v16  ;;  %v2112_v15 = vld [vmem:[%s2854_s3 + $0xc] ss:$16 sps:$4 sm:$0xff]   ;;  %v2107_v16 = vld [vmem:[%s2854_s3] ss:$16 sps:$4 sm:$0xff]  }
  0x82   :  { %1947 = vmatprep.subr.bf16.mxu1 %v2276_v17  ;;  %v2110_v17 = vld [vmem:[%s2854_s3 + $0x8] ss:$16 sps:$4 sm:$0xff]  }
  0x83   :  { %981 = vmatmul.mubr.bf16.gmra.mrb[48].mxu0 %v2093_v4 }
  0x84   :  { %1054 = vmatmul.mubr.bf16.gmra.mrb[48].mxu1 %v2094_v5  ;;  %1902 = vmatpush3.bf16.msra.mxu0 %v2282_v18  ;;  %v2113_v18 = vld [vmem:[%s2854_s3 + $0x24] ss:$16 sps:$4 sm:$0xff]  }
  0x85   :  { %1948 = vmatpush3.bf16.msra.mxu1 %v2288_v19  ;;  %988 = vmatprep.mubr.bf16.mxu0 %v2095_v6  ;;  %v2115_v19 = vld [vmem:[%s2854_s3 + $0x2c] ss:$16 sps:$4 sm:$0xff]  }
  0x86   :  { %1061 = vmatprep.mubr.bf16.mxu1 %v2097_v7  ;;  %1903 = vmatprep.subr.bf16.mxu0 %v2294_v20  ;;  %v2117_v20 = vld [vmem:[%s2854_s3 + $0x20] ss:$16 sps:$4 sm:$0xff]  }
  0x87   :  { %1949 = vmatprep.subr.bf16.mxu1 %v2300_v21  ;;  %v2118_v21 = vld [vmem:[%s2854_s3 + $0x28] ss:$16 sps:$4 sm:$0xff]  }
  0x88   :  { %1904 = vmatpush3.bf16.msra.mxu0 %v2306_v22  ;;  %v2119_v22 = vld [vmem:[%s2854_s3 + $0x44] ss:$16 sps:$4 sm:$0xff]  }
  0x89   :  { %1950 = vmatpush3.bf16.msra.mxu1 %v2312_v23  ;;  %1905 = vmatprep.subr.bf16.mxu0 %v2318_v24  ;;  %v2121_v23 = vld [vmem:[%s2854_s3 + $0x4c] ss:$16 sps:$4 sm:$0xff]   ;;  %v2123_v24 = vld [vmem:[%s2854_s3 + $0x40] ss:$16 sps:$4 sm:$0xff]  }
  0x8a   :  { %1951 = vmatprep.subr.bf16.mxu1 %v2324_v25  ;;  %v2124_v25 = vld [vmem:[%s2854_s3 + $0x48] ss:$16 sps:$4 sm:$0xff]  }
  0x8b   :  { %989 = vmatmul.mubr.bf16.gmra.mrb[52].mxu0 %v2099_v8 }
  0x8c   :  { %1062 = vmatmul.mubr.bf16.gmra.mrb[52].mxu1 %v2100_v9  ;;  %996 = vmatprep.mubr.bf16.mxu0 %v2101_v10 }
  0x8d   :  { %1069 = vmatprep.mubr.bf16.mxu1 %v2103_v11  ;;  %1906 = vmatpush3.bf16.msra.mxu0 %v2330_v26  ;;  %v2125_v26 = vld [vmem:[%s2854_s3 + $0x64] ss:$16 sps:$4 sm:$0xff]  }
  0x8e   :  { %1952 = vmatpush3.bf16.msra.mxu1 %v2336_v27  ;;  %1907 = vmatprep.subr.bf16.mxu0 %v2342_v28  ;;  %v2127_v27 = vld [vmem:[%s2854_s3 + $0x6c] ss:$16 sps:$4 sm:$0xff]   ;;  %v2129_v28 = vld [vmem:[%s2854_s3 + $0x60] ss:$16 sps:$4 sm:$0xff]  }
  0x8f   :  { %1953 = vmatprep.subr.bf16.mxu1 %v2348_v29  ;;  %v2130_v29 = vld [vmem:[%s2854_s3 + $0x68] ss:$16 sps:$4 sm:$0xff]  }
  0x91   :  { %1908 = vmatpush3.bf16.msra.mxu0 %v2354_v30  ;;  %v2131_v30 = vld [vmem:[%s2854_s3 + $0x84] ss:$16 sps:$4 sm:$0xff]  }
  0x92   :  { %1954 = vmatpush3.bf16.msra.mxu1 %v2360_v31  ;;  %v2133_v31 = vld [vmem:[%s2854_s3 + $0x8c] ss:$16 sps:$4 sm:$0xff]  }
  0x93   :  { %997 = vmatmul.mubr.bf16.gmra.mrb[56].mxu0 %v2105_v12 }
  0x94   :  { %1070 = vmatmul.mubr.bf16.gmra.mrb[56].mxu1 %v2106_v13  ;;  %1230 = vmatprep.mubr.bf16.mxu0 %v2109_v14 }
  0x95   :  { %1303 = vmatprep.mubr.bf16.mxu1 %v2112_v15 }
  0x9b   :  { %1231 = vmatmul.mubr.bf16.vlgmr.msra.gmra.mrb[60].mxu0 %v2107_v16 }
  0x9c   :  { %1304 = vmatmul.mubr.bf16.vlgmr.msra.gmra.mrb[60].mxu1 %v2110_v17  ;;  %1238 = vmatprep.mubr.bf16.mxu0 %v2113_v18 }
  0x9d   :  { %1311 = vmatprep.mubr.bf16.mxu1 %v2115_v19 }
  0xa3   :  { %1239 = vmatmul.mubr.bf16.gmra.mrb[64].mxu0 %v2117_v20 }
  0xa4   :  { %1312 = vmatmul.mubr.bf16.gmra.mrb[64].mxu1 %v2118_v21  ;;  %1246 = vmatprep.mubr.bf16.mxu0 %v2119_v22 }
  0xa5   :  { %1319 = vmatprep.mubr.bf16.mxu1 %v2121_v23 }
  0xab   :  { %1247 = vmatmul.mubr.bf16.gmra.mrb[68].mxu0 %v2123_v24 }
  0xac   :  { %1320 = vmatmul.mubr.bf16.gmra.mrb[68].mxu1 %v2124_v25  ;;  %1254 = vmatprep.mubr.bf16.mxu0 %v2125_v26 }
  0xad   :  { %1327 = vmatprep.mubr.bf16.mxu1 %v2127_v27 }
  0xb3   :  { %1255 = vmatmul.mubr.bf16.gmra.mrb[72].mxu0 %v2129_v28 }
  0xb4   :  { %1328 = vmatmul.mubr.bf16.gmra.mrb[72].mxu1 %v2130_v29  ;;  %1262 = vmatprep.mubr.bf16.mxu0 %v2131_v30 }
  0xb5   :  { %1335 = vmatprep.mubr.bf16.mxu1 %v2133_v31 }
  0xbb   :  { %1263 = vmatmul.mubr.bf16.gmra.mrb[76].mxu0 %v2135_v46 }
  0xbc   :  { %1336 = vmatmul.mubr.bf16.gmra.mrb[76].mxu1 %v2136_v47 }
  0xf6   :  { %v1633_v48 = vpop.f32.mrb[0].mxu0 }
  0xf7   :  { %v1679_v49 = vpop.f32.mrb[0].mxu1  ;;  %v1634_v50 = vpop.f32.mrb[1].mxu0 }
  0xf8   :  { %v1635_v51 = vadd.f32 %v1634_v50, %v1633_v48  ;;  %v1680_v52 = vpop.f32.mrb[1].mxu1  ;;  %v1636_v53 = vpop.f32.mrb[2].mxu0 }
  0xf9   :  { %v1681_v54 = vadd.f32 %v1680_v52, %v1679_v49  ;;  %v1682_v55 = vpop.f32.mrb[2].mxu1  ;;  %v1637_v56 = vpop.f32.mrb[3].mxu0 }
  0xfa   :  { %v1638_v57 = vadd.f32 %v1637_v56, %v1636_v53  ;;  %v1683_v58 = vpop.f32.mrb[3].mxu1 }
  0xfb   :  { %v2700_v59 = vadd.f32 %v1681_v54, %v1635_v51  ;;  %v1684_v60 = vadd.f32 %v1683_v58, %v1682_v55 }
  0xfd   :  { %v2702_v61 = vadd.f32 %v1684_v60, %v1638_v57 }
  0xfe   :  { %v1639_v62 = vpop.f32.mrb[4].mxu0 }
  0xff   :  { %v1685_v63 = vpop.f32.mrb[4].mxu1  ;;  %v1640_v32 = vpop.f32.mrb[5].mxu0 }
 0x100   :  { %v1641_v33 = vadd.f32 %v1640_v32, %v1639_v62  ;;  %v1686_v34 = vpop.f32.mrb[5].mxu1  ;;  %v1642_v35 = vpop.f32.mrb[6].mxu0 }
 0x101   :  { %v1687_v36 = vadd.f32 %v1686_v34, %v1685_v63  ;;  %v1688_v37 = vpop.f32.mrb[6].mxu1  ;;  %v1643_v38 = vpop.f32.mrb[7].mxu0 }
 0x102   :  { %v1644_v39 = vadd.f32 %v1643_v38, %v1642_v35  ;;  %v1689_v40 = vpop.f32.mrb[7].mxu1 }
 0x103   :  { %v2704_v41 = vadd.f32 %v1687_v36, %v1641_v33  ;;  %v1690_v42 = vadd.f32 %v1689_v40, %v1688_v37 }
 0x105   :  { %v2706_v43 = vadd.f32 %v1690_v42, %v1644_v39 }
 0x106   :  { %v1645_v44 = vpop.f32.mrb[8].mxu0 }
 0x107   :  { %v1691_v0 = vpop.f32.mrb[8].mxu1  ;;  %v1646_v1 = vpop.f32.mrb[9].mxu0 }
 0x108   :  { %v1647_v45 = vadd.f32 %v1646_v1, %v1645_v44  ;;  %v1692_v2 = vpop.f32.mrb[9].mxu1  ;;  %v1648_v3 = vpop.f32.mrb[10].mxu0 }
 0x109   :  { %v1693_v4 = vadd.f32 %v1692_v2, %v1691_v0  ;;  %v1694_v5 = vpop.f32.mrb[10].mxu1  ;;  %v1649_v6 = vpop.f32.mrb[11].mxu0 }
 0x10a   :  { %v1650_v7 = vadd.f32 %v1649_v6, %v1648_v3  ;;  %v1695_v8 = vpop.f32.mrb[11].mxu1 }
 0x10b   :  { %v2708_v9 = vadd.f32 %v1693_v4, %v1647_v45  ;;  %v1696_v10 = vadd.f32 %v1695_v8, %v1694_v5 }
 0x10d   :  { %v2710_v11 = vadd.f32 %v1696_v10, %v1650_v7 }
 0x10e   :  { %v1651_v12 = vpop.f32.mrb[12].mxu0 }
 0x10f   :  { %v1697_v13 = vpop.f32.mrb[12].mxu1  ;;  %v1652_v14 = vpop.f32.mrb[13].mxu0 }
 0x110   :  { %v1653_v15 = vadd.f32 %v1652_v14, %v1651_v12  ;;  %v1698_v16 = vpop.f32.mrb[13].mxu1  ;;  %v1654_v17 = vpop.f32.mrb[14].mxu0 }
 0x111   :  { %v1699_v18 = vadd.f32 %v1698_v16, %v1697_v13  ;;  %v1700_v19 = vpop.f32.mrb[14].mxu1  ;;  %v1655_v20 = vpop.f32.mrb[15].mxu0 }
 0x112   :  { %v1656_v21 = vadd.f32 %v1655_v20, %v1654_v17  ;;  %v1701_v22 = vpop.f32.mrb[15].mxu1 }
 0x113   :  { %v2712_v23 = vadd.f32 %v1699_v18, %v1653_v15  ;;  %v1702_v24 = vadd.f32 %v1701_v22, %v1700_v19 }
 0x115   :  { %v2714_v25 = vadd.f32 %v1702_v24, %v1656_v21 }
 0x116   :  { %v1657_v26 = vpop.f32.mrb[16].mxu0 }
 0x117   :  { %v1703_v27 = vpop.f32.mrb[16].mxu1  ;;  %v1658_v28 = vpop.f32.mrb[17].mxu0 }
 0x118   :  { %v1659_v29 = vadd.f32 %v1658_v28, %v1657_v26  ;;  %v1704_v30 = vpop.f32.mrb[17].mxu1  ;;  %v1660_v31 = vpop.f32.mrb[18].mxu0 }
 0x119   :  { %v1705_v46 = vadd.f32 %v1704_v30, %v1703_v27  ;;  %v1706_v47 = vpop.f32.mrb[18].mxu1  ;;  %v1661_v48 = vpop.f32.mrb[19].mxu0 }
 0x11a   :  { %v1662_v49 = vadd.f32 %v1661_v48, %v1660_v31  ;;  %v1707_v50 = vpop.f32.mrb[19].mxu1 }
 0x11b   :  { %v2716_v51 = vadd.f32 %v1705_v46, %v1659_v29  ;;  %v1708_v52 = vadd.f32 %v1707_v50, %v1706_v47 }
 0x11d   :  { %v2718_v53 = vadd.f32 %v1708_v52, %v1662_v49 }
 0x11e   :  { %v1725_v54 = vpop.f32.mrb[20].mxu0 }
 0x11f   :  { %v1771_v55 = vpop.f32.mrb[20].mxu1  ;;  %v1726_v56 = vpop.f32.mrb[21].mxu0 }
 0x120   :  { %v1727_v57 = vadd.f32 %v1726_v56, %v1725_v54  ;;  %v1772_v58 = vpop.f32.mrb[21].mxu1  ;;  %v1728_v60 = vpop.f32.mrb[22].mxu0 }
 0x121   :  { %v1773_v62 = vadd.f32 %v1772_v58, %v1771_v55  ;;  %v1774_v63 = vpop.f32.mrb[22].mxu1  ;;  %v1729_v32 = vpop.f32.mrb[23].mxu0 }
 0x122   :  { %v1730_v33 = vadd.f32 %v1729_v32, %v1728_v60  ;;  %v1775_v34 = vpop.f32.mrb[23].mxu1 }
 0x123   :  { %v2720_v35 = vadd.f32 %v1773_v62, %v1727_v57  ;;  %v1776_v36 = vadd.f32 %v1775_v34, %v1774_v63 }
 0x125   :  { %v1344_v37 = vmax.f32 %v2700_v59, %v2720_v35  ;;  %v2724_v38 = vadd.f32 %v1776_v36, %v1730_v33 }
 0x126   :  { %v1731_v39 = vpop.f32.mrb[24].mxu0 }
 0x127   :  { %v1345_v40 = vmax.f32 %v2702_v61, %v2724_v38  ;;  %v1777_v42 = vpop.f32.mrb[24].mxu1  ;;  %v1732_v44 = vpop.f32.mrb[25].mxu0 }
 0x128   :  { %v1733_v0 = vadd.f32 %v1732_v44, %v1731_v39  ;;  %v1778_v1 = vpop.f32.mrb[25].mxu1  ;;  %v1734_v45 = vpop.f32.mrb[26].mxu0 }
 0x129   :  { %v1779_v2 = vadd.f32 %v1778_v1, %v1777_v42  ;;  %v1780_v3 = vpop.f32.mrb[26].mxu1  ;;  %v1735_v4 = vpop.f32.mrb[27].mxu0 }
 0x12a   :  { %v1736_v5 = vadd.f32 %v1735_v4, %v1734_v45  ;;  %v1781_v6 = vpop.f32.mrb[27].mxu1 }
 0x12b   :  { %v2728_v7 = vadd.f32 %v1779_v2, %v1733_v0  ;;  %v1782_v8 = vadd.f32 %v1781_v6, %v1780_v3 }
 0x12d   :  { %v1346_v10 = vmax.f32 %v2704_v41, %v2728_v7  ;;  %v2732_v12 = vadd.f32 %v1782_v8, %v1736_v5 }
 0x12e   :  { %v1737_v13 = vpop.f32.mrb[28].mxu0 }
 0x12f   :  { %v1347_v14 = vmax.f32 %v2706_v43, %v2732_v12  ;;  %v1783_v15 = vpop.f32.mrb[28].mxu1  ;;  %v1738_v16 = vpop.f32.mrb[29].mxu0 }
 0x130   :  { %v1739_v17 = vadd.f32 %v1738_v16, %v1737_v13  ;;  %v1784_v18 = vpop.f32.mrb[29].mxu1  ;;  %v1740_v19 = vpop.f32.mrb[30].mxu0 }
 0x131   :  { %v1785_v20 = vadd.f32 %v1784_v18, %v1783_v15  ;;  %v1786_v21 = vpop.f32.mrb[30].mxu1  ;;  %v1741_v22 = vpop.f32.mrb[31].mxu0 }
 0x132   :  { %v1742_v24 = vadd.f32 %v1741_v22, %v1740_v19  ;;  %v1787_v26 = vpop.f32.mrb[31].mxu1 }
 0x133   :  { %v2736_v27 = vadd.f32 %v1785_v20, %v1739_v17  ;;  %v1788_v28 = vadd.f32 %v1787_v26, %v1786_v21 }
 0x135   :  { %v1348_v29 = vmax.f32 %v2708_v9, %v2736_v27  ;;  %v2740_v30 = vadd.f32 %v1788_v28, %v1742_v24 }
 0x136   :  { %v1743_v31 = vpop.f32.mrb[32].mxu0 }
 0x137   :  { %v1349_v46 = vmax.f32 %v2710_v11, %v2740_v30  ;;  %v1789_v47 = vpop.f32.mrb[32].mxu1  ;;  %v1744_v48 = vpop.f32.mrb[33].mxu0 }
 0x138   :  { %v1745_v49 = vadd.f32 %v1744_v48, %v1743_v31  ;;  %v1790_v50 = vpop.f32.mrb[33].mxu1  ;;  %v1746_v52 = vpop.f32.mrb[34].mxu0 }
 0x139   :  { %v1791_v54 = vadd.f32 %v1790_v50, %v1789_v47  ;;  %v1792_v55 = vpop.f32.mrb[34].mxu1  ;;  %v1747_v56 = vpop.f32.mrb[35].mxu0 }
 0x13a   :  { %v1748_v57 = vadd.f32 %v1747_v56, %v1746_v52  ;;  %v1793_v58 = vpop.f32.mrb[35].mxu1 }
 0x13b   :  { %v2744_v60 = vadd.f32 %v1791_v54, %v1745_v49  ;;  %v1794_v62 = vadd.f32 %v1793_v58, %v1792_v55 }
 0x13d   :  { %v1350_v63 = vmax.f32 %v2712_v23, %v2744_v60  ;;  %v2748_v32 = vadd.f32 %v1794_v62, %v1748_v57 }
 0x13e   :  { %v1749_v33 = vpop.f32.mrb[36].mxu0 }
 0x13f   :  { %v1351_v34 = vmax.f32 %v2714_v25, %v2748_v32  ;;  %v1795_v36 = vpop.f32.mrb[36].mxu1  ;;  %v1750_v39 = vpop.f32.mrb[37].mxu0 }
 0x140   :  { %v1751_v42 = vadd.f32 %v1750_v39, %v1749_v33  ;;  %v1796_v44 = vpop.f32.mrb[37].mxu1  ;;  %v1752_v0 = vpop.f32.mrb[38].mxu0 }
 0x141   :  { %v1797_v1 = vadd.f32 %v1796_v44, %v1795_v36  ;;  %v1798_v45 = vpop.f32.mrb[38].mxu1  ;;  %v1753_v2 = vpop.f32.mrb[39].mxu0 }
 0x142   :  { %v1754_v3 = vadd.f32 %v1753_v2, %v1752_v0  ;;  %v1799_v4 = vpop.f32.mrb[39].mxu1 }
 0x143   :  { %v2752_v5 = vadd.f32 %v1797_v1, %v1751_v42  ;;  %v1800_v6 = vadd.f32 %v1799_v4, %v1798_v45 }
 0x145   :  { %v1352_v8 = vmax.f32 %v2716_v51, %v2752_v5  ;;  %v2756_v13 = vadd.f32 %v1800_v6, %v1754_v3 }
 0x146   :  { %v1817_v15 = vpop.f32.mrb[40].mxu0 }
 0x147   :  { %v1353_v16 = vmax.f32 %v2718_v53, %v2756_v13  ;;  %v1863_v17 = vpop.f32.mrb[40].mxu1  ;;  %v1818_v18 = vpop.f32.mrb[41].mxu0 }
 0x148   :  { %v1819_v19 = vadd.f32 %v1818_v18, %v1817_v15  ;;  %v1864_v20 = vpop.f32.mrb[41].mxu1  ;;  %v1820_v21 = vpop.f32.mrb[42].mxu0 }
 0x149   :  { %v1865_v22 = vadd.f32 %v1864_v20, %v1863_v17  ;;  %v1866_v24 = vpop.f32.mrb[42].mxu1  ;;  %v1821_v26 = vpop.f32.mrb[43].mxu0 }
 0x14a   :  { %v1822_v28 = vadd.f32 %v1821_v26, %v1820_v21  ;;  %v1867_v31 = vpop.f32.mrb[43].mxu1 }
 0x14b   :  { %v2760_v47 = vadd.f32 %v1865_v22, %v1819_v19  ;;  %v1868_v48 = vadd.f32 %v1867_v31, %v1866_v24 }
 0x14d   :  { %v2762_v49 = vadd.f32 %v1868_v48, %v1822_v28 }
 0x14e   :  { %v1823_v50 = vpop.f32.mrb[44].mxu0 }
 0x14f   :  { %v1869_v52 = vpop.f32.mrb[44].mxu1  ;;  %v1824_v54 = vpop.f32.mrb[45].mxu0 }
 0x150   :  { %v1825_v55 = vadd.f32 %v1824_v54, %v1823_v50  ;;  %v1870_v56 = vpop.f32.mrb[45].mxu1  ;;  %v1826_v57 = vpop.f32.mrb[46].mxu0 }
 0x151   :  { %v1871_v58 = vadd.f32 %v1870_v56, %v1869_v52  ;;  %v1872_v62 = vpop.f32.mrb[46].mxu1  ;;  %v1827_v33 = vpop.f32.mrb[47].mxu0 }
 0x152   :  { %v1828_v36 = vadd.f32 %v1827_v33, %v1826_v57  ;;  %v1873_v39 = vpop.f32.mrb[47].mxu1 }
 0x153   :  { %v2764_v42 = vadd.f32 %v1871_v58, %v1825_v55  ;;  %v1874_v44 = vadd.f32 %v1873_v39, %v1872_v62 }
 0x155   :  { %v2766_v0 = vadd.f32 %v1874_v44, %v1828_v36 }
 0x156   :  { %v1829_v1 = vpop.f32.mrb[48].mxu0 }
 0x157   :  { %v1875_v45 = vpop.f32.mrb[48].mxu1  ;;  %v1830_v2 = vpop.f32.mrb[49].mxu0 }
 0x158   :  { %v1831_v3 = vadd.f32 %v1830_v2, %v1829_v1  ;;  %v1876_v4 = vpop.f32.mrb[49].mxu1  ;;  %v1832_v6 = vpop.f32.mrb[50].mxu0 }
 0x159   :  { %v1877_v15 = vadd.f32 %v1876_v4, %v1875_v45  ;;  %v1878_v17 = vpop.f32.mrb[50].mxu1  ;;  %v1833_v18 = vpop.f32.mrb[51].mxu0 }
 0x15a   :  { %v1834_v19 = vadd.f32 %v1833_v18, %v1832_v6  ;;  %v1879_v20 = vpop.f32.mrb[51].mxu1 }
 0x15b   :  { %v2768_v21 = vadd.f32 %v1877_v15, %v1831_v3  ;;  %v1880_v22 = vadd.f32 %v1879_v20, %v1878_v17 }
 0x15d   :  { %v2770_v24 = vadd.f32 %v1880_v22, %v1834_v19 }
 0x15e   :  { %v1835_v26 = vpop.f32.mrb[52].mxu0 }
 0x15f   :  { %v1881_v28 = vpop.f32.mrb[52].mxu1  ;;  %v1836_v31 = vpop.f32.mrb[53].mxu0 }
 0x160   :  { %v1837_v48 = vadd.f32 %v1836_v31, %v1835_v26  ;;  %v1882_v50 = vpop.f32.mrb[53].mxu1  ;;  %v1838_v52 = vpop.f32.mrb[54].mxu0 }
 0x161   :  { %v1883_v54 = vadd.f32 %v1882_v50, %v1881_v28  ;;  %v1884_v55 = vpop.f32.mrb[54].mxu1  ;;  %v1839_v56 = vpop.f32.mrb[55].mxu0 }
 0x162   :  { %v1840_v57 = vadd.f32 %v1839_v56, %v1838_v52  ;;  %v1885_v58 = vpop.f32.mrb[55].mxu1 }
 0x163   :  { %v2772_v62 = vadd.f32 %v1883_v54, %v1837_v48  ;;  %v1886_v33 = vadd.f32 %v1885_v58, %v1884_v55 }
 0x165   :  { %v2774_v36 = vadd.f32 %v1886_v33, %v1840_v57 }
 0x166   :  { %v1841_v39 = vpop.f32.mrb[56].mxu0 }
 0x167   :  { %v1887_v44 = vpop.f32.mrb[56].mxu1  ;;  %v1842_v1 = vpop.f32.mrb[57].mxu0 }
 0x168   :  { %v1843_v45 = vadd.f32 %v1842_v1, %v1841_v39  ;;  %v1888_v2 = vpop.f32.mrb[57].mxu1  ;;  %v1844_v3 = vpop.f32.mrb[58].mxu0 }
 0x169   :  { %v1889_v4 = vadd.f32 %v1888_v2, %v1887_v44  ;;  %v1890_v6 = vpop.f32.mrb[58].mxu1  ;;  %v1845_v15 = vpop.f32.mrb[59].mxu0 }
 0x16a   :  { %v1846_v17 = vadd.f32 %v1845_v15, %v1844_v3  ;;  %v1891_v18 = vpop.f32.mrb[59].mxu1 }
 0x16b   :  { %v2776_v19 = vadd.f32 %v1889_v4, %v1843_v45  ;;  %v1892_v20 = vadd.f32 %v1891_v18, %v1890_v6  ;;  %v2784_v45 = vld [vmem:[%s2855_s5] ss:$0 sm:$0xff] }
 0x16d   :  { %v2778_v22 = vadd.f32 %v1892_v20, %v1846_v17 }
 0x16e   :  { %v1909_v26 = vpop.f32.mrb[60].mxu0 }
 0x16f   :  { %v1955_v28 = vpop.f32.mrb[60].mxu1  ;;  %v1910_v31 = vpop.f32.mrb[61].mxu0 }
 0x170   :  { %v1911_v48 = vadd.f32 %v1910_v31, %v1909_v26  ;;  %v1956_v50 = vpop.f32.mrb[61].mxu1  ;;  %v1912_v52 = vpop.f32.mrb[62].mxu0 }
 0x171   :  { %v1957_v54 = vadd.f32 %v1956_v50, %v1955_v28  ;;  %v1958_v55 = vpop.f32.mrb[62].mxu1  ;;  %v1913_v56 = vpop.f32.mrb[63].mxu0 }
 0x172   :  { %v1914_v57 = vadd.f32 %v1913_v56, %v1912_v52  ;;  %v1959_v58 = vpop.f32.mrb[63].mxu1 }
 0x173   :  { %v1306_v33 = vadd.f32 %v1957_v54, %v1911_v48  ;;  %v1960_v39 = vadd.f32 %v1959_v58, %v1958_v55 }
 0x175   :  { %v1354_v44 = vmax.f32 %v2760_v47, %v1306_v33  ;;  %v1309_v1 = vadd.f32 %v1960_v39, %v1914_v57 }
 0x176   :  { %v1915_v2 = vpop.f32.mrb[64].mxu0 }
 0x177   :  { %v1364_v3 = vmax.f32 %v1344_v37, %v1354_v44  ;;  %v1355_v4 = vmax.f32 %v2762_v49, %v1309_v1  ;;  %v1961_v6 = vpop.f32.mrb[64].mxu1  ;;  %v1916_v15 = vpop.f32.mrb[65].mxu0 }
 0x178   :  { %v1917_v17 = vadd.f32 %v1916_v15, %v1915_v2  ;;  %v1962_v18 = vpop.f32.mrb[65].mxu1  ;;  %v1918_v20 = vpop.f32.mrb[66].mxu0 }
 0x179   :  { %v1381_v47 = vadd.f32 %v2784_v45, %v1364_v3  ;;  %v1365_v26 = vmax.f32 %v1345_v40, %v1355_v4  ;;  %v1963_v28 = vadd.f32 %v1962_v18, %v1961_v6  ;;  %v1964_v31 = vpop.f32.mrb[66].mxu1  ;;  %v1919_v48 = vpop.f32.mrb[67].mxu0 }
 0x17a   :  { %v1920_v50 = vadd.f32 %v1919_v48, %v1918_v20  ;;  %v1965_v52 = vpop.f32.mrb[67].mxu1 }
 0x17b   :  { %v1382_v59 = vadd.f32 %v2784_v45, %v1365_v26  ;;  %v1314_v35 = vadd.f32 %v1963_v28, %v1917_v17  ;;  %v1966_v37 = vadd.f32 %v1965_v52, %v1964_v31  ;;  %v1391_v49 = vmax.f32 %v1381_v47, 0.0 }
 0x17d   :  { %v1392_v54 = vmax.f32 %v1382_v59, 0.0  ;;  %v1356_v55 = vmax.f32 %v2764_v42, %v1314_v35  ;;  %v1317_v56 = vadd.f32 %v1966_v37, %v1920_v50 }
 0x17e   :  { %v1921_v57 = vpop.f32.mrb[68].mxu0 }
 0x17f   :  { %v1591_v58 = vpack.c.bf16 %v1392_v54, %v1391_v49  ;;  %v1366_v61 = vmax.f32 %v1346_v10, %v1356_v55  ;;  %v1357_v38 = vmax.f32 %v2766_v0, %v1317_v56  ;;  %v1967_v40 = vpop.f32.mrb[68].mxu1  ;;  %v1922_v33 = vpop.f32.mrb[69].mxu0 }
 0x180   :  { %v1923_v39 = vadd.f32 %v1922_v33, %v1921_v57  ;;  %v1968_v44 = vpop.f32.mrb[69].mxu1  ;;  %v1924_v1 = vpop.f32.mrb[70].mxu0 }
 0x181   :  { %1592 = vst [vmem:[%s2856_s6] sm:$0xff] %v1591_v58   ;;  %v1383_v42 = vadd.f32 %v2784_v45, %v1366_v61  ;;  %v1367_v2 = vmax.f32 %v1347_v14, %v1357_v38  ;;  %v1969_v3 = vadd.f32 %v1968_v44, %v1967_v40  ;;  %v1970_v41 = vpop.f32.mrb[70].mxu1  ;;  %v1925_v7 = vpop.f32.mrb[71].mxu0 }
 0x182   :  { %v1926_v10 = vadd.f32 %v1925_v7, %v1924_v1  ;;  %v1971_v0 = vpop.f32.mrb[71].mxu1 }
 0x183   :  { %v1384_v4 = vadd.f32 %v2784_v45, %v1367_v2  ;;  %v1322_v6 = vadd.f32 %v1969_v3, %v1923_v39  ;;  %v1972_v15 = vadd.f32 %v1971_v0, %v1970_v41  ;;  %v1393_v17 = vmax.f32 %v1383_v42, 0.0 }
 0x185   :  { %v1394_v18 = vmax.f32 %v1384_v4, 0.0  ;;  %v1358_v20 = vmax.f32 %v2768_v21, %v1322_v6  ;;  %v1325_v47 = vadd.f32 %v1972_v15, %v1926_v10 }
 0x186   :  { %v1927_v26 = vpop.f32.mrb[72].mxu0 }
 0x187   :  { %v1596_v28 = vpack.c.bf16 %v1394_v18, %v1393_v17  ;;  %v1368_v43 = vmax.f32 %v1348_v29, %v1358_v20  ;;  %v1359_v12 = vmax.f32 %v2770_v24, %v1325_v47  ;;  %v1973_v14 = vpop.f32.mrb[72].mxu1  ;;  %v1928_v31 = vpop.f32.mrb[73].mxu0 }
 0x188   :  { %v1929_v48 = vadd.f32 %v1928_v31, %v1927_v26  ;;  %v1974_v50 = vpop.f32.mrb[73].mxu1  ;;  %v1930_v52 = vpop.f32.mrb[74].mxu0 }
 0x189   :  { %1613 = vst [vmem:[%s2856_s6 + $0x8] sm:$0xff] %v1596_v28   ;;  %v1385_v21 = vadd.f32 %v2784_v45, %v1368_v43  ;;  %v1369_v59 = vmax.f32 %v1349_v46, %v1359_v12  ;;  %v1975_v35 = vadd.f32 %v1974_v50, %v1973_v14  ;;  %v1976_v9 = vpop.f32.mrb[74].mxu1  ;;  %v1931_v27 = vpop.f32.mrb[75].mxu0 }
 0x18a   :  { %v1932_v29 = vadd.f32 %v1931_v27, %v1930_v52  ;;  %v1977_v24 = vpop.f32.mrb[75].mxu1 }
 0x18b   :  { %v1386_v37 = vadd.f32 %v2784_v45, %v1369_v59  ;;  %v1330_v49 = vadd.f32 %v1975_v35, %v1929_v48  ;;  %v1978_v54 = vadd.f32 %v1977_v24, %v1976_v9  ;;  %v1395_v55 = vmax.f32 %v1385_v21, 0.0 }
 0x18d   :  { %v1396_v56 = vmax.f32 %v1386_v37, 0.0  ;;  %v1360_v57 = vmax.f32 %v2772_v62, %v1330_v49  ;;  %v1333_v58 = vadd.f32 %v1978_v54, %v1932_v29 }
 0x18e   :  { %v1933_v61 = vpop.f32.mrb[76].mxu0 }
 0x18f   :  { %v1601_v38 = vpack.c.bf16 %v1396_v56, %v1395_v55  ;;  %v1370_v11 = vmax.f32 %v1350_v63, %v1360_v57  ;;  %v1361_v30 = vmax.f32 %v2774_v36, %v1333_v58  ;;  %v1979_v46 = vpop.f32.mrb[76].mxu1  ;;  %v1934_v40 = vpop.f32.mrb[77].mxu0 }
 0x190   :  { %v1935_v33 = vadd.f32 %v1934_v40, %v1933_v61  ;;  %v1980_v39 = vpop.f32.mrb[77].mxu1  ;;  %v1936_v44 = vpop.f32.mrb[78].mxu0 }
 0x191   :  { %1614 = vst [vmem:[%s2856_s6 + $0x10] sm:$0xff] %v1601_v38   ;;  %v1387_v62 = vadd.f32 %v2784_v45, %v1370_v11  ;;  %v1371_v1 = vmax.f32 %v1351_v34, %v1361_v30  ;;  %v1981_v42 = vadd.f32 %v1980_v39, %v1979_v46  ;;  %v1982_v23 = vpop.f32.mrb[78].mxu1  ;;  %v1937_v60 = vpop.f32.mrb[79].mxu0 }
 0x192   :  { %v1938_v63 = vadd.f32 %v1937_v60, %v1936_v44  ;;  %v1983_v36 = vpop.f32.mrb[79].mxu1 }
 0x193   :  { %v1388_v2 = vadd.f32 %v2784_v45, %v1371_v1  ;;  %v1338_v3 = vadd.f32 %v1981_v42, %v1935_v33  ;;  %v1984_v41 = vadd.f32 %v1983_v36, %v1982_v23  ;;  %v1397_v7 = vmax.f32 %v1387_v62, 0.0 }
 0x195   :  { %v1398_v10 = vmax.f32 %v1388_v2, 0.0  ;;  %v1362_v0 = vmax.f32 %v2776_v19, %v1338_v3  ;;  %v1341_v4 = vadd.f32 %v1984_v41, %v1938_v63 }
 0x197   :  { %v1606_v6 = vpack.c.bf16 %v1398_v10, %v1397_v7  ;;  %v1372_v25 = vmax.f32 %v1352_v8, %v1362_v0  ;;  %v1363_v32 = vmax.f32 %v2778_v22, %v1341_v4 }
 0x199   :  { %1615 = vst [vmem:[%s2856_s6 + $0x18] sm:$0xff] %v1606_v6   ;;  %v1389_v34 = vadd.f32 %v2784_v45, %v1372_v25  ;;  %v1373_v15 = vmax.f32 %v1353_v16, %v1363_v32 }
 0x19b   :  { %v1390_v19 = vadd.f32 %v2784_v45, %v1373_v15  ;;  %v1399_v17 = vmax.f32 %v1389_v34, 0.0 }
 0x19d   :  { %v1400_v18 = vmax.f32 %v1390_v19, 0.0 }
 0x19f   :  { %v1611_v20 = vpack.c.bf16 %v1400_v18, %v1399_v17 }
 0x1a1   :  { %1616 = vst [vmem:[%s2856_s6 + $0x20] sm:$0xff] %v1611_v20  }

// kernel: _lambda_.6
= control target key start
LH: loop header
LB: loop body
LE: loop exit
PB: predicated region body
PF: predicated region fallthrough
CT: control target
= control target key end

     0   :  { %s3176_s4 = inlined_call_operand.vmem [shape: bf16[896,128], index: 4, kind: input, shape index: {}]   ;;  %s3177_s0 = inlined_call_operand.vmem [shape: bf16[32,896], index: 0, kind: input, shape index: {}]   ;;  %s3178_s1 = inlined_call_operand.vmem [shape: bf16[32,896], index: 1, kind: input, shape index: {}]   ;;  %s3179_s2 = inlined_call_operand.vmem [shape: bf16[32,896], index: 2, kind: input, shape index: {}]   ;;  %s3180_s3 = inlined_call_operand.vmem [shape: bf16[32,896], index: 3, kind: input, shape index: {}]   ;;  %s3181_s5 = inlined_call_operand.vmem [shape: f32[1,128], index: 5, kind: input, shape index: {}]   ;;  %s3182_s6 = inlined_call_operand.vmem [shape: bf16[32,128], index: 6, kind: output, shape index: {}]  }
   0x1   :  { %v2421_v0 = vld [vmem:[%s3176_s4 + $0x40] sm:$0xff]   ;;  %v2444_v4 = vld [vmem:[%s3176_s4 + $0x48] sm:$0xff]   ;;  %v2468_v8 = vld [vmem:[%s3176_s4 + $0x50] sm:$0xff]  }
   0x2   :  { %v2426_v1 = vld [vmem:[%s3176_s4 + $0xc0] sm:$0xff]   ;;  %1791 = vmatprep.subr.bf16.mxu0 %v2421_v0  ;;  %v2450_v5 = vld [vmem:[%s3176_s4 + $0xc8] sm:$0xff]   ;;  %v2474_v9 = vld [vmem:[%s3176_s4 + $0xd0] sm:$0xff]  }
   0x3   :  { %v2432_v2 = vld [vmem:[%s3176_s4] sm:$0xff]   ;;  %1819 = vmatprep.subr.bf16.mxu1 %v2426_v1  ;;  %v2456_v6 = vld [vmem:[%s3176_s4 + $0x8] sm:$0xff]   ;;  %v2480_v10 = vld [vmem:[%s3176_s4 + $0x10] sm:$0xff]  }
   0x4   :  { %v2438_v3 = vld [vmem:[%s3176_s4 + $0x80] sm:$0xff]   ;;  %1792 = vmatpush3.bf16.msra.mxu0 %v2432_v2  ;;  %v2462_v7 = vld [vmem:[%s3176_s4 + $0x88] sm:$0xff]   ;;  %v2486_v11 = vld [vmem:[%s3176_s4 + $0x90] sm:$0xff]  }
   0x5   :  { %1820 = vmatpush3.bf16.msra.mxu1 %v2438_v3  ;;  %1793 = vmatprep.subr.bf16.mxu0 %v2444_v4  ;;  %v2492_v12 = vld [vmem:[%s3176_s4 + $0x58] sm:$0xff]   ;;  %v2516_v16 = vld [vmem:[%s3176_s4 + $0x60] sm:$0xff]   ;;  %v2540_v20 = vld [vmem:[%s3176_s4 + $0x68] sm:$0xff]  }
   0x6   :  { %1821 = vmatprep.subr.bf16.mxu1 %v2450_v5  ;;  %v2498_v13 = vld [vmem:[%s3176_s4 + $0xd8] sm:$0xff]   ;;  %v2522_v17 = vld [vmem:[%s3176_s4 + $0xe0] sm:$0xff]   ;;  %v2546_v21 = vld [vmem:[%s3176_s4 + $0xe8] sm:$0xff]  }
   0x7   :  { %v2504_v14 = vld [vmem:[%s3176_s4 + $0x18] sm:$0xff]   ;;  %v2528_v18 = vld [vmem:[%s3176_s4 + $0x20] sm:$0xff]   ;;  %v2552_v22 = vld [vmem:[%s3176_s4 + $0x28] sm:$0xff]  }
   0x8   :  { %1794 = vmatpush3.bf16.msra.mxu0 %v2456_v6  ;;  %v2510_v15 = vld [vmem:[%s3176_s4 + $0x98] sm:$0xff]   ;;  %v2534_v19 = vld [vmem:[%s3176_s4 + $0xa0] sm:$0xff]   ;;  %v2558_v23 = vld [vmem:[%s3176_s4 + $0xa8] sm:$0xff]  }
   0x9   :  { %1822 = vmatpush3.bf16.msra.mxu1 %v2462_v7  ;;  %1795 = vmatprep.subr.bf16.mxu0 %v2468_v8  ;;  %v2564_v24 = vld [vmem:[%s3176_s4 + $0x70] sm:$0xff]   ;;  %v2588_v28 = vld [vmem:[%s3176_s4 + $0x78] sm:$0xff]   ;;  %v2281_v33 = vld [vmem:[%s3177_s0 + $0x4] ss:$28 sps:$4 sm:$0xff]  }
   0xa   :  { %1823 = vmatprep.subr.bf16.mxu1 %v2474_v9  ;;  %v2570_v25 = vld [vmem:[%s3176_s4 + $0xf0] sm:$0xff]   ;;  %v2594_v29 = vld [vmem:[%s3176_s4 + $0xf8] sm:$0xff]   ;;  %v2282_v34 = vld [vmem:[%s3177_s0 + $0x8] ss:$28 sps:$4 sm:$0xff]   ;;  %592 = vmatprep.mubr.bf16.mxu0 %v2281_v33 }
   0xb   :  { %v2576_v26 = vld [vmem:[%s3176_s4 + $0x30] sm:$0xff]   ;;  %v2600_v30 = vld [vmem:[%s3176_s4 + $0x38] sm:$0xff]   ;;  %v2284_v35 = vld [vmem:[%s3177_s0 + $0xc] ss:$28 sps:$4 sm:$0xff]  }
   0xc   :  { %1796 = vmatpush3.bf16.msra.mxu0 %v2480_v10  ;;  %v2582_v27 = vld [vmem:[%s3176_s4 + $0xb0] sm:$0xff]   ;;  %v2606_v31 = vld [vmem:[%s3176_s4 + $0xb8] sm:$0xff]   ;;  %v2625_v36 = vld [vmem:[%s3176_s4 + $0x140] sm:$0xff]   ;;  %641 = vmatprep.mubr.bf16.mxu1 %v2284_v35 }
   0xd   :  { %1824 = vmatpush3.bf16.msra.mxu1 %v2486_v11  ;;  %1797 = vmatprep.subr.bf16.mxu0 %v2492_v12  ;;  %v2279_v32 = vld [vmem:[%s3177_s0] ss:$28 sps:$4 sm:$0xff]   ;;  %v2642_v39 = vld [vmem:[%s3176_s4 + $0x148] sm:$0xff]   ;;  %v2661_v42 = vld [vmem:[%s3176_s4 + $0x150] sm:$0xff]  }
   0xe   :  { %1825 = vmatprep.subr.bf16.mxu1 %v2498_v13  ;;  %v2630_v37 = vld [vmem:[%s3176_s4 + $0x180] sm:$0xff]   ;;  %v2649_v40 = vld [vmem:[%s3176_s4 + $0x188] sm:$0xff]   ;;  %v2666_v43 = vld [vmem:[%s3176_s4 + $0x190] sm:$0xff]  }
   0xf   :  { %v2636_v38 = vld [vmem:[%s3176_s4 + $0x100] sm:$0xff]   ;;  %v2655_v41 = vld [vmem:[%s3176_s4 + $0x108] sm:$0xff]   ;;  %v2673_v44 = vld [vmem:[%s3176_s4 + $0x110] sm:$0xff]  }
  0x10   :  { %1798 = vmatpush3.bf16.msra.mxu0 %v2504_v14  ;;  %v2680_v45 = vld [vmem:[%s3176_s4 + $0x158] sm:$0xff]   ;;  %v2697_v48 = vld [vmem:[%s3176_s4 + $0x160] sm:$0xff]   ;;  %v2714_v51 = vld [vmem:[%s3176_s4 + $0x168] sm:$0xff]  }
  0x11   :  { %1826 = vmatpush3.bf16.msra.mxu1 %v2510_v15  ;;  %1799 = vmatprep.subr.bf16.mxu0 %v2516_v16  ;;  %v2685_v46 = vld [vmem:[%s3176_s4 + $0x198] sm:$0xff]   ;;  %v2704_v49 = vld [vmem:[%s3176_s4 + $0x1a0] sm:$0xff]   ;;  %v2721_v52 = vld [vmem:[%s3176_s4 + $0x1a8] sm:$0xff]  }
  0x12   :  { %1827 = vmatprep.subr.bf16.mxu1 %v2522_v17  ;;  %v2690_v47 = vld [vmem:[%s3176_s4 + $0x118] sm:$0xff]   ;;  %v2709_v50 = vld [vmem:[%s3176_s4 + $0x120] sm:$0xff]   ;;  %v2734_v55 = vld [vmem:[%s3176_s4 + $0x128] sm:$0xff]  }
  0x13   :  { %v2302_v53 = vld [vmem:[%s3177_s0 + $0x3c] ss:$28 sps:$4 sm:$0xff]   ;;  %v2304_v54 = vld [vmem:[%s3177_s0 + $0x44] ss:$28 sps:$4 sm:$0xff]   ;;  %v2749_v58 = vld [vmem:[%s3176_s4 + $0x170] sm:$0xff]  }
  0x14   :  { %1800 = vmatpush3.bf16.msra.mxu0 %v2528_v18  ;;  %v2307_v56 = vld [vmem:[%s3177_s0 + $0x38] ss:$28 sps:$4 sm:$0xff]   ;;  %v2308_v57 = vld [vmem:[%s3177_s0 + $0x40] ss:$28 sps:$4 sm:$0xff]   ;;  %v2319_v35 = vld [vmem:[%s3177_s0 + $0x50] ss:$28 sps:$4 sm:$0xff]  }
  0x15   :  { %1828 = vmatpush3.bf16.msra.mxu1 %v2534_v19  ;;  %1801 = vmatprep.subr.bf16.mxu0 %v2540_v20  ;;  %v2754_v59 = vld [vmem:[%s3176_s4 + $0x1b0] sm:$0xff]   ;;  %v2766_v61 = vld [vmem:[%s3176_s4 + $0x178] sm:$0xff]  }
  0x16   :  { %1829 = vmatprep.subr.bf16.mxu1 %v2546_v21  ;;  %v2759_v60 = vld [vmem:[%s3176_s4 + $0x130] sm:$0xff]   ;;  %v2773_v62 = vld [vmem:[%s3176_s4 + $0x1b8] sm:$0xff]  }
  0x17   :  { %v2778_v63 = vld [vmem:[%s3176_s4 + $0x138] sm:$0xff]  }
  0x18   :  { %1802 = vmatpush3.bf16.msra.mxu0 %v2552_v22  ;;  %v2318_v33 = vld [vmem:[%s3177_s0 + $0x18] ss:$28 sps:$4 sm:$0xff]  }
  0x19   :  { %1830 = vmatpush3.bf16.msra.mxu1 %v2558_v23  ;;  %1803 = vmatprep.subr.bf16.mxu0 %v2564_v24 }
  0x1a   :  { %1831 = vmatprep.subr.bf16.mxu1 %v2570_v25 }
  0x1c   :  { %1804 = vmatpush3.bf16.msra.mxu0 %v2576_v26 }
  0x1d   :  { %1832 = vmatpush3.bf16.msra.mxu1 %v2582_v27  ;;  %1805 = vmatprep.subr.bf16.mxu0 %v2588_v28 }
  0x1e   :  { %1833 = vmatprep.subr.bf16.mxu1 %v2594_v29 }
  0x20   :  { %1806 = vmatpush3.bf16.msra.mxu0 %v2600_v30 }
  0x21   :  { %1834 = vmatpush3.bf16.msra.mxu1 %v2606_v31  ;;  %1847 = vmatprep.subr.bf16.mxu0 %v2625_v36 }
  0x22   :  { %2167 = vmatprep.subr.bf16.mxu1 %v2630_v37 }
  0x23   :  { %593 = vmatmul.mubr.bf16.vlgmr.msra.gmra.mrb[0].mxu0 %v2279_v32  ;;  %v2317_v32 = vld [vmem:[%s3177_s0 + $0x14] ss:$28 sps:$4 sm:$0xff]  }
  0x24   :  { %642 = vmatmul.mubr.bf16.vlgmr.msra.gmra.mrb[0].mxu1 %v2282_v34  ;;  %1848 = vmatpush3.bf16.msra.mxu0 %v2636_v38  ;;  %v2315_v34 = vld [vmem:[%s3177_s0 + $0x10] ss:$28 sps:$4 sm:$0xff]  }
  0x25   :  { %2168 = vmatpush3.bf16.msra.mxu1 %v2630_v37  ;;  %1849 = vmatprep.subr.bf16.mxu0 %v2642_v39 }
  0x26   :  { %2169 = vmatprep.subr.bf16.mxu1 %v2649_v40  ;;  %600 = vmatprep.mubr.bf16.mxu0 %v2302_v53  ;;  %v2320_v53 = vld [vmem:[%s3177_s0 + $0x4c] ss:$28 sps:$4 sm:$0xff]  }
  0x27   :  { %649 = vmatprep.mubr.bf16.mxu1 %v2304_v54  ;;  %v2328_v54 = vld [vmem:[%s3178_s1 + $0xc] ss:$28 sps:$4 sm:$0xff]  }
  0x28   :  { %1850 = vmatpush3.bf16.msra.mxu0 %v2655_v41 }
  0x29   :  { %2170 = vmatpush3.bf16.msra.mxu1 %v2649_v40  ;;  %1851 = vmatprep.subr.bf16.mxu0 %v2661_v42 }
  0x2a   :  { %2171 = vmatprep.subr.bf16.mxu1 %v2666_v43 }
  0x2b   :  { %601 = vmatmul.mubr.bf16.gmra.mrb[4].mxu0 %v2307_v56  ;;  %v2322_v56 = vld [vmem:[%s3177_s0 + $0x48] ss:$28 sps:$4 sm:$0xff]  }
  0x2c   :  { %1852 = vmatpush3.bf16.msra.mxu0 %v2673_v44  ;;  %650 = vmatmul.mubr.bf16.gmra.mrb[4].mxu1 %v2308_v57  ;;  %v2325_v57 = vld [vmem:[%s3178_s1 + $0x4] ss:$28 sps:$4 sm:$0xff]  }
  0x2d   :  { %2172 = vmatpush3.bf16.msra.mxu1 %v2666_v43  ;;  %1853 = vmatprep.subr.bf16.mxu0 %v2680_v45 }
  0x2e   :  { %2173 = vmatprep.subr.bf16.mxu1 %v2685_v46  ;;  %690 = vmatprep.mubr.bf16.mxu0 %v2317_v32  ;;  %v2323_v32 = vld [vmem:[%s3178_s1] ss:$28 sps:$4 sm:$0xff]  }
  0x2f   :  { %2183 = vmatprep.mubr.bf16.mxu1 %v2318_v33  ;;  %v2326_v33 = vld [vmem:[%s3178_s1 + $0x8] ss:$28 sps:$4 sm:$0xff]  }
  0x30   :  { %1854 = vmatpush3.bf16.msra.mxu0 %v2690_v47 }
  0x31   :  { %2174 = vmatpush3.bf16.msra.mxu1 %v2685_v46  ;;  %1855 = vmatprep.subr.bf16.mxu0 %v2697_v48 }
  0x32   :  { %2175 = vmatprep.subr.bf16.mxu1 %v2704_v49 }
  0x34   :  { %1856 = vmatpush3.bf16.msra.mxu0 %v2709_v50 }
  0x35   :  { %2176 = vmatpush3.bf16.msra.mxu1 %v2704_v49  ;;  %1857 = vmatprep.subr.bf16.mxu0 %v2714_v51 }
  0x36   :  { %2177 = vmatprep.subr.bf16.mxu1 %v2721_v52 }
  0x38   :  { %1858 = vmatpush3.bf16.msra.mxu0 %v2734_v55 }
  0x39   :  { %2178 = vmatpush3.bf16.msra.mxu1 %v2721_v52  ;;  %1859 = vmatprep.subr.bf16.mxu0 %v2749_v58 }
  0x3a   :  { %2179 = vmatprep.subr.bf16.mxu1 %v2754_v59 }
  0x3c   :  { %1860 = vmatpush3.bf16.msra.mxu0 %v2759_v60 }
  0x3d   :  { %2180 = vmatpush3.bf16.msra.mxu1 %v2754_v59  ;;  %1861 = vmatprep.subr.bf16.mxu0 %v2766_v61 }
  0x3e   :  { %2181 = vmatprep.subr.bf16.mxu1 %v2773_v62 }
  0x40   :  { %1862 = vmatpush3.bf16.msra.mxu0 %v2778_v63 }
  0x41   :  { %2182 = vmatpush3.bf16.msra.mxu1 %v2773_v62  ;;  %1885 = vmatprep.subr.bf16.mxu0 %v2421_v0 }
  0x42   :  { %1913 = vmatprep.subr.bf16.mxu1 %v2426_v1 }
  0x43   :  { %691 = vmatmul.mubr.bf16.vlgmr.msra.gmra.mrb[8].mxu0 %v2315_v34  ;;  %v2329_v34 = vld [vmem:[%s3178_s1 + $0x3c] ss:$28 sps:$4 sm:$0xff]  }
  0x44   :  { %2184 = vmatmul.mubr.bf16.vlgmr.msra.gmra.mrb[8].mxu1 %v2319_v35  ;;  %1886 = vmatpush3.bf16.msra.mxu0 %v2432_v2  ;;  %v2331_v35 = vld [vmem:[%s3178_s1 + $0x44] ss:$28 sps:$4 sm:$0xff]  }
  0x45   :  { %1914 = vmatpush3.bf16.msra.mxu1 %v2438_v3  ;;  %1887 = vmatprep.subr.bf16.mxu0 %v2444_v4 }
  0x46   :  { %1915 = vmatprep.subr.bf16.mxu1 %v2450_v5  ;;  %698 = vmatprep.mubr.bf16.mxu0 %v2320_v53  ;;  %v2333_v53 = vld [vmem:[%s3178_s1 + $0x38] ss:$28 sps:$4 sm:$0xff]  }
  0x47   :  { %925 = vmatprep.mubr.bf16.mxu1 %v2328_v54  ;;  %v2334_v54 = vld [vmem:[%s3178_s1 + $0x40] ss:$28 sps:$4 sm:$0xff]  }
  0x48   :  { %1888 = vmatpush3.bf16.msra.mxu0 %v2456_v6 }
  0x49   :  { %1916 = vmatpush3.bf16.msra.mxu1 %v2462_v7  ;;  %1889 = vmatprep.subr.bf16.mxu0 %v2468_v8 }
  0x4a   :  { %1917 = vmatprep.subr.bf16.mxu1 %v2474_v9 }
  0x4b   :  { %699 = vmatmul.mubr.bf16.gmra.mrb[12].mxu0 %v2322_v56  ;;  %v2337_v56 = vld [vmem:[%s3178_s1 + $0x14] ss:$28 sps:$4 sm:$0xff]  }
  0x4c   :  { %1890 = vmatpush3.bf16.msra.mxu0 %v2480_v10  ;;  %876 = vmatprep.mubr.bf16.mxu0 %v2325_v57  ;;  %v2338_v57 = vld [vmem:[%s3178_s1 + $0x18] ss:$28 sps:$4 sm:$0xff]  }
  0x4d   :  { %1918 = vmatpush3.bf16.msra.mxu1 %v2486_v11  ;;  %1891 = vmatprep.subr.bf16.mxu0 %v2492_v12 }
  0x4e   :  { %1919 = vmatprep.subr.bf16.mxu1 %v2498_v13 }
  0x50   :  { %1892 = vmatpush3.bf16.msra.mxu0 %v2504_v14 }
  0x51   :  { %1920 = vmatpush3.bf16.msra.mxu1 %v2510_v15  ;;  %1893 = vmatprep.subr.bf16.mxu0 %v2516_v16 }
  0x52   :  { %1921 = vmatprep.subr.bf16.mxu1 %v2522_v17 }
  0x54   :  { %1894 = vmatpush3.bf16.msra.mxu0 %v2528_v18 }
  0x55   :  { %1922 = vmatpush3.bf16.msra.mxu1 %v2534_v19  ;;  %1895 = vmatprep.subr.bf16.mxu0 %v2540_v20 }
  0x56   :  { %1923 = vmatprep.subr.bf16.mxu1 %v2546_v21 }
  0x58   :  { %1896 = vmatpush3.bf16.msra.mxu0 %v2552_v22 }
  0x59   :  { %1924 = vmatpush3.bf16.msra.mxu1 %v2558_v23  ;;  %1897 = vmatprep.subr.bf16.mxu0 %v2564_v24 }
  0x5a   :  { %1925 = vmatprep.subr.bf16.mxu1 %v2570_v25 }
  0x5c   :  { %1898 = vmatpush3.bf16.msra.mxu0 %v2576_v26 }
  0x5d   :  { %1926 = vmatpush3.bf16.msra.mxu1 %v2582_v27  ;;  %1899 = vmatprep.subr.bf16.mxu0 %v2588_v28 }
  0x5e   :  { %1927 = vmatprep.subr.bf16.mxu1 %v2594_v29 }
  0x60   :  { %1900 = vmatpush3.bf16.msra.mxu0 %v2600_v30 }
  0x61   :  { %1928 = vmatpush3.bf16.msra.mxu1 %v2606_v31  ;;  %1941 = vmatprep.subr.bf16.mxu0 %v2625_v36 }
  0x62   :  { %2187 = vmatprep.subr.bf16.mxu1 %v2630_v37 }
  0x63   :  { %877 = vmatmul.mubr.bf16.vlgmr.msra.gmra.mrb[16].mxu0 %v2323_v32  ;;  %v2335_v32 = vld [vmem:[%s3178_s1 + $0x10] ss:$28 sps:$4 sm:$0xff]  }
  0x64   :  { %926 = vmatmul.mubr.bf16.vlgmr.msra.gmra.mrb[12].mxu1 %v2326_v33  ;;  %1942 = vmatpush3.bf16.msra.mxu0 %v2636_v38  ;;  %v2339_v33 = vld [vmem:[%s3178_s1 + $0x50] ss:$28 sps:$4 sm:$0xff]  }
  0x65   :  { %2188 = vmatpush3.bf16.msra.mxu1 %v2630_v37  ;;  %1943 = vmatprep.subr.bf16.mxu0 %v2642_v39 }
  0x66   :  { %2189 = vmatprep.subr.bf16.mxu1 %v2649_v40  ;;  %884 = vmatprep.mubr.bf16.mxu0 %v2329_v34  ;;  %v2340_v34 = vld [vmem:[%s3178_s1 + $0x4c] ss:$28 sps:$4 sm:$0xff]  }
  0x67   :  { %933 = vmatprep.mubr.bf16.mxu1 %v2331_v35  ;;  %v2348_v35 = vld [vmem:[%s3179_s2 + $0xc] ss:$28 sps:$4 sm:$0xff]  }
  0x68   :  { %1944 = vmatpush3.bf16.msra.mxu0 %v2655_v41 }
  0x69   :  { %2190 = vmatpush3.bf16.msra.mxu1 %v2649_v40  ;;  %1945 = vmatprep.subr.bf16.mxu0 %v2661_v42 }
  0x6a   :  { %2191 = vmatprep.subr.bf16.mxu1 %v2666_v43 }
  0x6b   :  { %885 = vmatmul.mubr.bf16.gmra.mrb[20].mxu0 %v2333_v53  ;;  %v2342_v53 = vld [vmem:[%s3178_s1 + $0x48] ss:$28 sps:$4 sm:$0xff]  }
  0x6c   :  { %934 = vmatmul.mubr.bf16.gmra.mrb[16].mxu1 %v2334_v54  ;;  %1946 = vmatpush3.bf16.msra.mxu0 %v2673_v44  ;;  %v2345_v54 = vld [vmem:[%s3179_s2 + $0x4] ss:$28 sps:$4 sm:$0xff]  }
  0x6d   :  { %2192 = vmatpush3.bf16.msra.mxu1 %v2666_v43  ;;  %1947 = vmatprep.subr.bf16.mxu0 %v2680_v45 }
  0x6e   :  { %2193 = vmatprep.subr.bf16.mxu1 %v2685_v46  ;;  %974 = vmatprep.mubr.bf16.mxu0 %v2337_v56  ;;  %v2343_v56 = vld [vmem:[%s3179_s2] ss:$28 sps:$4 sm:$0xff]  }
  0x6f   :  { %2203 = vmatprep.mubr.bf16.mxu1 %v2338_v57  ;;  %v2346_v57 = vld [vmem:[%s3179_s2 + $0x8] ss:$28 sps:$4 sm:$0xff]  }
  0x70   :  { %1948 = vmatpush3.bf16.msra.mxu0 %v2690_v47 }
  0x71   :  { %2194 = vmatpush3.bf16.msra.mxu1 %v2685_v46  ;;  %1949 = vmatprep.subr.bf16.mxu0 %v2697_v48 }
  0x72   :  { %2195 = vmatprep.subr.bf16.mxu1 %v2704_v49 }
  0x74   :  { %1950 = vmatpush3.bf16.msra.mxu0 %v2709_v50 }
  0x75   :  { %2196 = vmatpush3.bf16.msra.mxu1 %v2704_v49  ;;  %1951 = vmatprep.subr.bf16.mxu0 %v2714_v51 }
  0x76   :  { %2197 = vmatprep.subr.bf16.mxu1 %v2721_v52 }
  0x78   :  { %1952 = vmatpush3.bf16.msra.mxu0 %v2734_v55 }
  0x79   :  { %2198 = vmatpush3.bf16.msra.mxu1 %v2721_v52  ;;  %1953 = vmatprep.subr.bf16.mxu0 %v2749_v58 }
  0x7a   :  { %2199 = vmatprep.subr.bf16.mxu1 %v2754_v59 }
  0x7c   :  { %1954 = vmatpush3.bf16.msra.mxu0 %v2759_v60 }
  0x7d   :  { %2200 = vmatpush3.bf16.msra.mxu1 %v2754_v59  ;;  %1955 = vmatprep.subr.bf16.mxu0 %v2766_v61 }
  0x7e   :  { %2201 = vmatprep.subr.bf16.mxu1 %v2773_v62 }
  0x80   :  { %1956 = vmatpush3.bf16.msra.mxu0 %v2778_v63 }
  0x81   :  { %2202 = vmatpush3.bf16.msra.mxu1 %v2773_v62  ;;  %1979 = vmatprep.subr.bf16.mxu0 %v2421_v0 }
  0x82   :  { %2007 = vmatprep.subr.bf16.mxu1 %v2426_v1 }
  0x83   :  { %975 = vmatmul.mubr.bf16.vlgmr.msra.gmra.mrb[24].mxu0 %v2335_v32  ;;  %v2349_v32 = vld [vmem:[%s3179_s2 + $0x3c] ss:$28 sps:$4 sm:$0xff]  }
  0x84   :  { %2204 = vmatmul.mubr.bf16.vlgmr.msra.gmra.mrb[20].mxu1 %v2339_v33  ;;  %1980 = vmatpush3.bf16.msra.mxu0 %v2432_v2  ;;  %v2351_v33 = vld [vmem:[%s3179_s2 + $0x44] ss:$28 sps:$4 sm:$0xff]  }
  0x85   :  { %2008 = vmatpush3.bf16.msra.mxu1 %v2438_v3  ;;  %1981 = vmatprep.subr.bf16.mxu0 %v2444_v4 }
  0x86   :  { %2009 = vmatprep.subr.bf16.mxu1 %v2450_v5  ;;  %982 = vmatprep.mubr.bf16.mxu0 %v2340_v34  ;;  %v2353_v34 = vld [vmem:[%s3179_s2 + $0x38] ss:$28 sps:$4 sm:$0xff]  }
  0x87   :  { %1209 = vmatprep.mubr.bf16.mxu1 %v2348_v35  ;;  %v2354_v35 = vld [vmem:[%s3179_s2 + $0x40] ss:$28 sps:$4 sm:$0xff]  }
  0x88   :  { %1982 = vmatpush3.bf16.msra.mxu0 %v2456_v6 }
  0x89   :  { %2010 = vmatpush3.bf16.msra.mxu1 %v2462_v7  ;;  %1983 = vmatprep.subr.bf16.mxu0 %v2468_v8 }
  0x8a   :  { %2011 = vmatprep.subr.bf16.mxu1 %v2474_v9 }
  0x8b   :  { %983 = vmatmul.mubr.bf16.gmra.mrb[28].mxu0 %v2342_v53  ;;  %v2357_v53 = vld [vmem:[%s3179_s2 + $0x14] ss:$28 sps:$4 sm:$0xff]  }
  0x8c   :  { %1984 = vmatpush3.bf16.msra.mxu0 %v2480_v10  ;;  %1160 = vmatprep.mubr.bf16.mxu0 %v2345_v54  ;;  %v2358_v54 = vld [vmem:[%s3179_s2 + $0x18] ss:$28 sps:$4 sm:$0xff]  }
  0x8d   :  { %2012 = vmatpush3.bf16.msra.mxu1 %v2486_v11  ;;  %1985 = vmatprep.subr.bf16.mxu0 %v2492_v12 }
  0x8e   :  { %2013 = vmatprep.subr.bf16.mxu1 %v2498_v13 }
  0x90   :  { %1986 = vmatpush3.bf16.msra.mxu0 %v2504_v14 }
  0x91   :  { %2014 = vmatpush3.bf16.msra.mxu1 %v2510_v15  ;;  %1987 = vmatprep.subr.bf16.mxu0 %v2516_v16 }
  0x92   :  { %2015 = vmatprep.subr.bf16.mxu1 %v2522_v17 }
  0x94   :  { %1988 = vmatpush3.bf16.msra.mxu0 %v2528_v18 }
  0x95   :  { %2016 = vmatpush3.bf16.msra.mxu1 %v2534_v19  ;;  %1989 = vmatprep.subr.bf16.mxu0 %v2540_v20 }
  0x96   :  { %2017 = vmatprep.subr.bf16.mxu1 %v2546_v21 }
  0x98   :  { %1990 = vmatpush3.bf16.msra.mxu0 %v2552_v22 }
  0x99   :  { %2018 = vmatpush3.bf16.msra.mxu1 %v2558_v23  ;;  %1991 = vmatprep.subr.bf16.mxu0 %v2564_v24 }
  0x9a   :  { %2019 = vmatprep.subr.bf16.mxu1 %v2570_v25 }
  0x9c   :  { %1992 = vmatpush3.bf16.msra.mxu0 %v2576_v26 }
  0x9d   :  { %2020 = vmatpush3.bf16.msra.mxu1 %v2582_v27  ;;  %1993 = vmatprep.subr.bf16.mxu0 %v2588_v28 }
  0x9e   :  { %2021 = vmatprep.subr.bf16.mxu1 %v2594_v29 }
  0xa0   :  { %1994 = vmatpush3.bf16.msra.mxu0 %v2600_v30 }
  0xa1   :  { %2022 = vmatpush3.bf16.msra.mxu1 %v2606_v31  ;;  %2035 = vmatprep.subr.bf16.mxu0 %v2625_v36 }
  0xa2   :  { %2207 = vmatprep.subr.bf16.mxu1 %v2630_v37 }
  0xa3   :  { %1161 = vmatmul.mubr.bf16.vlgmr.msra.gmra.mrb[32].mxu0 %v2343_v56  ;;  %v2355_v56 = vld [vmem:[%s3179_s2 + $0x10] ss:$28 sps:$4 sm:$0xff]  }
  0xa4   :  { %1210 = vmatmul.mubr.bf16.vlgmr.msra.gmra.mrb[24].mxu1 %v2346_v57  ;;  %2036 = vmatpush3.bf16.msra.mxu0 %v2636_v38  ;;  %v2359_v57 = vld [vmem:[%s3179_s2 + $0x50] ss:$28 sps:$4 sm:$0xff]  }
  0xa5   :  { %2208 = vmatpush3.bf16.msra.mxu1 %v2630_v37  ;;  %2037 = vmatprep.subr.bf16.mxu0 %v2642_v39 }
  0xa6   :  { %2209 = vmatprep.subr.bf16.mxu1 %v2649_v40  ;;  %1168 = vmatprep.mubr.bf16.mxu0 %v2349_v32  ;;  %v2360_v32 = vld [vmem:[%s3179_s2 + $0x4c] ss:$28 sps:$4 sm:$0xff]  }
  0xa7   :  { %1217 = vmatprep.mubr.bf16.mxu1 %v2351_v33  ;;  %v2368_v33 = vld [vmem:[%s3180_s3 + $0xc] ss:$28 sps:$4 sm:$0xff]  }
  0xa8   :  { %2038 = vmatpush3.bf16.msra.mxu0 %v2655_v41 }
  0xa9   :  { %2210 = vmatpush3.bf16.msra.mxu1 %v2649_v40  ;;  %2039 = vmatprep.subr.bf16.mxu0 %v2661_v42 }
  0xaa   :  { %2211 = vmatprep.subr.bf16.mxu1 %v2666_v43 }
  0xab   :  { %1169 = vmatmul.mubr.bf16.gmra.mrb[36].mxu0 %v2353_v34 }
  0xac   :  { %1218 = vmatmul.mubr.bf16.gmra.mrb[28].mxu1 %v2354_v35  ;;  %2040 = vmatpush3.bf16.msra.mxu0 %v2673_v44 }
  0xad   :  { %2212 = vmatpush3.bf16.msra.mxu1 %v2666_v43  ;;  %2041 = vmatprep.subr.bf16.mxu0 %v2680_v45 }
  0xae   :  { %2213 = vmatprep.subr.bf16.mxu1 %v2685_v46  ;;  %1258 = vmatprep.mubr.bf16.mxu0 %v2357_v53 }
  0xaf   :  { %2223 = vmatprep.mubr.bf16.mxu1 %v2358_v54 }
  0xb0   :  { %2042 = vmatpush3.bf16.msra.mxu0 %v2690_v47 }
  0xb1   :  { %2214 = vmatpush3.bf16.msra.mxu1 %v2685_v46  ;;  %2043 = vmatprep.subr.bf16.mxu0 %v2697_v48 }
  0xb2   :  { %2215 = vmatprep.subr.bf16.mxu1 %v2704_v49 }
  0xb4   :  { %2044 = vmatpush3.bf16.msra.mxu0 %v2709_v50 }
  0xb5   :  { %2216 = vmatpush3.bf16.msra.mxu1 %v2704_v49  ;;  %2045 = vmatprep.subr.bf16.mxu0 %v2714_v51 }
  0xb6   :  { %2217 = vmatprep.subr.bf16.mxu1 %v2721_v52 }
  0xb8   :  { %2046 = vmatpush3.bf16.msra.mxu0 %v2734_v55 }
  0xb9   :  { %2218 = vmatpush3.bf16.msra.mxu1 %v2721_v52  ;;  %2047 = vmatprep.subr.bf16.mxu0 %v2749_v58 }
  0xba   :  { %2219 = vmatprep.subr.bf16.mxu1 %v2754_v59 }
  0xbc   :  { %2048 = vmatpush3.bf16.msra.mxu0 %v2759_v60 }
  0xbd   :  { %2220 = vmatpush3.bf16.msra.mxu1 %v2754_v59  ;;  %2049 = vmatprep.subr.bf16.mxu0 %v2766_v61 }
  0xbe   :  { %2221 = vmatprep.subr.bf16.mxu1 %v2773_v62 }
  0xc0   :  { %2050 = vmatpush3.bf16.msra.mxu0 %v2778_v63 }
  0xc1   :  { %2222 = vmatpush3.bf16.msra.mxu1 %v2773_v62  ;;  %2073 = vmatprep.subr.bf16.mxu0 %v2421_v0  ;;  %v2362_v0 = vld [vmem:[%s3179_s2 + $0x48] ss:$28 sps:$4 sm:$0xff]  }
  0xc2   :  { %2101 = vmatprep.subr.bf16.mxu1 %v2426_v1  ;;  %v2365_v1 = vld [vmem:[%s3180_s3 + $0x4] ss:$28 sps:$4 sm:$0xff]  }
  0xc3   :  { %1259 = vmatmul.mubr.bf16.vlgmr.msra.gmra.mrb[40].mxu0 %v2355_v56 }
  0xc4   :  { %2224 = vmatmul.mubr.bf16.vlgmr.msra.gmra.mrb[32].mxu1 %v2359_v57  ;;  %2074 = vmatpush3.bf16.msra.mxu0 %v2432_v2  ;;  %v2363_v2 = vld [vmem:[%s3180_s3] ss:$28 sps:$4 sm:$0xff]  }
  0xc5   :  { %2102 = vmatpush3.bf16.msra.mxu1 %v2438_v3  ;;  %2075 = vmatprep.subr.bf16.mxu0 %v2444_v4  ;;  %v2366_v3 = vld [vmem:[%s3180_s3 + $0x8] ss:$28 sps:$4 sm:$0xff]   ;;  %v2369_v4 = vld [vmem:[%s3180_s3 + $0x3c] ss:$28 sps:$4 sm:$0xff]  }
  0xc6   :  { %2103 = vmatprep.subr.bf16.mxu1 %v2450_v5  ;;  %1266 = vmatprep.mubr.bf16.mxu0 %v2360_v32  ;;  %v2371_v5 = vld [vmem:[%s3180_s3 + $0x44] ss:$28 sps:$4 sm:$0xff]  }
  0xc7   :  { %1493 = vmatprep.mubr.bf16.mxu1 %v2368_v33 }
  0xc8   :  { %2076 = vmatpush3.bf16.msra.mxu0 %v2456_v6  ;;  %v2373_v6 = vld [vmem:[%s3180_s3 + $0x38] ss:$28 sps:$4 sm:$0xff]  }
  0xc9   :  { %2104 = vmatpush3.bf16.msra.mxu1 %v2462_v7  ;;  %2077 = vmatprep.subr.bf16.mxu0 %v2468_v8  ;;  %v2374_v7 = vld [vmem:[%s3180_s3 + $0x40] ss:$28 sps:$4 sm:$0xff]   ;;  %v2377_v8 = vld [vmem:[%s3180_s3 + $0x14] ss:$28 sps:$4 sm:$0xff]  }
  0xca   :  { %2105 = vmatprep.subr.bf16.mxu1 %v2474_v9  ;;  %v2378_v9 = vld [vmem:[%s3180_s3 + $0x18] ss:$28 sps:$4 sm:$0xff]  }
  0xcb   :  { %1267 = vmatmul.mubr.bf16.gmra.mrb[44].mxu0 %v2362_v0 }
  0xcc   :  { %2078 = vmatpush3.bf16.msra.mxu0 %v2480_v10  ;;  %1444 = vmatprep.mubr.bf16.mxu0 %v2365_v1 }
  0xcd   :  { %2106 = vmatpush3.bf16.msra.mxu1 %v2486_v11  ;;  %2079 = vmatprep.subr.bf16.mxu0 %v2492_v12 }
  0xce   :  { %2107 = vmatprep.subr.bf16.mxu1 %v2498_v13 }
  0xd0   :  { %2080 = vmatpush3.bf16.msra.mxu0 %v2504_v14 }
  0xd1   :  { %2108 = vmatpush3.bf16.msra.mxu1 %v2510_v15  ;;  %2081 = vmatprep.subr.bf16.mxu0 %v2516_v16 }
  0xd2   :  { %2109 = vmatprep.subr.bf16.mxu1 %v2522_v17 }
  0xd4   :  { %2082 = vmatpush3.bf16.msra.mxu0 %v2528_v18 }
  0xd5   :  { %2110 = vmatpush3.bf16.msra.mxu1 %v2534_v19  ;;  %2083 = vmatprep.subr.bf16.mxu0 %v2540_v20 }
  0xd6   :  { %2111 = vmatprep.subr.bf16.mxu1 %v2546_v21 }
  0xd8   :  { %2084 = vmatpush3.bf16.msra.mxu0 %v2552_v22 }
  0xd9   :  { %2112 = vmatpush3.bf16.msra.mxu1 %v2558_v23  ;;  %2085 = vmatprep.subr.bf16.mxu0 %v2564_v24  ;;  %v2375_v24 = vld [vmem:[%s3180_s3 + $0x10] ss:$28 sps:$4 sm:$0xff]  }
  0xda   :  { %2113 = vmatprep.subr.bf16.mxu1 %v2570_v25  ;;  %v2379_v25 = vld [vmem:[%s3180_s3 + $0x50] ss:$28 sps:$4 sm:$0xff]  }
  0xdc   :  { %2086 = vmatpush3.bf16.msra.mxu0 %v2576_v26  ;;  %v2380_v26 = vld [vmem:[%s3180_s3 + $0x4c] ss:$28 sps:$4 sm:$0xff]  }
  0xdd   :  { %2114 = vmatpush3.bf16.msra.mxu1 %v2582_v27  ;;  %2087 = vmatprep.subr.bf16.mxu0 %v2588_v28  ;;  %v2382_v27 = vld [vmem:[%s3180_s3 + $0x48] ss:$28 sps:$4 sm:$0xff]  }
  0xde   :  { %2115 = vmatprep.subr.bf16.mxu1 %v2594_v29 }
  0xe0   :  { %2088 = vmatpush3.bf16.msra.mxu0 %v2600_v30 }
  0xe1   :  { %2116 = vmatpush3.bf16.msra.mxu1 %v2606_v31  ;;  %2129 = vmatprep.subr.bf16.mxu0 %v2625_v36 }
  0xe2   :  { %2227 = vmatprep.subr.bf16.mxu1 %v2630_v37 }
  0xe3   :  { %1445 = vmatmul.mubr.bf16.vlgmr.msra.gmra.mrb[48].mxu0 %v2363_v2 }
  0xe4   :  { %1494 = vmatmul.mubr.bf16.vlgmr.msra.gmra.mrb[36].mxu1 %v2366_v3  ;;  %2130 = vmatpush3.bf16.msra.mxu0 %v2636_v38 }
  0xe5   :  { %2228 = vmatpush3.bf16.msra.mxu1 %v2630_v37  ;;  %2131 = vmatprep.subr.bf16.mxu0 %v2642_v39 }
  0xe6   :  { %2229 = vmatprep.subr.bf16.mxu1 %v2649_v40  ;;  %1452 = vmatprep.mubr.bf16.mxu0 %v2369_v4 }
  0xe7   :  { %1501 = vmatprep.mubr.bf16.mxu1 %v2371_v5 }
  0xe8   :  { %2132 = vmatpush3.bf16.msra.mxu0 %v2655_v41 }
  0xe9   :  { %2230 = vmatpush3.bf16.msra.mxu1 %v2649_v40  ;;  %2133 = vmatprep.subr.bf16.mxu0 %v2661_v42 }
  0xea   :  { %2231 = vmatprep.subr.bf16.mxu1 %v2666_v43 }
  0xeb   :  { %1453 = vmatmul.mubr.bf16.gmra.mrb[52].mxu0 %v2373_v6 }
  0xec   :  { %1502 = vmatmul.mubr.bf16.gmra.mrb[40].mxu1 %v2374_v7  ;;  %2134 = vmatpush3.bf16.msra.mxu0 %v2673_v44 }
  0xed   :  { %2232 = vmatpush3.bf16.msra.mxu1 %v2666_v43  ;;  %2135 = vmatprep.subr.bf16.mxu0 %v2680_v45 }
  0xee   :  { %2233 = vmatprep.subr.bf16.mxu1 %v2685_v46  ;;  %1542 = vmatprep.mubr.bf16.mxu0 %v2377_v8 }
  0xef   :  { %2243 = vmatprep.mubr.bf16.mxu1 %v2378_v9 }
  0xf0   :  { %2136 = vmatpush3.bf16.msra.mxu0 %v2690_v47 }
  0xf1   :  { %2234 = vmatpush3.bf16.msra.mxu1 %v2685_v46  ;;  %2137 = vmatprep.subr.bf16.mxu0 %v2697_v48 }
  0xf2   :  { %2235 = vmatprep.subr.bf16.mxu1 %v2704_v49 }
  0xf4   :  { %2138 = vmatpush3.bf16.msra.mxu0 %v2709_v50 }
  0xf5   :  { %2236 = vmatpush3.bf16.msra.mxu1 %v2704_v49  ;;  %2139 = vmatprep.subr.bf16.mxu0 %v2714_v51 }
  0xf6   :  { %v1807_v10 = vpop.f32.mrb[0].mxu0  ;;  %2237 = vmatprep.subr.bf16.mxu1 %v2721_v52 }
  0xf7   :  { %v1835_v11 = vpop.f32.mrb[0].mxu1  ;;  %v1808_v12 = vpop.f32.mrb[1].mxu0 }
  0xf8   :  { %v1809_v13 = vadd.f32 %v1808_v12, %v1807_v10  ;;  %v1836_v14 = vpop.f32.mrb[1].mxu1  ;;  %v1810_v15 = vpop.f32.mrb[2].mxu0  ;;  %2140 = vmatpush3.bf16.msra.mxu0 %v2734_v55 }
  0xf9   :  { %v1837_v16 = vadd.f32 %v1836_v14, %v1835_v11  ;;  %v1838_v17 = vpop.f32.mrb[2].mxu1  ;;  %v1811_v18 = vpop.f32.mrb[3].mxu0  ;;  %2238 = vmatpush3.bf16.msra.mxu1 %v2721_v52  ;;  %2141 = vmatprep.subr.bf16.mxu0 %v2749_v58 }
  0xfa   :  { %v1812_v19 = vadd.f32 %v1811_v18, %v1810_v15  ;;  %v1839_v20 = vpop.f32.mrb[3].mxu1  ;;  %2239 = vmatprep.subr.bf16.mxu1 %v2754_v59 }
  0xfb   :  { %v644_v21 = vadd.f32 %v1837_v16, %v1809_v13  ;;  %v1840_v22 = vadd.f32 %v1839_v20, %v1838_v17 }
  0xfc   :  { %2142 = vmatpush3.bf16.msra.mxu0 %v2759_v60 }
  0xfd   :  { %v647_v23 = vadd.f32 %v1840_v22, %v1812_v19  ;;  %2240 = vmatpush3.bf16.msra.mxu1 %v2754_v59  ;;  %2143 = vmatprep.subr.bf16.mxu0 %v2766_v61 }
  0xfe   :  { %2241 = vmatprep.subr.bf16.mxu1 %v2773_v62  ;;  %v1813_v28 = vpop.f32.mrb[4].mxu0 }
  0xff   :  { %v1841_v29 = vpop.f32.mrb[4].mxu1  ;;  %v1814_v30 = vpop.f32.mrb[5].mxu0 }
 0x100   :  { %2144 = vmatpush3.bf16.msra.mxu0 %v2778_v63  ;;  %v1815_v31 = vadd.f32 %v1814_v30, %v1813_v28  ;;  %v1842_v36 = vpop.f32.mrb[5].mxu1  ;;  %v1816_v37 = vpop.f32.mrb[6].mxu0 }
 0x101   :  { %2242 = vmatpush3.bf16.msra.mxu1 %v2773_v62  ;;  %v1843_v38 = vadd.f32 %v1842_v36, %v1841_v29  ;;  %v1844_v39 = vpop.f32.mrb[6].mxu1  ;;  %v1817_v40 = vpop.f32.mrb[7].mxu0 }
 0x102   :  { %v1818_v41 = vadd.f32 %v1817_v40, %v1816_v37  ;;  %v1845_v42 = vpop.f32.mrb[7].mxu1 }
 0x103   :  { %1543 = vmatmul.mubr.bf16.vlgmr.msra.gmra.mrb[56].mxu0 %v2375_v24  ;;  %v652_v43 = vadd.f32 %v1843_v38, %v1815_v31  ;;  %v1846_v44 = vadd.f32 %v1845_v42, %v1844_v39 }
 0x104   :  { %2244 = vmatmul.mubr.bf16.vlgmr.msra.gmra.mrb[44].mxu1 %v2379_v25  ;;  %1550 = vmatprep.mubr.bf16.mxu0 %v2380_v26 }
 0x105   :  { %v655_v45 = vadd.f32 %v1846_v44, %v1818_v41 }
 0x10b   :  { %1551 = vmatmul.mubr.bf16.gmra.mrb[60].mxu0 %v2382_v27 }
 0x116   :  { %v1863_v46 = vpop.f32.mrb[8].mxu0 }
 0x117   :  { %v2185_v47 = vpop.f32.mrb[8].mxu1  ;;  %v1864_v48 = vpop.f32.mrb[9].mxu0 }
 0x118   :  { %v741_v49 = vpop.f32.mrb[9].mxu1  ;;  %v1865_v50 = vadd.f32 %v1864_v48, %v1863_v46  ;;  %v1866_v51 = vpop.f32.mrb[10].mxu0 }
 0x119   :  { %v2186_v52 = vpop.f32.mrb[10].mxu1  ;;  %v1867_v55 = vpop.f32.mrb[11].mxu0 }
 0x11a   :  { %v744_v58 = vpop.f32.mrb[11].mxu1  ;;  %v1868_v59 = vadd.f32 %v1867_v55, %v1866_v51  ;;  %v693_v60 = vadd.f32 %v1865_v50, %v644_v21 }
 0x11c   :  { %v3122_v61 = vadd.f32 %v741_v49, %v693_v60  ;;  %v696_v62 = vadd.f32 %v1868_v59, %v647_v23 }
 0x11e   :  { %v3124_v63 = vadd.f32 %v744_v58, %v696_v62  ;;  %v1869_v34 = vpop.f32.mrb[12].mxu0 }
 0x11f   :  { %v1870_v35 = vpop.f32.mrb[13].mxu0 }
 0x120   :  { %v1871_v53 = vadd.f32 %v1870_v35, %v1869_v34  ;;  %v1872_v54 = vpop.f32.mrb[14].mxu0 }
 0x121   :  { %v1873_v56 = vpop.f32.mrb[15].mxu0 }
 0x122   :  { %v701_v57 = vadd.f32 %v1871_v53, %v652_v43  ;;  %v1874_v32 = vadd.f32 %v1873_v56, %v1872_v54 }
 0x124   :  { %v3126_v33 = vadd.f32 %v2185_v47, %v701_v57  ;;  %v704_v0 = vadd.f32 %v1874_v32, %v655_v45 }
 0x126   :  { %v3128_v1 = vadd.f32 %v2186_v52, %v704_v0 }
 0x136   :  { %v1901_v2 = vpop.f32.mrb[16].mxu0 }
 0x137   :  { %v1929_v3 = vpop.f32.mrb[12].mxu1  ;;  %v1902_v4 = vpop.f32.mrb[17].mxu0 }
 0x138   :  { %v1930_v5 = vpop.f32.mrb[13].mxu1  ;;  %v1903_v6 = vadd.f32 %v1902_v4, %v1901_v2  ;;  %v1904_v8 = vpop.f32.mrb[18].mxu0 }
 0x139   :  { %v1931_v7 = vadd.f32 %v1930_v5, %v1929_v3  ;;  %v1932_v9 = vpop.f32.mrb[14].mxu1  ;;  %v1905_v10 = vpop.f32.mrb[19].mxu0 }
 0x13a   :  { %v1933_v11 = vpop.f32.mrb[15].mxu1  ;;  %v1906_v13 = vadd.f32 %v1905_v10, %v1904_v8 }
 0x13b   :  { %v928_v12 = vadd.f32 %v1931_v7, %v1903_v6  ;;  %v1934_v14 = vadd.f32 %v1933_v11, %v1932_v9 }
 0x13d   :  { %v931_v15 = vadd.f32 %v1934_v14, %v1906_v13 }
 0x13e   :  { %v1907_v16 = vpop.f32.mrb[20].mxu0 }
 0x13f   :  { %v1935_v17 = vpop.f32.mrb[16].mxu1  ;;  %v1908_v18 = vpop.f32.mrb[21].mxu0 }
 0x140   :  { %v1936_v19 = vpop.f32.mrb[17].mxu1  ;;  %v1909_v20 = vadd.f32 %v1908_v18, %v1907_v16  ;;  %v1910_v22 = vpop.f32.mrb[22].mxu0 }
 0x141   :  { %v1937_v21 = vadd.f32 %v1936_v19, %v1935_v17  ;;  %v1938_v23 = vpop.f32.mrb[18].mxu1  ;;  %v1911_v24 = vpop.f32.mrb[23].mxu0 }
 0x142   :  { %v1939_v25 = vpop.f32.mrb[19].mxu1  ;;  %v1912_v27 = vadd.f32 %v1911_v24, %v1910_v22 }
 0x143   :  { %v936_v26 = vadd.f32 %v1937_v21, %v1909_v20  ;;  %v1940_v28 = vadd.f32 %v1939_v25, %v1938_v23 }
 0x145   :  { %v939_v29 = vadd.f32 %v1940_v28, %v1912_v27 }
 0x156   :  { %v1957_v30 = vpop.f32.mrb[24].mxu0 }
 0x157   :  { %v2205_v31 = vpop.f32.mrb[20].mxu1  ;;  %v1958_v36 = vpop.f32.mrb[25].mxu0 }
 0x158   :  { %v1025_v37 = vpop.f32.mrb[21].mxu1  ;;  %v1959_v38 = vadd.f32 %v1958_v36, %v1957_v30  ;;  %v1960_v39 = vpop.f32.mrb[26].mxu0 }
 0x159   :  { %v2206_v40 = vpop.f32.mrb[22].mxu1  ;;  %v1961_v41 = vpop.f32.mrb[27].mxu0 }
 0x15a   :  { %v1028_v42 = vpop.f32.mrb[23].mxu1  ;;  %v1962_v43 = vadd.f32 %v1961_v41, %v1960_v39  ;;  %v977_v44 = vadd.f32 %v1959_v38, %v928_v12 }
 0x15c   :  { %v3130_v45 = vadd.f32 %v1025_v37, %v977_v44  ;;  %v980_v46 = vadd.f32 %v1962_v43, %v931_v15 }
 0x15e   :  { %v1608_v47 = vmax.f32 %v3122_v61, %v3130_v45  ;;  %v3134_v48 = vadd.f32 %v1028_v42, %v980_v46  ;;  %v1963_v49 = vpop.f32.mrb[28].mxu0 }
 0x15f   :  { %v1964_v50 = vpop.f32.mrb[29].mxu0 }
 0x160   :  { %v1609_v51 = vmax.f32 %v3124_v63, %v3134_v48  ;;  %v1965_v52 = vadd.f32 %v1964_v50, %v1963_v49  ;;  %v1966_v55 = vpop.f32.mrb[30].mxu0 }
 0x161   :  { %v1967_v58 = vpop.f32.mrb[31].mxu0 }
 0x162   :  { %v985_v59 = vadd.f32 %v1965_v52, %v936_v26  ;;  %v1968_v60 = vadd.f32 %v1967_v58, %v1966_v55 }
 0x164   :  { %v3138_v62 = vadd.f32 %v2205_v31, %v985_v59  ;;  %v988_v34 = vadd.f32 %v1968_v60, %v939_v29 }
 0x166   :  { %v1610_v35 = vmax.f32 %v3126_v33, %v3138_v62  ;;  %v3142_v53 = vadd.f32 %v2206_v40, %v988_v34 }
 0x168   :  { %v1611_v54 = vmax.f32 %v3128_v1, %v3142_v53 }
 0x176   :  { %v1995_v56 = vpop.f32.mrb[32].mxu0 }
 0x177   :  { %v2023_v57 = vpop.f32.mrb[24].mxu1  ;;  %v1996_v32 = vpop.f32.mrb[33].mxu0 }
 0x178   :  { %v2024_v0 = vpop.f32.mrb[25].mxu1  ;;  %v1997_v2 = vadd.f32 %v1996_v32, %v1995_v56  ;;  %v1998_v4 = vpop.f32.mrb[34].mxu0 }
 0x179   :  { %v2025_v3 = vadd.f32 %v2024_v0, %v2023_v57  ;;  %v2026_v5 = vpop.f32.mrb[26].mxu1  ;;  %v1999_v6 = vpop.f32.mrb[35].mxu0 }
 0x17a   :  { %v2027_v7 = vpop.f32.mrb[27].mxu1  ;;  %v2000_v9 = vadd.f32 %v1999_v6, %v1998_v4 }
 0x17b   :  { %v1212_v8 = vadd.f32 %v2025_v3, %v1997_v2  ;;  %v2028_v10 = vadd.f32 %v2027_v7, %v2026_v5 }
 0x17d   :  { %v1215_v11 = vadd.f32 %v2028_v10, %v2000_v9 }
 0x17e   :  { %v2001_v12 = vpop.f32.mrb[36].mxu0 }
 0x17f   :  { %v2029_v13 = vpop.f32.mrb[28].mxu1  ;;  %v2002_v14 = vpop.f32.mrb[37].mxu0 }
 0x180   :  { %v2030_v15 = vpop.f32.mrb[29].mxu1  ;;  %v2003_v16 = vadd.f32 %v2002_v14, %v2001_v12  ;;  %v2004_v18 = vpop.f32.mrb[38].mxu0 }
 0x181   :  { %v2031_v17 = vadd.f32 %v2030_v15, %v2029_v13  ;;  %v2032_v19 = vpop.f32.mrb[30].mxu1  ;;  %v2005_v20 = vpop.f32.mrb[39].mxu0 }
 0x182   :  { %v2033_v21 = vpop.f32.mrb[31].mxu1  ;;  %v2006_v23 = vadd.f32 %v2005_v20, %v2004_v18 }
 0x183   :  { %v1220_v22 = vadd.f32 %v2031_v17, %v2003_v16  ;;  %v2034_v24 = vadd.f32 %v2033_v21, %v2032_v19 }
 0x185   :  { %v1223_v25 = vadd.f32 %v2034_v24, %v2006_v23 }
 0x196   :  { %v2051_v26 = vpop.f32.mrb[40].mxu0 }
 0x197   :  { %v2225_v27 = vpop.f32.mrb[32].mxu1  ;;  %v2052_v28 = vpop.f32.mrb[41].mxu0 }
 0x198   :  { %v1309_v29 = vpop.f32.mrb[33].mxu1  ;;  %v2053_v30 = vadd.f32 %v2052_v28, %v2051_v26  ;;  %v2054_v31 = vpop.f32.mrb[42].mxu0 }
 0x199   :  { %v2226_v36 = vpop.f32.mrb[34].mxu1  ;;  %v2055_v37 = vpop.f32.mrb[43].mxu0 }
 0x19a   :  { %v1312_v38 = vpop.f32.mrb[35].mxu1  ;;  %v2056_v39 = vadd.f32 %v2055_v37, %v2054_v31  ;;  %v1261_v40 = vadd.f32 %v2053_v30, %v1212_v8 }
 0x19c   :  { %v1310_v41 = vadd.f32 %v1309_v29, %v1261_v40  ;;  %v1264_v42 = vadd.f32 %v2056_v39, %v1215_v11 }
 0x19e   :  { %v3146_v43 = vadd.f32 %v1312_v38, %v1264_v42  ;;  %v2057_v44 = vpop.f32.mrb[44].mxu0 }
 0x19f   :  { %v2058_v46 = vpop.f32.mrb[45].mxu0 }
 0x1a0   :  { %v2059_v49 = vadd.f32 %v2058_v46, %v2057_v44  ;;  %v2060_v50 = vpop.f32.mrb[46].mxu0 }
 0x1a1   :  { %v2061_v52 = vpop.f32.mrb[47].mxu0 }
 0x1a2   :  { %v1269_v55 = vadd.f32 %v2059_v49, %v1220_v22  ;;  %v2062_v58 = vadd.f32 %v2061_v52, %v2060_v50  ;;  %v1771_v52 = vld [vmem:[%s3181_s5] ss:$0 sm:$0xff] }
 0x1a4   :  { %v3148_v59 = vadd.f32 %v2225_v27, %v1269_v55  ;;  %v1272_v60 = vadd.f32 %v2062_v58, %v1223_v25 }
 0x1a6   :  { %v3150_v34 = vadd.f32 %v2226_v36, %v1272_v60 }
 0x1b6   :  { %v2089_v56 = vpop.f32.mrb[48].mxu0 }
 0x1b7   :  { %v2117_v57 = vpop.f32.mrb[36].mxu1  ;;  %v2090_v32 = vpop.f32.mrb[49].mxu0 }
 0x1b8   :  { %v2118_v0 = vpop.f32.mrb[37].mxu1  ;;  %v2091_v2 = vadd.f32 %v2090_v32, %v2089_v56  ;;  %v2092_v4 = vpop.f32.mrb[50].mxu0 }
 0x1b9   :  { %v2119_v3 = vadd.f32 %v2118_v0, %v2117_v57  ;;  %v2120_v5 = vpop.f32.mrb[38].mxu1  ;;  %v2093_v6 = vpop.f32.mrb[51].mxu0 }
 0x1ba   :  { %v2121_v7 = vpop.f32.mrb[39].mxu1  ;;  %v2094_v9 = vadd.f32 %v2093_v6, %v2092_v4 }
 0x1bb   :  { %v1496_v8 = vadd.f32 %v2119_v3, %v2091_v2  ;;  %v2122_v10 = vadd.f32 %v2121_v7, %v2120_v5 }
 0x1bd   :  { %v1499_v11 = vadd.f32 %v2122_v10, %v2094_v9 }
 0x1be   :  { %v2095_v12 = vpop.f32.mrb[52].mxu0 }
 0x1bf   :  { %v2123_v13 = vpop.f32.mrb[40].mxu1  ;;  %v2096_v14 = vpop.f32.mrb[53].mxu0 }
 0x1c0   :  { %v2124_v15 = vpop.f32.mrb[41].mxu1  ;;  %v2097_v16 = vadd.f32 %v2096_v14, %v2095_v12  ;;  %v2098_v18 = vpop.f32.mrb[54].mxu0 }
 0x1c1   :  { %v2125_v17 = vadd.f32 %v2124_v15, %v2123_v13  ;;  %v2126_v19 = vpop.f32.mrb[42].mxu1  ;;  %v2099_v20 = vpop.f32.mrb[55].mxu0 }
 0x1c2   :  { %v2127_v21 = vpop.f32.mrb[43].mxu1  ;;  %v2100_v23 = vadd.f32 %v2099_v20, %v2098_v18 }
 0x1c3   :  { %v1504_v22 = vadd.f32 %v2125_v17, %v2097_v16  ;;  %v2128_v24 = vadd.f32 %v2127_v21, %v2126_v19 }
 0x1c5   :  { %v1507_v25 = vadd.f32 %v2128_v24, %v2100_v23 }
 0x1d6   :  { %v2145_v26 = vpop.f32.mrb[56].mxu0 }
 0x1d7   :  { %v2245_v27 = vpop.f32.mrb[44].mxu1  ;;  %v2146_v28 = vpop.f32.mrb[57].mxu0 }
 0x1d8   :  { %v1593_v29 = vpop.f32.mrb[45].mxu1  ;;  %v2147_v30 = vadd.f32 %v2146_v28, %v2145_v26  ;;  %v2148_v31 = vpop.f32.mrb[58].mxu0 }
 0x1d9   :  { %v2246_v36 = vpop.f32.mrb[46].mxu1  ;;  %v2149_v37 = vpop.f32.mrb[59].mxu0 }
 0x1da   :  { %v1596_v38 = vpop.f32.mrb[47].mxu1  ;;  %v2150_v39 = vadd.f32 %v2149_v37, %v2148_v31  ;;  %v1545_v40 = vadd.f32 %v2147_v30, %v1496_v8 }
 0x1dc   :  { %v1594_v42 = vadd.f32 %v1593_v29, %v1545_v40  ;;  %v1548_v44 = vadd.f32 %v2150_v39, %v1499_v11 }
 0x1de   :  { %v1612_v46 = vmax.f32 %v1310_v41, %v1594_v42  ;;  %v1597_v49 = vadd.f32 %v1596_v38, %v1548_v44  ;;  %v2151_v50 = vpop.f32.mrb[60].mxu0 }
 0x1df   :  { %v2152_v55 = vpop.f32.mrb[61].mxu0 }
 0x1e0   :  { %v1616_v58 = vmax.f32 %v1608_v47, %v1612_v46  ;;  %v1613_v60 = vmax.f32 %v3146_v43, %v1597_v49  ;;  %v2153_v56 = vadd.f32 %v2152_v55, %v2151_v50  ;;  %v2154_v57 = vpop.f32.mrb[62].mxu0 }
 0x1e1   :  { %v2155_v32 = vpop.f32.mrb[63].mxu0 }
 0x1e2   :  { %v1627_v0 = vadd.f32 %v1771_v52, %v1616_v58  ;;  %v1617_v41 = vmax.f32 %v1609_v51, %v1613_v60  ;;  %v1553_v2 = vadd.f32 %v2153_v56, %v1504_v22  ;;  %v2156_v3 = vadd.f32 %v2155_v32, %v2154_v57 }
 0x1e4   :  { %v1628_v4 = vadd.f32 %v1771_v52, %v1617_v41  ;;  %v1602_v5 = vadd.f32 %v2245_v27, %v1553_v2  ;;  %v1556_v6 = vadd.f32 %v2156_v3, %v1507_v25  ;;  %v1631_v7 = vmax.f32 %v1627_v0, 0.0 }
 0x1e6   :  { %v1632_v8 = vmax.f32 %v1628_v4, 0.0  ;;  %v1614_v61 = vmax.f32 %v3148_v59, %v1602_v5  ;;  %v1605_v45 = vadd.f32 %v2246_v36, %v1556_v6 }
 0x1e8   :  { %v1783_v47 = vpack.c.bf16 %v1632_v8, %v1631_v7  ;;  %v1618_v43 = vmax.f32 %v1610_v35, %v1614_v61  ;;  %v1615_v9 = vmax.f32 %v3150_v34, %v1605_v45 }
 0x1ea   :  { %1784 = vst [vmem:[%s3182_s6] sm:$0xff] %v1783_v47   ;;  %v1629_v63 = vadd.f32 %v1771_v52, %v1618_v43  ;;  %v1619_v48 = vmax.f32 %v1611_v54, %v1615_v9 }
 0x1ec   :  { %v1630_v51 = vadd.f32 %v1771_v52, %v1619_v48  ;;  %v1633_v10 = vmax.f32 %v1629_v63, 0.0 }
 0x1ee   :  { %v1634_v59 = vmax.f32 %v1630_v51, 0.0 }
 0x1f0   :  { %v1788_v11 = vpack.c.bf16 %v1634_v59, %v1633_v10 }
 0x1f2   :  { %1790 = vst [vmem:[%s3182_s6 + $0x8] sm:$0xff] %v1788_v11  }

// kernel: _lambda_.7
= control target key start
LH: loop header
LB: loop body
LE: loop exit
PB: predicated region body
PF: predicated region fallthrough
CT: control target
= control target key end

     0   :  { %vm491_vm0 = vcmask 523264   ;;  %vm1220_vm1 = vmmov 0   ;;  %s1570_s1 = inlined_call_operand.vmem [shape: bf16[576,256], index: 1, kind: input, shape index: {}]   ;;  %s1571_s0 = inlined_call_operand.vmem [shape: bf16[8,576], index: 0, kind: input, shape index: {}]   ;;  %s1572_s3 = inlined_call_operand.vmem [shape: bf16[256,128], index: 3, kind: input, shape index: {}]   ;;  %s1573_s5 = inlined_call_operand.vmem [shape: bf16[128,128], index: 5, kind: input, shape index: {}]   ;;  %s1574_s2 = inlined_call_operand.vmem [shape: f32[1,256], index: 2, kind: input, shape index: {}]   ;;  %s1575_s4 = inlined_call_operand.vmem [shape: f32[1,128], index: 4, kind: input, shape index: {}]   ;;  %s1576_s6 = inlined_call_operand.vmem [shape: f32[1,128], index: 6, kind: input, shape index: {}]   ;;  %s1577_s7 = inlined_call_operand.vmem [shape: f32[8,128], index: 7, kind: output, shape index: {}]  }
   0x1   :  { %v1081_v0 = vld [vmem:[%s1570_s1 + $0x104] ss:$8 sps:$4 sm:$0xff]   ;;  %v1083_v1 = vld [vmem:[%s1570_s1 + $0x100] ss:$8 sps:$4 sm:$0xff]   ;;  %v1084_v2 = vld [vmem:[%s1570_s1 + $0x114] ss:$8 sps:$4 sm:$0xff]  }
   0x2   :  { %536 = vmatprep.subr.bf16.mxu0 %v1081_v0  ;;  %v1086_v3 = vld [vmem:[%s1570_s1 + $0x110] ss:$8 sps:$4 sm:$0xff]   ;;  %v1087_v4 = vld [vmem:[%s1570_s1 + $0x124] ss:$8 sps:$4 sm:$0xff]   ;;  %v1092_v6 = vld [vmem:[%s1570_s1] ss:$8 sps:$4 sm:$0xff]  }
   0x3   :  { %537 = vmatpush1.bf16.msra.mxu0 %v1083_v1  ;;  %v1090_v5 = vld [vmem:[%s1570_s1 + $0x4] ss:$8 sps:$4 sm:$0xff]   ;;  %v1089_v7 = vld [vmem:[%s1570_s1 + $0x120] ss:$8 sps:$4 sm:$0xff]   ;;  %v1096_v8 = vld [vmem:[%s1570_s1 + $0x14] ss:$8 sps:$4 sm:$0xff]  }
   0x4   :  { %538 = vmatprep.subr.bf16.mxu0 %v1084_v2  ;;  %495 = vmatprep.subr.bf16.mxu1 %v1090_v5  ;;  %v1098_v9 = vld [vmem:[%s1570_s1 + $0x10] ss:$8 sps:$4 sm:$0xff]   ;;  %v1093_v10 = vld [vmem:[%s1570_s1 + $0x134] ss:$8 sps:$4 sm:$0xff]   ;;  %v1102_v12 = vld [vmem:[%s1570_s1 + $0x24] ss:$8 sps:$4 sm:$0xff]  }
   0x5   :  { %496 = vmatpush1.bf16.msra.mxu1 %v1092_v6  ;;  %v1095_v11 = vld [vmem:[%s1570_s1 + $0x130] ss:$8 sps:$4 sm:$0xff]   ;;  %v1099_v13 = vld [vmem:[%s1570_s1 + $0x144] ss:$8 sps:$4 sm:$0xff]   ;;  %v1104_v14 = vld [vmem:[%s1570_s1 + $0x20] ss:$8 sps:$4 sm:$0xff]  }
   0x6   :  { %497 = vmatprep.subr.bf16.mxu1 %v1096_v8  ;;  %v1108_v15 = vld [vmem:[%s1570_s1 + $0x34] ss:$8 sps:$4 sm:$0xff]   ;;  %v1101_v16 = vld [vmem:[%s1570_s1 + $0x140] ss:$8 sps:$4 sm:$0xff]   ;;  %v1110_v18 = vld [vmem:[%s1570_s1 + $0x30] ss:$8 sps:$4 sm:$0xff]  }
   0x7   :  { %539 = vmatpush1.bf16.msra.mxu0 %v1086_v3  ;;  %v1105_v17 = vld [vmem:[%s1570_s1 + $0x154] ss:$8 sps:$4 sm:$0xff]   ;;  %v1114_v19 = vld [vmem:[%s1570_s1 + $0x44] ss:$8 sps:$4 sm:$0xff]   ;;  %v1107_v20 = vld [vmem:[%s1570_s1 + $0x150] ss:$8 sps:$4 sm:$0xff]  }
   0x8   :  { %540 = vmatprep.subr.bf16.mxu0 %v1087_v4  ;;  %v1111_v21 = vld [vmem:[%s1570_s1 + $0x164] ss:$8 sps:$4 sm:$0xff]   ;;  %v1116_v22 = vld [vmem:[%s1570_s1 + $0x40] ss:$8 sps:$4 sm:$0xff]   ;;  %v1120_v23 = vld [vmem:[%s1570_s1 + $0x54] ss:$8 sps:$4 sm:$0xff]  }
   0x9   :  { %498 = vmatpush1.bf16.msra.mxu1 %v1098_v9  ;;  %v1113_v24 = vld [vmem:[%s1570_s1 + $0x160] ss:$8 sps:$4 sm:$0xff]   ;;  %v1117_v25 = vld [vmem:[%s1570_s1 + $0x174] ss:$8 sps:$4 sm:$0xff]   ;;  %v1122_v26 = vld [vmem:[%s1570_s1 + $0x50] ss:$8 sps:$4 sm:$0xff]  }
   0xa   :  { %499 = vmatprep.subr.bf16.mxu1 %v1102_v12  ;;  %v1126_v27 = vld [vmem:[%s1570_s1 + $0x64] ss:$8 sps:$4 sm:$0xff]   ;;  %v1119_v28 = vld [vmem:[%s1570_s1 + $0x170] ss:$8 sps:$4 sm:$0xff]   ;;  %v1128_v30 = vld [vmem:[%s1570_s1 + $0x60] ss:$8 sps:$4 sm:$0xff]  }
   0xb   :  { %541 = vmatpush1.bf16.msra.mxu0 %v1089_v7  ;;  %v1123_v29 = vld [vmem:[%s1570_s1 + $0x184] ss:$8 sps:$4 sm:$0xff]   ;;  %v1132_v31 = vld [vmem:[%s1570_s1 + $0x74] ss:$8 sps:$4 sm:$0xff]   ;;  %v1125_v32 = vld [vmem:[%s1570_s1 + $0x180] ss:$8 sps:$4 sm:$0xff]  }
   0xc   :  { %542 = vmatprep.subr.bf16.mxu0 %v1093_v10  ;;  %v1129_v33 = vld [vmem:[%s1570_s1 + $0x194] ss:$8 sps:$4 sm:$0xff]   ;;  %v1134_v34 = vld [vmem:[%s1570_s1 + $0x70] ss:$8 sps:$4 sm:$0xff]   ;;  %v1138_v35 = vld [vmem:[%s1570_s1 + $0x84] ss:$8 sps:$4 sm:$0xff]  }
   0xd   :  { %500 = vmatpush1.bf16.msra.mxu1 %v1104_v14  ;;  %v1131_v36 = vld [vmem:[%s1570_s1 + $0x190] ss:$8 sps:$4 sm:$0xff]   ;;  %v1135_v37 = vld [vmem:[%s1570_s1 + $0x1a4] ss:$8 sps:$4 sm:$0xff]   ;;  %v1140_v38 = vld [vmem:[%s1570_s1 + $0x80] ss:$8 sps:$4 sm:$0xff]  }
   0xe   :  { %501 = vmatprep.subr.bf16.mxu1 %v1108_v15  ;;  %v1144_v39 = vld [vmem:[%s1570_s1 + $0x94] ss:$8 sps:$4 sm:$0xff]   ;;  %v1137_v40 = vld [vmem:[%s1570_s1 + $0x1a0] ss:$8 sps:$4 sm:$0xff]   ;;  %v1146_v42 = vld [vmem:[%s1570_s1 + $0x90] ss:$8 sps:$4 sm:$0xff]  }
   0xf   :  { %543 = vmatpush1.bf16.msra.mxu0 %v1095_v11  ;;  %v1141_v41 = vld [vmem:[%s1570_s1 + $0x1b4] ss:$8 sps:$4 sm:$0xff]   ;;  %v1150_v43 = vld [vmem:[%s1570_s1 + $0xa4] ss:$8 sps:$4 sm:$0xff]   ;;  %v1143_v46 = vld [vmem:[%s1570_s1 + $0x1b0] ss:$8 sps:$4 sm:$0xff]  }
  0x10   :  { %544 = vmatprep.subr.bf16.mxu0 %v1099_v13  ;;  %v28_v44 = vld [vmem:[%s1571_s0 + $0x8] sm:$0xff]  ;;  %v1156_v49 = vld [vmem:[%s1570_s1 + $0xb4] ss:$8 sps:$4 sm:$0xff]   ;;  %v1158_v52 = vld [vmem:[%s1570_s1 + $0xb0] ss:$8 sps:$4 sm:$0xff]   ;;  %v1218_v11 = vmov 0  }
  0x11   :  { %502 = vmatpush1.bf16.msra.mxu1 %v1110_v18  ;;  %v918_v45 = vcombine.high %v28_v44, %v28_v44  ;;  %v1152_v47 = vld [vmem:[%s1570_s1 + $0xa0] ss:$8 sps:$4 sm:$0xff]   ;;  %v1147_v48 = vld [vmem:[%s1570_s1 + $0x1c4] ss:$8 sps:$4 sm:$0xff]   ;;  %v1153_v51 = vld [vmem:[%s1570_s1 + $0x1d4] ss:$8 sps:$4 sm:$0xff]   ;;  %v917_v5 = vcombine.low %v28_v44, %v28_v44 }
  0x12   :  { %503 = vmatprep.subr.bf16.mxu1 %v1114_v19  ;;  %v1149_v50 = vld [vmem:[%s1570_s1 + $0x1c0] ss:$8 sps:$4 sm:$0xff]   ;;  %v1162_v54 = vld [vmem:[%s1570_s1 + $0xc4] ss:$8 sps:$4 sm:$0xff]   ;;  %v1155_v56 = vld [vmem:[%s1570_s1 + $0x1d0] ss:$8 sps:$4 sm:$0xff]  }
  0x13   :  { %545 = vmatpush1.bf16.msra.mxu0 %v1101_v16  ;;  %568 = vmatprep.mubr.bf16.mxu0 %v918_v45  ;;  %v27_v53 = vld [vmem:[%s1571_s0] sm:$0xff]  ;;  %v1168_v59 = vld [vmem:[%s1570_s1 + $0xd4] ss:$8 sps:$4 sm:$0xff]   ;;  %v1170_v62 = vld [vmem:[%s1570_s1 + $0xd0] ss:$8 sps:$4 sm:$0xff]  }
  0x14   :  { %546 = vmatprep.subr.bf16.mxu0 %v1105_v17  ;;  %v916_v55 = vcombine.high %v27_v53, %v27_v53  ;;  %v1159_v57 = vld [vmem:[%s1570_s1 + $0x1e4] ss:$8 sps:$4 sm:$0xff]   ;;  %v1164_v58 = vld [vmem:[%s1570_s1 + $0xc0] ss:$8 sps:$4 sm:$0xff]   ;;  %v1165_v61 = vld [vmem:[%s1570_s1 + $0x1f4] ss:$8 sps:$4 sm:$0xff]   ;;  %v915_v8 = vcombine.low %v27_v53, %v27_v53 }
  0x15   :  { %504 = vmatpush1.bf16.msra.mxu1 %v1116_v22  ;;  %v1161_v60 = vld [vmem:[%s1570_s1 + $0x1e0] ss:$8 sps:$4 sm:$0xff]   ;;  %v1177_v63 = vld [vmem:[%s1570_s1 + $0xe4] ss:$8 sps:$4 sm:$0xff]   ;;  %v1167_v0 = vld [vmem:[%s1570_s1 + $0x1f0] ss:$8 sps:$4 sm:$0xff]  }
  0x16   :  { %505 = vmatprep.subr.bf16.mxu1 %v1120_v23  ;;  %527 = vmatprep.mubr.bf16.mxu1 %v916_v55  ;;  %v1176_v1 = vld [vmem:[%s1570_s1 + $0x204] ss:$8 sps:$4 sm:$0xff]   ;;  %v1179_v2 = vld [vmem:[%s1570_s1 + $0xe0] ss:$8 sps:$4 sm:$0xff]   ;;  %v1183_v3 = vld [vmem:[%s1570_s1 + $0xf4] ss:$8 sps:$4 sm:$0xff]  }
  0x17   :  { %547 = vmatpush1.bf16.msra.mxu0 %v1107_v20  ;;  %v1174_v4 = vld [vmem:[%s1570_s1 + $0x200] ss:$8 sps:$4 sm:$0xff]   ;;  %v1185_v6 = vld [vmem:[%s1570_s1 + $0xf0] ss:$8 sps:$4 sm:$0xff]   ;;  %v1182_v7 = vld [vmem:[%s1570_s1 + $0x214] ss:$8 sps:$4 sm:$0xff]  }
  0x18   :  { %548 = vmatprep.subr.bf16.mxu0 %v1111_v21  ;;  %v1180_v9 = vld [vmem:[%s1570_s1 + $0x210] ss:$8 sps:$4 sm:$0xff]   ;;  %v1188_v10 = vld [vmem:[%s1570_s1 + $0x224] ss:$8 sps:$4 sm:$0xff]   ;;  %v1186_v12 = vld [vmem:[%s1570_s1 + $0x220] ss:$8 sps:$4 sm:$0xff]  }
  0x19   :  { %506 = vmatpush1.bf16.msra.mxu1 %v1122_v26  ;;  %v1193_v13 = vld [vmem:[%s1570_s1 + $0x234] ss:$8 sps:$4 sm:$0xff]   ;;  %v1191_v14 = vld [vmem:[%s1570_s1 + $0x230] ss:$8 sps:$4 sm:$0xff]   ;;  %v1194_v15 = vld [vmem:[%s1572_s3 + $0x40] sm:$0xff]  }
  0x1a   :  { %507 = vmatprep.subr.bf16.mxu1 %v1126_v27  ;;  %v1173_v16 = vld [vmem:[%s1571_s0 + $0x10] ss:$0 sps:$4 sm:$0xff]   ;;  %v1195_v17 = vld [vmem:[%s1572_s3] sm:$0xff]   ;;  %v1196_v18 = vld [vmem:[%s1572_s3 + $0x48] sm:$0xff]  }
  0x1b   :  { %549 = vmatpush1.bf16.msra.mxu0 %v1113_v24  ;;  %v1197_v19 = vld [vmem:[%s1572_s3 + $0x8] sm:$0xff]   ;;  %v1198_v20 = vld [vmem:[%s1572_s3 + $0x50] sm:$0xff]   ;;  %v1200_v22 = vld [vmem:[%s1572_s3 + $0x58] sm:$0xff]  }
  0x1c   :  { %550 = vmatprep.subr.bf16.mxu0 %v1117_v25  ;;  %v1199_v21 = vld [vmem:[%s1572_s3 + $0x10] sm:$0xff]   ;;  %v1201_v23 = vld [vmem:[%s1572_s3 + $0x18] sm:$0xff]   ;;  %v1202_v24 = vld [vmem:[%s1572_s3 + $0x60] sm:$0xff]  }
  0x1d   :  { %508 = vmatpush1.bf16.msra.mxu1 %v1128_v30  ;;  %v1203_v25 = vld [vmem:[%s1572_s3 + $0x20] sm:$0xff]   ;;  %v1204_v26 = vld [vmem:[%s1572_s3 + $0x68] sm:$0xff]   ;;  %v1208_v30 = vld [vmem:[%s1572_s3 + $0x78] sm:$0xff]  }
  0x1e   :  { %509 = vmatprep.subr.bf16.mxu1 %v1132_v31  ;;  %v1205_v27 = vld [vmem:[%s1572_s3 + $0x28] sm:$0xff]   ;;  %v1209_v31 = vld [vmem:[%s1572_s3 + $0x38] sm:$0xff]   ;;  %v102_v44 = vld [vmem:[%s1574_s2] sm:$0x3] }
  0x1f   :  { %551 = vmatpush1.bf16.msra.mxu0 %v1119_v28  ;;  %v1206_v28 = vld [vmem:[%s1572_s3 + $0x70] sm:$0xff]  }
  0x20   :  { %552 = vmatprep.subr.bf16.mxu0 %v1123_v29  ;;  %v1207_v29 = vld [vmem:[%s1572_s3 + $0x30] sm:$0xff]  }
  0x21   :  { %510 = vmatpush1.bf16.msra.mxu1 %v1134_v34  ;;  %v1211_v34 = vld [vmem:[%s1573_s5 + $0x8] sm:$0xff]  }
  0x22   :  { %511 = vmatprep.subr.bf16.mxu1 %v1138_v35  ;;  %v1212_v35 = vld [vmem:[%s1573_s5 + $0x10] sm:$0xff]  }
  0x23   :  { %553 = vmatpush1.bf16.msra.mxu0 %v1125_v32  ;;  %v1219_v32 = vmov 0.0  }
  0x24   :  { %554 = vmatprep.subr.bf16.mxu0 %v1129_v33  ;;  %v1210_v33 = vld [vmem:[%s1573_s5] sm:$0xff]  }
  0x25   :  { %512 = vmatpush1.bf16.msra.mxu1 %v1140_v38  ;;  %v1215_v38 = vld [vmem:[%s1573_s5 + $0x28] sm:$0xff]  }
  0x26   :  { %513 = vmatprep.subr.bf16.mxu1 %v1144_v39  ;;  %v104_v39 = vlaneseq }
  0x27   :  { %555 = vmatpush1.bf16.msra.mxu0 %v1131_v36  ;;  %v1213_v36 = vld [vmem:[%s1573_s5 + $0x18] sm:$0xff]  }
  0x28   :  { %556 = vmatprep.subr.bf16.mxu0 %v1135_v37  ;;  %v1214_v37 = vld [vmem:[%s1573_s5 + $0x20] sm:$0xff]  }
  0x29   :  { %514 = vmatpush1.bf16.msra.mxu1 %v1146_v42 }
  0x2a   :  { %515 = vmatprep.subr.bf16.mxu1 %v1150_v43 }
  0x2b   :  { %557 = vmatpush1.bf16.msra.mxu0 %v1137_v40  ;;  %v105_v40 = vshrl.u32 %v104_v39, 7 }
  0x2c   :  { %558 = vmatprep.subr.bf16.mxu0 %v1141_v41 }
  0x2d   :  { %516 = vmatpush1.bf16.msra.mxu1 %v1152_v47  ;;  %v106_v42 = vsub.s32 0, %v105_v40  ;;  %v110_v45 = vsub.s32 1, %v105_v40 }
  0x2e   :  { %517 = vmatprep.subr.bf16.mxu1 %v1156_v49 }
  0x2f   :  { %559 = vmatpush1.bf16.msra.mxu0 %v1143_v46  ;;  %v111_v49 = vrot.slane %v102_v44, %v110_v45 }
  0x30   :  { %560 = vmatprep.subr.bf16.mxu0 %v1147_v48  ;;  %v107_v48 = vrot.slane %v102_v44, %v106_v42 }
  0x31   :  { %518 = vmatpush1.bf16.msra.mxu1 %v1158_v52 }
  0x32   :  { %519 = vmatprep.subr.bf16.mxu1 %v1162_v54 }
  0x33   :  { %561 = vmatpush1.bf16.msra.mxu0 %v1149_v50 }
  0x34   :  { %562 = vmatprep.subr.bf16.mxu0 %v1153_v51 }
  0x35   :  { %520 = vmatpush1.bf16.msra.mxu1 %v1164_v58 }
  0x36   :  { %521 = vmatprep.subr.bf16.mxu1 %v1168_v59 }
  0x37   :  { %563 = vmatpush1.bf16.msra.mxu0 %v1155_v56 }
  0x38   :  { %564 = vmatprep.subr.bf16.mxu0 %v1159_v57 }
  0x39   :  { %522 = vmatpush1.bf16.msra.mxu1 %v1170_v62  ;;  %v1216_v62 = vld [vmem:[%s1573_s5 + $0x30] sm:$0xff]  }
  0x3a   :  { %523 = vmatprep.subr.bf16.mxu1 %v1177_v63  ;;  %v1217_v63 = vld [vmem:[%s1573_s5 + $0x38] sm:$0xff]  }
  0x3b   :  { %565 = vmatpush1.bf16.msra.mxu0 %v1161_v60 }
  0x3c   :  { %566 = vmatprep.subr.bf16.mxu0 %v1165_v61 }
  0x3d   :  { %524 = vmatpush1.bf16.msra.mxu1 %v1179_v2 }
  0x3e   :  { %525 = vmatprep.subr.bf16.mxu1 %v1183_v3 }
  0x3f   :  { %567 = vmatpush1.bf16.msra.mxu0 %v1167_v0 }
  0x40   :  { %577 = vmatprep.subr.bf16.mxu0 %v1176_v1  ;;  %v993_v1 = vld [vmem:[%s1575_s4] ss:$0 sm:$0xff] }
  0x41   :  { %526 = vmatpush1.bf16.msra.mxu1 %v1185_v6 }
  0x42   :  { %569 = vmatmul.mubr.bf16.vlgmr.msra.gmra.mrb[0].mxu0 %v917_v5  ;;  %1050 = vmatprep.subr.bf16.mxu1 %v1219_v32 }
  0x43   :  { %578 = vmatpush1.bf16.msra.mxu0 %v1174_v4  ;;  %609 = vmatprep.mubr.bf16.mxu0 %v1218_v11 }
  0x44   :  { %579 = vmatprep.subr.bf16.mxu0 %v1182_v7  ;;  %528 = vmatmul.mubr.bf16.vlgmr.msra.gmra.mrb[0].mxu1 %v915_v8 }
  0x45   :  { %1051 = vmatpush3.bf16.msra.mxu1 %v1210_v33  ;;  %1066 = vmatprep.mubr.msk.bf16.mxu1 %vm1220_vm1, %v1219_v32 }
  0x46   :  { %1052 = vmatprep.subr.bf16.mxu1 %v1219_v32 }
  0x47   :  { %580 = vmatpush1.bf16.msra.mxu0 %v1180_v9  ;;  %v1010_v9 = vld [vmem:[%s1576_s6] ss:$0 sm:$0xff] }
  0x48   :  { %581 = vmatprep.subr.bf16.mxu0 %v1188_v10 }
  0x49   :  { %1053 = vmatpush3.bf16.msra.mxu1 %v1211_v34 }
  0x4a   :  { %1054 = vmatprep.subr.bf16.mxu1 %v1219_v32 }
  0x4b   :  { %582 = vmatpush1.bf16.msra.mxu0 %v1186_v12 }
  0x4c   :  { %583 = vmatprep.subr.bf16.mxu0 %v1193_v13 }
  0x4d   :  { %1055 = vmatpush3.bf16.msra.mxu1 %v1212_v35 }
  0x4e   :  { %1056 = vmatprep.subr.bf16.mxu1 %v1219_v32 }
  0x4f   :  { %584 = vmatpush1.bf16.msra.mxu0 %v1191_v14 }
  0x50   :  { %1019 = vmatprep.subr.bf16.mxu0 %v1194_v15 }
  0x51   :  { %1057 = vmatpush3.bf16.msra.mxu1 %v1213_v36 }
  0x52   :  { %992 = vmatmul.mubr.msk.bf16.vlgmr.msra.gmra.mrb[0].mxu0 %vm491_vm0, %v1173_v16  ;;  %1058 = vmatprep.subr.bf16.mxu1 %v1219_v32 }
  0x53   :  { %1020 = vmatpush3.bf16.msra.mxu0 %v1195_v17 }
  0x54   :  { %1021 = vmatprep.subr.bf16.mxu0 %v1196_v18 }
  0x55   :  { %1059 = vmatpush3.bf16.msra.mxu1 %v1214_v37 }
  0x56   :  { %1060 = vmatprep.subr.bf16.mxu1 %v1219_v32 }
  0x57   :  { %1022 = vmatpush3.bf16.msra.mxu0 %v1197_v19 }
  0x58   :  { %1023 = vmatprep.subr.bf16.mxu0 %v1198_v20 }
  0x59   :  { %1061 = vmatpush3.bf16.msra.mxu1 %v1215_v38 }
  0x5a   :  { %1062 = vmatprep.subr.bf16.mxu1 %v1219_v32 }
  0x5b   :  { %1024 = vmatpush3.bf16.msra.mxu0 %v1199_v21 }
  0x5c   :  { %1025 = vmatprep.subr.bf16.mxu0 %v1200_v22 }
  0x5d   :  { %1063 = vmatpush3.bf16.msra.mxu1 %v1216_v62 }
  0x5e   :  { %1064 = vmatprep.subr.bf16.mxu1 %v1219_v32 }
  0x5f   :  { %1026 = vmatpush3.bf16.msra.mxu0 %v1201_v23 }
  0x60   :  { %1027 = vmatprep.subr.bf16.mxu0 %v1202_v24 }
  0x61   :  { %1065 = vmatpush3.bf16.msra.mxu1 %v1217_v63 }
  0x63   :  { %1028 = vmatpush3.bf16.msra.mxu0 %v1203_v25 }
  0x64   :  { %1029 = vmatprep.subr.bf16.mxu0 %v1204_v26 }
  0x67   :  { %1030 = vmatpush3.bf16.msra.mxu0 %v1205_v27 }
  0x68   :  { %1031 = vmatprep.subr.bf16.mxu0 %v1206_v28 }
  0x6b   :  { %1032 = vmatpush3.bf16.msra.mxu0 %v1207_v29 }
  0x6c   :  { %1033 = vmatprep.subr.bf16.mxu0 %v1208_v30 }
  0x6f   :  { %1034 = vmatpush3.bf16.msra.mxu0 %v1209_v31 }
 0x117   :  { %v529_v41 = vpop.f32.mrb[0].mxu1 }
 0x118   :  { %v531_v43 = vpop.f32.mrb[1].mxu1  ;;  %v530_v50 = vadd.f32 %v529_v41, %v107_v48 }
 0x119   :  { %v533_v46 = vpop.f32.mrb[2].mxu1  ;;  %v532_v51 = vadd.f32 %v531_v43, %v111_v49 }
 0x11a   :  { %v534_v47 = vpop.f32.mrb[3].mxu1 }
 0x125   :  { %v611_v52 = vpop.f32.mrb[0].mxu0 }
 0x126   :  { %v1071_v53 = vadd.f32 %v611_v52, %v530_v50  ;;  %v613_v54 = vpop.f32.mrb[1].mxu0 }
 0x127   :  { %v1073_v55 = vadd.f32 %v613_v54, %v532_v51  ;;  %v615_v56 = vpop.f32.mrb[2].mxu0 }
 0x128   :  { %v618_v57 = vmax.f32 %v1071_v53, 0.0  ;;  %v616_v58 = vpop.f32.mrb[3].mxu0 }
 0x129   :  { %v619_v59 = vmax.f32 %v1073_v55, 0.0 }
 0x12a   :  { %v620_v61 = vpack.c.bf16 %v618_v57, %v618_v57 }
 0x12b   :  { %v621_v60 = vpack.c.bf16 %v619_v59, %v619_v59 }
 0x12d   :  { %789 = vmatprep.mubr.bf16.mxu0 %v621_v60 }
 0x12e   :  { %790 = vmatmul.mubr.bf16.vlgmr.msra.gmra.mrb[4].mxu0 %v620_v61 }
 0x201   :  { %v1035_v0 = vpop.f32.mrb[4].mxu0 }
 0x202   :  { %v1036_v2 = vpop.f32.mrb[5].mxu0 }
 0x203   :  { %v1037_v3 = vadd.f32 %v1036_v2, %v1035_v0  ;;  %v1038_v4 = vpop.f32.mrb[6].mxu0 }
 0x204   :  { %v1039_v5 = vpop.f32.mrb[7].mxu0 }
 0x205   :  { %v792_v6 = vadd.f32 %v1037_v3, %v993_v1 }
 0x207   :  { %v797_v7 = vmax.f32 %v792_v6, 0.0 }
 0x209   :  { %v798_v8 = vpack.c.bf16 %v797_v7, %v797_v7 }
 0x20b   :  { %1067 = vmatmul.mubr.bf16.vlgmr.msra.gmra.mrb[4].mxu1 %v798_v8 }
 0x2de   :  { %v904_v10 = vpop.f32.mrb[4].mxu1 }
 0x2df   :  { %v905_v11 = vadd.f32 %v1010_v9, %v904_v10  ;;  %v1068_v12 = vpop.f32.mrb[5].mxu1 }
 0x2e0   :  { %v907_v13 = vpop.f32.mrb[6].mxu1 }
 0x2e1   :  { %910 = vst [vmem:[%s1577_s7] sm:$0xff] %v905_v11  ;;  %v1069_v14 = vpop.f32.mrb[7].mxu1 }

</bundles_post_ra>
